<compile_context>
chip_gen: v7x
topology: tpu7x:2x2x1
jax: 0.10.0
libtpu: 0.0.40
codegen_flags: <defaults>
</compile_context>

<pallas_src>
import jax
import jax.numpy as jnp
from jax import lax
from jax.experimental import pallas as pl
from jax.experimental.pallas import tpu as pltpu

# ----------------------- small synthetic wav2vec2 config -----------------------
# Lane-dense widths (multiples of 128); real model: conv dim 512, D=768,
# FFN=3072, 12 heads, 12 layers.
BATCH = 2
T_AUDIO = 320
CONV0_DIM, CONV0_K, CONV0_S = 128, 10, 5
CONV1_DIM, CONV1_K, CONV1_S = 128, 4, 2
MODEL_DIM = 128
NUM_HEADS = 4
HEAD_DIM = MODEL_DIM // NUM_HEADS
FFN_DIM = 256
NUM_LAYERS = 2
POS_CONV_K = 5
POS_CONV_GROUPS = 4
POS_PAD = POS_CONV_K // 2
EPS = 1e-5

T_CONV0 = (T_AUDIO - CONV0_K) // CONV0_S + 1      # 63 frames after conv0
T_FRAMES = (T_CONV0 - CONV1_K) // CONV1_S + 1     # 30 frames after conv1

CONV0_KPAD = 128                                  # conv0 im2col patch lanes (10 -> 128)
ACT_DTYPE = jnp.bfloat16                          # HBM storage dtype (weights + activations)

_PARALLEL = pltpu.CompilerParams(dimension_semantics=("parallel",))
_ARBITRARY = pltpu.CompilerParams(dimension_semantics=("arbitrary",))


def _gelu(x):
    # TODO(synk): torch/fairseq use exact erf GELU; tanh approximation (~1e-3 diff).
    return jax.nn.gelu(x, approximate=True)


def _layernorm_f32(x, g, b):
    mu = jnp.mean(x, axis=-1, keepdims=True)
    var = jnp.mean(jnp.square(x - mu), axis=-1, keepdims=True)
    return (x - mu) * lax.rsqrt(var + EPS) * g + b


def _batch_spec(t, c):
    return pl.BlockSpec((1, t, c), lambda i: (i, 0, 0))


def _full_spec(shape):
    nd = len(shape)
    return pl.BlockSpec(shape, lambda i: (0,) * nd)


def _stacked_spec(per_layer_shape):
    zeros = (0,) * len(per_layer_shape)
    return pl.BlockSpec((1,) + per_layer_shape, lambda l: (l,) + zeros)


def _whole_spec(shape):
    zeros = (0,) * len(shape)
    return pl.BlockSpec(shape, lambda l: zeros)


# --------------------------------- kernels -------------------------------------
def _conv0_gn_gelu_kernel(p_ref, w_ref, g_ref, b_ref, o_ref):
    # p_ref: (1, T_CONV0, 128) im2col patches (lanes >= K0 are zero)
    # w_ref: (128, C0) zero-padded conv0 weight (bias-free conv)
    # conv0 -> GroupNorm(num_groups=C0, stats over time per sample) -> GELU
    x = p_ref[...][0]                                                     # (T0, 128) bf16
    acc = jnp.dot(x, w_ref[...], preferred_element_type=jnp.float32)     # lane-dense MXU matmul
    mu = jnp.mean(acc, axis=0, keepdims=True)
    var = jnp.mean(jnp.square(acc - mu), axis=0, keepdims=True)
    y = (acc - mu) * lax.rsqrt(var + EPS) * g_ref[...].astype(jnp.float32) \
        + b_ref[...].astype(jnp.float32)
    o_ref[...] = _gelu(y)[None].astype(o_ref.dtype)


def _conv1_proj_posconv_kernel(p_ref, w_ref, lng_ref, lnb_ref, pw_ref, pb_ref,
                               posw_ref, posb_ref, eg_ref, eb_ref, o_ref):
    # p_ref: (1, T_FRAMES, K1*C0) conv1 im2col patches
    # conv1 (bias-free) -> GELU -> LayerNorm -> post_extract_proj
    # -> x + GELU(grouped pos_conv(x)) -> encoder LayerNorm
    patches = p_ref[...][0]                                               # (T, 512) bf16
    h = jnp.dot(patches, w_ref[...], preferred_element_type=jnp.float32)
    h = _gelu(h)
    h = _layernorm_f32(h, lng_ref[...].astype(jnp.float32), lnb_ref[...].astype(jnp.float32))
    y = jnp.dot(h.astype(pw_ref.dtype), pw_ref[...],
                preferred_element_type=jnp.float32) + pb_ref[...].astype(jnp.float32)

    # grouped pos-conv (per-tap block-diagonal dense weight), zero time padding in-kernel
    posw = posw_ref[...].astype(jnp.float32)                              # (K, D, D)
    zeros = jnp.zeros((POS_PAD, MODEL_DIM), jnp.float32)
    yp = jnp.concatenate([zeros, y, zeros], axis=0)                       # (T + 2*PAD, D)
    acc = jnp.zeros((T_FRAMES, MODEL_DIM), jnp.float32)
    for k in range(POS_CONV_K):                                           # static taps, value slices
        acc = acc + jnp.dot(yp[k:k + T_FRAMES, :], posw[k],
                            preferred_element_type=jnp.float32)
    z = y + _gelu(acc + posb_ref[...].astype(jnp.float32))
    z = _layernorm_f32(z, eg_ref[...].astype(jnp.float32), eb_ref[...].astype(jnp.float32))
    o_ref[...] = z[None].astype(o_ref.dtype)


def _encoder_stack_kernel(x_ref, wqkv_ref, bqkv_ref, wo_ref, bo_ref,
                          g1_ref, b1_ref, w1_ref, fb1_ref, w2_ref, fb2_ref,
                          g2_ref, b2_ref, lr_ref, h_scr):
    # One grid step == one encoder layer (grid axis "arbitrary", weights stacked (L, ...)).
    # Hidden state (B*T, D) lives in f32 VMEM scratch across all layers; only the
    # last layer's fc2 output (layer_result) is written back to HBM.
    layer = pl.program_id(0)

    @pl.when(layer == 0)
    def _init():
        h_scr[...] = x_ref[...].astype(jnp.float32)

    x = h_scr[...]                                                        # (B*T, D) f32

    # ---- multi-head self-attention (1/sqrt(dh) pre-folded into Wq/bq) ----
    wqkv = wqkv_ref[...][0]                                               # (D, 3D) bf16
    qkv = jnp.dot(x.astype(wqkv.dtype), wqkv,
                  preferred_element_type=jnp.float32) + bqkv_ref[...][0].astype(jnp.float32)
    q = qkv[:, 0 * MODEL_DIM:1 * MODEL_DIM]
    k = qkv[:, 1 * MODEL_DIM:2 * MODEL_DIM]
    v = qkv[:, 2 * MODEL_DIM:3 * MODEL_DIM]

    batch_outs = []
    for b in range(BATCH):                                                # per-sample scores/softmax
        r0, r1 = b * T_FRAMES, (b + 1) * T_FRAMES
        qb, kb, vb = q[r0:r1], k[r0:r1], v[r0:r1]
        head_outs = []
        for h in range(NUM_HEADS):
            c0, c1 = h * HEAD_DIM, (h + 1) * HEAD_DIM
            s = lax.dot_general(qb[:, c0:c1], kb[:, c0:c1],
                                (((1,), (1,)), ((), ())),
                                preferred_element_type=jnp.float32)       # (T, T)
            s = s - jnp.max(s, axis=-1, keepdims=True)
            p = jnp.exp(s)
            p = p / jnp.sum(p, axis=-1, keepdims=True)                    # exact division
            head_outs.append(jnp.dot(p, vb[:, c0:c1],
                                     preferred_element_type=jnp.float32))
        batch_outs.append(jnp.concatenate(head_outs, axis=-1))            # (T, D)
    o_cat = jnp.concatenate(batch_outs, axis=0)                           # (B*T, D)

    # output projection hoisted out of the head loop: one K=D matmul
    wo = wo_ref[...][0]
    attn = jnp.dot(o_cat.astype(wo.dtype), wo,
                   preferred_element_type=jnp.float32) + bo_ref[...][0].astype(jnp.float32)
    h1 = _layernorm_f32(attn + x,
                        g1_ref[...][0].astype(jnp.float32),
                        b1_ref[...][0].astype(jnp.float32))

    # ---- feed-forward ----
    w1 = w1_ref[...][0]
    f = _gelu(jnp.dot(h1.astype(w1.dtype), w1,
                      preferred_element_type=jnp.float32) + fb1_ref[...][0].astype(jnp.float32))
    w2 = w2_ref[...][0]
    lr = jnp.dot(f.astype(w2.dtype), w2,
                 preferred_element_type=jnp.float32) + fb2_ref[...][0].astype(jnp.float32)
    h2 = _layernorm_f32(lr + h1,
                        g2_ref[...][0].astype(jnp.float32),
                        b2_ref[...][0].astype(jnp.float32))
    h_scr[...] = h2

    @pl.when(layer == NUM_LAYERS - 1)
    def _emit():
        lr_ref[...] = lr.astype(lr_ref.dtype)                             # layer_result, last layer only


# ------------------------------ wrapper-side glue -------------------------------
def _im2col_conv0(x):
    # x: (B, T_AUDIO) -> (B, T_CONV0, 128) patches; lanes >= K0 are zero.
    cols = [x[:, k:k + CONV0_S * T_CONV0:CONV0_S] for k in range(CONV0_K)]
    patches = jnp.stack(cols, axis=-1)                                    # (B, T0, K0)
    return jnp.pad(patches, ((0, 0), (0, 0), (0, CONV0_KPAD - CONV0_K)))


def _im2col_conv1(c0):
    # c0: (B, T_CONV0, C0) -> (B, T_FRAMES, K1*C0), tap-major channel order.
    cols = [c0[:, k:k + CONV1_S * T_FRAMES:CONV1_S, :] for k in range(CONV1_K)]
    return jnp.concatenate(cols, axis=-1)


def conv_block0(patches, p):
    b = patches.shape[0]
    return pl.pallas_call(
        _conv0_gn_gelu_kernel,
        out_shape=jax.ShapeDtypeStruct((b, T_CONV0, CONV0_DIM), patches.dtype),
        grid=(b,),
        in_specs=[_batch_spec(T_CONV0, CONV0_KPAD),
                  _full_spec((CONV0_KPAD, CONV0_DIM)),
                  _full_spec((1, CONV0_DIM)),
                  _full_spec((1, CONV0_DIM))],
        out_specs=_batch_spec(T_CONV0, CONV0_DIM),
        compiler_params=_PARALLEL,
    )(patches, p["conv0_w2d"], p["gn_g"], p["gn_b"])


def feat_proj_posconv_block(patches, p):
    b = patches.shape[0]
    return pl.pallas_call(
        _conv1_proj_posconv_kernel,
        out_shape=jax.ShapeDtypeStruct((b, T_FRAMES, MODEL_DIM), patches.dtype),
        grid=(b,),
        in_specs=[_batch_spec(T_FRAMES, CONV1_K * CONV0_DIM),
                  _full_spec((CONV1_K * CONV0_DIM, CONV1_DIM)),
                  _full_spec((1, CONV1_DIM)),
                  _full_spec((1, CONV1_DIM)),
                  _full_spec((CONV1_DIM, MODEL_DIM)),
                  _full_spec((1, MODEL_DIM)),
                  _full_spec((POS_CONV_K, MODEL_DIM, MODEL_DIM)),
                  _full_spec((1, MODEL_DIM)),
                  _full_spec((1, MODEL_DIM)),
                  _full_spec((1, MODEL_DIM))],
        out_specs=_batch_spec(T_FRAMES, MODEL_DIM),
        compiler_params=_PARALLEL,
    )(patches, p["conv1_w2d"], p["post_ln_g"], p["post_ln_b"],
      p["proj_w"], p["proj_b"], p["pos_w3d"], p["pos_b"],
      p["enc_ln_g"], p["enc_ln_b"])


def encoder_stack(h_flat, p):
    d, f = MODEL_DIM, FFN_DIM
    n = BATCH * T_FRAMES
    return pl.pallas_call(
        _encoder_stack_kernel,
        out_shape=jax.ShapeDtypeStruct((n, d), h_flat.dtype),
        grid=(NUM_LAYERS,),
        in_specs=[_whole_spec((n, d)),
                  _stacked_spec((d, 3 * d)), _stacked_spec((1, 3 * d)),
                  _stacked_spec((d, d)), _stacked_spec((1, d)),
                  _stacked_spec((1, d)), _stacked_spec((1, d)),
                  _stacked_spec((d, f)), _stacked_spec((1, f)),
                  _stacked_spec((f, d)), _stacked_spec((1, d)),
                  _stacked_spec((1, d)), _stacked_spec((1, d))],
        out_specs=_whole_spec((n, d)),
        scratch_shapes=[pltpu.VMEM((n, d), jnp.float32)],
        compiler_params=_ARBITRARY,
    )(h_flat, p["w_qkv"], p["b_qkv"], p["wo"], p["bo"], p["ln1_g"], p["ln1_b"],
      p["fc1_w"], p["fc1_b"], p["fc2_w"], p["fc2_b"], p["ln2_g"], p["ln2_b"])


# --------------------------------- full forward ---------------------------------
@jax.jit
def wav2vec2_forward(params, x):
    # TODO(synk): fairseq's stochastic time/channel masking and all dropouts are
    # omitted -- deterministic eval-mode feature extraction only.
    patches0 = _im2col_conv0(x).astype(ACT_DTYPE)            # (B, 63, 128)
    c0 = conv_block0(patches0, params)                       # (B, 63, C0)
    patches1 = _im2col_conv1(c0)                             # (B, 30, K1*C0)
    h = feat_proj_posconv_block(patches1, params)            # (B, 30, D)
    h_flat = h.reshape(BATCH * T_FRAMES, MODEL_DIM)
    lr_flat = encoder_stack(h_flat, params)                  # (B*T, D), last layer's fc2 out
    lr = lr_flat.reshape(BATCH, T_FRAMES, MODEL_DIM)
    # out['layer_results'][-1][-1] == last layer's fc2 output, (T, B, C)
    return jnp.transpose(lr, (1, 0, 2)).astype(jnp.float32)


# ---------------------------- parameter prep & init ------------------------------
def prepare_params(raw):
    """One-time re-layout of torch-style params into kernel-ready bf16 slabs."""
    dt = ACT_DTYPE
    d, f = MODEL_DIM, FFN_DIM
    # conv0: (Cout, 1, K) -> (K, Cout) -> zero-pad rows to (128, Cout)
    w0 = jnp.transpose(raw["conv0_w"], (2, 1, 0)).reshape(CONV0_K, CONV0_DIM)
    w0 = jnp.pad(w0, ((0, CONV0_KPAD - CONV0_K), (0, 0)))
    p = {
        "conv0_w2d": w0.astype(dt),
        "gn_g": raw["gn_g"].reshape(1, CONV0_DIM).astype(dt),
        "gn_b": raw["gn_b"].reshape(1, CONV0_DIM).astype(dt),
        # conv1: (Cout, Cin, K) -> (K*Cin, Cout), row k*Cin+c <- w[o, c, k]
        "conv1_w2d": jnp.transpose(raw["conv1_w"], (2, 1, 0))
                        .reshape(CONV1_K * CONV0_DIM, CONV1_DIM).astype(dt),
        "post_ln_g": raw["post_ln_g"].reshape(1, CONV1_DIM).astype(dt),
        "post_ln_b": raw["post_ln_b"].reshape(1, CONV1_DIM).astype(dt),
        "proj_w": raw["proj_w"].astype(dt),
        "proj_b": raw["proj_b"].reshape(1, d).astype(dt),
        "pos_b": raw["pos_b"].reshape(1, d).astype(dt),
        "enc_ln_g": raw["enc_ln_g"].reshape(1, d).astype(dt),
        "enc_ln_b": raw["enc_ln_b"].reshape(1, d).astype(dt),
    }
    # grouped pos-conv -> per-tap block-diagonal dense weight (K, D, D)
    # TODO(synk): fairseq's weight_norm reparameterisation of pos_conv is omitted.
    dg = d // POS_CONV_GROUPS
    wpos = jnp.zeros((POS_CONV_K, d, d), raw["pos_w"].dtype)
    for k in range(POS_CONV_K):
        for g in range(POS_CONV_GROUPS):
            blk = raw["pos_w"][g * dg:(g + 1) * dg, :, k].T               # (Cin_g, Cout_g)
            wpos = wpos.at[k, g * dg:(g + 1) * dg, g * dg:(g + 1) * dg].set(blk)
    p["pos_w3d"] = wpos.astype(dt)

    scale = HEAD_DIM ** -0.5                                              # folded into Wq/bq

    def stack(fn):
        return jnp.stack([fn(lp) for lp in raw["layers"]]).astype(dt)

    p["w_qkv"] = stack(lambda lp: jnp.concatenate([lp["wq"] * scale, lp["wk"], lp["wv"]], axis=1))
    p["b_qkv"] = stack(lambda lp: jnp.concatenate([lp["bq"] * scale, lp["bk"], lp["bv"]]).reshape(1, 3 * d))
    p["wo"] = stack(lambda lp: lp["wo"])
    p["bo"] = stack(lambda lp: lp["bo"].reshape(1, d))
    p["ln1_g"] = stack(lambda lp: lp["ln1_g"].reshape(1, d))
    p["ln1_b"] = stack(lambda lp: lp["ln1_b"].reshape(1, d))
    p["fc1_w"] = stack(lambda lp: lp["fc1_w"])
    p["fc1_b"] = stack(lambda lp: lp["fc1_b"].reshape(1, f))
    p["fc2_w"] = stack(lambda lp: lp["fc2_w"])
    p["fc2_b"] = stack(lambda lp: lp["fc2_b"].reshape(1, d))
    p["ln2_g"] = stack(lambda lp: lp["ln2_g"].reshape(1, d))
    p["ln2_b"] = stack(lambda lp: lp["ln2_b"].reshape(1, d))
    return p


def init_params(key):
    ks = iter(jax.random.split(key, 64))

    def w(shape, scale=0.05):
        return (scale * jax.random.normal(next(ks), shape)).astype(jnp.float32)

    def gain(shape):
        return (1.0 + 0.02 * jax.random.normal(next(ks), shape)).astype(jnp.float32)

    params = {
        "conv0_w": w((CONV0_DIM, 1, CONV0_K), 0.3),
        "gn_g": gain((CONV0_DIM,)), "gn_b": w((CONV0_DIM,)),
        "conv1_w": w((CONV1_DIM, CONV0_DIM, CONV1_K), 0.1),
        "post_ln_g": gain((CONV1_DIM,)), "post_ln_b": w((CONV1_DIM,)),
        "proj_w": w((CONV1_DIM, MODEL_DIM)), "proj_b": w((MODEL_DIM,)),
        "pos_w": w((MODEL_DIM, MODEL_DIM // POS_CONV_GROUPS, POS_CONV_K)),
        "pos_b": w((MODEL_DIM,)),
        "enc_ln_g": gain((MODEL_DIM,)), "enc_ln_b": w((MODEL_DIM,)),
        "layers": [],
    }
    for _ in range(NUM_LAYERS):
        params["layers"].append({
            "wq": w((MODEL_DIM, MODEL_DIM)), "bq": w((MODEL_DIM,)),
            "wk": w((MODEL_DIM, MODEL_DIM)), "bk": w((MODEL_DIM,)),
            "wv": w((MODEL_DIM, MODEL_DIM)), "bv": w((MODEL_DIM,)),
            "wo": w((MODEL_DIM, MODEL_DIM)), "bo": w((MODEL_DIM,)),
            "ln1_g": gain((MODEL_DIM,)), "ln1_b": w((MODEL_DIM,)),
            "fc1_w": w((MODEL_DIM, FFN_DIM)), "fc1_b": w((FFN_DIM,)),
            "fc2_w": w((FFN_DIM, MODEL_DIM)), "fc2_b": w((MODEL_DIM,)),
            "ln2_g": gain((MODEL_DIM,)), "ln2_b": w((MODEL_DIM,)),
        })
    return params


if __name__ == "__main__":
    key = jax.random.PRNGKey(0)
    pk, xk = jax.random.split(key)
    params = prepare_params(init_params(pk))
    x = jax.random.normal(xk, (BATCH, T_AUDIO), dtype=jnp.float32)

    out = wav2vec2_forward(params, x)
    jax.block_until_ready(out)

    assert out.shape == (T_FRAMES, BATCH, MODEL_DIM), out.shape
    assert bool(jnp.all(jnp.isfinite(out)))
    print("KERNEL_OK")
</pallas_src>

<mosaic_0001>
module attributes {stable_mosaic.version = 11 : i64} {
  func.func @_conv0_gn_gelu_kernel(%arg0: i32, %arg1: memref<1x63x128xbf16, #tpu.memory_space<vmem>>, %arg2: memref<128x128xbf16, #tpu.memory_space<vmem>>, %arg3: memref<1x128xbf16, #tpu.memory_space<vmem>>, %arg4: memref<1x128xbf16, #tpu.memory_space<vmem>>, %arg5: memref<1x63x128xbf16, #tpu.memory_space<vmem>>) attributes {dimension_semantics = [#tpu.dimension_semantics<parallel>], iteration_bounds = array<i64: 2>, scalar_prefetch = 0 : i64, scratch_operands = 0 : i64, tpu.core_type = #tpu.core_type<tc>, window_params = [{transform_indices = @transform_0, window_bounds = array<i64: 1, 63, 128>}, {pipeline_mode = #tpu.pipeline_mode<synchronous>, transform_indices = @transform_1, window_bounds = array<i64: 128, 128>}, {pipeline_mode = #tpu.pipeline_mode<synchronous>, transform_indices = @transform_2, window_bounds = array<i64: 1, 128>}, {pipeline_mode = #tpu.pipeline_mode<synchronous>, transform_indices = @transform_3, window_bounds = array<i64: 1, 128>}, {transform_indices = @transform_4, window_bounds = array<i64: 1, 63, 128>}]} {
    %c0 = arith.constant 0 : index
    %c0_0 = arith.constant 0 : index
    %c0_1 = arith.constant 0 : index
    %0 = vector.load %arg1[%c0, %c0_0, %c0_1] : memref<1x63x128xbf16, #tpu.memory_space<vmem>>, vector<1x63x128xbf16>
    %1 = vector.shape_cast %0 : vector<1x63x128xbf16> to vector<63x128xbf16>
    %c0_2 = arith.constant 0 : index
    %c0_3 = arith.constant 0 : index
    %2 = vector.load %arg2[%c0_2, %c0_3] : memref<128x128xbf16, #tpu.memory_space<vmem>>, vector<128x128xbf16>
    %cst = arith.constant dense<0.000000e+00> : vector<63x128xf32>
    %3 = tpu.matmul %1, %2, %cst {dimension_numbers = #tpu.dot_dimension_numbers<[1], [0], [0], [1], [0, 0, 1, 1], [], []>} : vector<63x128xbf16>, vector<128x128xbf16>, vector<63x128xf32> -> vector<63x128xf32>
    %cst_4 = arith.constant dense<0.000000e+00> : vector<128xf32>
    %4 = vector.multi_reduction <add>, %3, %cst_4 [0] : vector<63x128xf32> to vector<128xf32>
    %5 = vector.shape_cast %4 : vector<128xf32> to vector<1x128xf32>
    %cst_5 = arith.constant 6.300000e+01 : f32
    %6 = vector.broadcast %cst_5 : f32 to vector<1x128xf32>
    %7 = arith.divf %5, %6 : vector<1x128xf32>
    %8 = vector.broadcast %7 : vector<1x128xf32> to vector<63x128xf32>
    %9 = arith.subf %3, %8 : vector<63x128xf32>
    %10 = arith.mulf %9, %9 : vector<63x128xf32>
    %cst_6 = arith.constant dense<0.000000e+00> : vector<128xf32>
    %11 = vector.multi_reduction <add>, %10, %cst_6 [0] : vector<63x128xf32> to vector<128xf32>
    %12 = vector.shape_cast %11 : vector<128xf32> to vector<1x128xf32>
    %cst_7 = arith.constant 6.300000e+01 : f32
    %13 = vector.broadcast %cst_7 : f32 to vector<1x128xf32>
    %14 = arith.divf %12, %13 : vector<1x128xf32>
    %15 = vector.broadcast %7 : vector<1x128xf32> to vector<63x128xf32>
    %16 = arith.subf %3, %15 : vector<63x128xf32>
    %cst_8 = arith.constant 9.99999974E-6 : f32
    %17 = vector.broadcast %cst_8 : f32 to vector<1x128xf32>
    %18 = arith.addf %14, %17 : vector<1x128xf32>
    %19 = math.rsqrt %18 : vector<1x128xf32>
    %20 = vector.broadcast %19 : vector<1x128xf32> to vector<63x128xf32>
    %21 = arith.mulf %16, %20 : vector<63x128xf32>
    %c0_9 = arith.constant 0 : index
    %c0_10 = arith.constant 0 : index
    %22 = vector.load %arg3[%c0_9, %c0_10] : memref<1x128xbf16, #tpu.memory_space<vmem>>, vector<1x128xbf16>
    %23 = arith.extf %22 : vector<1x128xbf16> to vector<1x128xf32>
    %24 = vector.broadcast %23 : vector<1x128xf32> to vector<63x128xf32>
    %25 = arith.mulf %21, %24 : vector<63x128xf32>
    %c0_11 = arith.constant 0 : index
    %c0_12 = arith.constant 0 : index
    %26 = vector.load %arg4[%c0_11, %c0_12] : memref<1x128xbf16, #tpu.memory_space<vmem>>, vector<1x128xbf16>
    %27 = arith.extf %26 : vector<1x128xbf16> to vector<1x128xf32>
    %28 = vector.broadcast %27 : vector<1x128xf32> to vector<63x128xf32>
    %29 = arith.addf %25, %28 : vector<63x128xf32>
    %30 = arith.mulf %29, %29 : vector<63x128xf32>
    %31 = arith.mulf %29, %30 : vector<63x128xf32>
    %cst_13 = arith.constant 4.471500e-02 : f32
    %32 = vector.broadcast %cst_13 : f32 to vector<63x128xf32>
    %33 = arith.mulf %32, %31 : vector<63x128xf32>
    %34 = arith.addf %29, %33 : vector<63x128xf32>
    %cst_14 = arith.constant 0.797884583 : f32
    %35 = vector.broadcast %cst_14 : f32 to vector<63x128xf32>
    %36 = arith.mulf %35, %34 : vector<63x128xf32>
    %37 = math.tanh %36 : vector<63x128xf32>
    %cst_15 = arith.constant 1.000000e+00 : f32
    %38 = vector.broadcast %cst_15 : f32 to vector<63x128xf32>
    %39 = arith.addf %38, %37 : vector<63x128xf32>
    %cst_16 = arith.constant 5.000000e-01 : f32
    %40 = vector.broadcast %cst_16 : f32 to vector<63x128xf32>
    %41 = arith.mulf %40, %39 : vector<63x128xf32>
    %42 = arith.mulf %29, %41 : vector<63x128xf32>
    %43 = vector.shape_cast %42 : vector<63x128xf32> to vector<1x63x128xf32>
    %44 = arith.truncf %43 : vector<1x63x128xf32> to vector<1x63x128xbf16>
    %c0_17 = arith.constant 0 : index
    %c0_18 = arith.constant 0 : index
    %c0_19 = arith.constant 0 : index
    %45 = vector.load %arg5[%c0_17, %c0_18, %c0_19] : memref<1x63x128xbf16, #tpu.memory_space<vmem>>, vector<1x63x128xbf16>
    tpu.vector_store %arg5[%c0_17, %c0_18, %c0_19], %44 {strides = array<i32>} : memref<1x63x128xbf16, #tpu.memory_space<vmem>>, vector<1x63x128xbf16>,
    return
  }
  func.func @transform_0(%arg0: i32) -> (i32, i32, i32) {
    %c0_i32 = arith.constant 0 : i32
    %c0_i32_0 = arith.constant 0 : i32
    %c0_i32_1 = arith.constant 0 : i32
    return %arg0, %c0_i32, %c0_i32_0 : i32, i32, i32
  }
  func.func @transform_1(%arg0: i32) -> (i32, i32) {
    %c0_i32 = arith.constant 0 : i32
    %c0_i32_0 = arith.constant 0 : i32
    %c0_i32_1 = arith.constant 0 : i32
    return %c0_i32, %c0_i32_0 : i32, i32
  }
  func.func @transform_2(%arg0: i32) -> (i32, i32) {
    %c0_i32 = arith.constant 0 : i32
    %c0_i32_0 = arith.constant 0 : i32
    %c0_i32_1 = arith.constant 0 : i32
    return %c0_i32, %c0_i32_0 : i32, i32
  }
  func.func @transform_3(%arg0: i32) -> (i32, i32) {
    %c0_i32 = arith.constant 0 : i32
    %c0_i32_0 = arith.constant 0 : i32
    %c0_i32_1 = arith.constant 0 : i32
    return %c0_i32, %c0_i32_0 : i32, i32
  }
  func.func @transform_4(%arg0: i32) -> (i32, i32, i32) {
    %c0_i32 = arith.constant 0 : i32
    %c0_i32_0 = arith.constant 0 : i32
    %c0_i32_1 = arith.constant 0 : i32
    return %arg0, %c0_i32, %c0_i32_0 : i32, i32, i32
  }
}

module attributes {stable_mosaic.version = 11 : i64} {
  func.func @_conv1_proj_posconv_kernel(%arg0: i32, %arg1: memref<1x30x512xbf16, #tpu.memory_space<vmem>>, %arg2: memref<512x128xbf16, #tpu.memory_space<vmem>>, %arg3: memref<1x128xbf16, #tpu.memory_space<vmem>>, %arg4: memref<1x128xbf16, #tpu.memory_space<vmem>>, %arg5: memref<128x128xbf16, #tpu.memory_space<vmem>>, %arg6: memref<1x128xbf16, #tpu.memory_space<vmem>>, %arg7: memref<5x128x128xbf16, #tpu.memory_space<vmem>>, %arg8: memref<1x128xbf16, #tpu.memory_space<vmem>>, %arg9: memref<1x128xbf16, #tpu.memory_space<vmem>>, %arg10: memref<1x128xbf16, #tpu.memory_space<vmem>>, %arg11: memref<1x30x128xbf16, #tpu.memory_space<vmem>>) attributes {dimension_semantics = [#tpu.dimension_semantics<parallel>], iteration_bounds = array<i64: 2>, scalar_prefetch = 0 : i64, scratch_operands = 0 : i64, tpu.core_type = #tpu.core_type<tc>, window_params = [{transform_indices = @transform_0, window_bounds = array<i64: 1, 30, 512>}, {pipeline_mode = #tpu.pipeline_mode<synchronous>, transform_indices = @transform_1, window_bounds = array<i64: 512, 128>}, {pipeline_mode = #tpu.pipeline_mode<synchronous>, transform_indices = @transform_2, window_bounds = array<i64: 1, 128>}, {pipeline_mode = #tpu.pipeline_mode<synchronous>, transform_indices = @transform_3, window_bounds = array<i64: 1, 128>}, {pipeline_mode = #tpu.pipeline_mode<synchronous>, transform_indices = @transform_4, window_bounds = array<i64: 128, 128>}, {pipeline_mode = #tpu.pipeline_mode<synchronous>, transform_indices = @transform_5, window_bounds = array<i64: 1, 128>}, {pipeline_mode = #tpu.pipeline_mode<synchronous>, transform_indices = @transform_6, window_bounds = array<i64: 5, 128, 128>}, {pipeline_mode = #tpu.pipeline_mode<synchronous>, transform_indices = @transform_7, window_bounds = array<i64: 1, 128>}, {pipeline_mode = #tpu.pipeline_mode<synchronous>, transform_indices = @transform_8, window_bounds = array<i64: 1, 128>}, {pipeline_mode = #tpu.pipeline_mode<synchronous>, transform_indices = @transform_9, window_bounds = array<i64: 1, 128>}, {transform_indices = @transform_10, window_bounds = array<i64: 1, 30, 128>}]} {
    %c0 = arith.constant 0 : index
    %c0_0 = arith.constant 0 : index
    %c0_1 = arith.constant 0 : index
    %0 = vector.load %arg1[%c0, %c0_0, %c0_1] : memref<1x30x512xbf16, #tpu.memory_space<vmem>>, vector<1x30x512xbf16>
    %1 = vector.shape_cast %0 : vector<1x30x512xbf16> to vector<30x512xbf16>
    %c0_2 = arith.constant 0 : index
    %c0_3 = arith.constant 0 : index
    %2 = vector.load %arg2[%c0_2, %c0_3] : memref<512x128xbf16, #tpu.memory_space<vmem>>, vector<512x128xbf16>
    %cst = arith.constant dense<0.000000e+00> : vector<30x128xf32>
    %3 = tpu.matmul %1, %2, %cst {dimension_numbers = #tpu.dot_dimension_numbers<[1], [0], [0], [1], [0, 0, 1, 1], [], []>} : vector<30x512xbf16>, vector<512x128xbf16>, vector<30x128xf32> -> vector<30x128xf32>
    %4 = arith.mulf %3, %3 : vector<30x128xf32>
    %5 = arith.mulf %3, %4 : vector<30x128xf32>
    %cst_4 = arith.constant 4.471500e-02 : f32
    %6 = vector.broadcast %cst_4 : f32 to vector<30x128xf32>
    %7 = arith.mulf %6, %5 : vector<30x128xf32>
    %8 = arith.addf %3, %7 : vector<30x128xf32>
    %cst_5 = arith.constant 0.797884583 : f32
    %9 = vector.broadcast %cst_5 : f32 to vector<30x128xf32>
    %10 = arith.mulf %9, %8 : vector<30x128xf32>
    %11 = math.tanh %10 : vector<30x128xf32>
    %cst_6 = arith.constant 1.000000e+00 : f32
    %12 = vector.broadcast %cst_6 : f32 to vector<30x128xf32>
    %13 = arith.addf %12, %11 : vector<30x128xf32>
    %cst_7 = arith.constant 5.000000e-01 : f32
    %14 = vector.broadcast %cst_7 : f32 to vector<30x128xf32>
    %15 = arith.mulf %14, %13 : vector<30x128xf32>
    %16 = arith.mulf %3, %15 : vector<30x128xf32>
    %c0_8 = arith.constant 0 : index
    %c0_9 = arith.constant 0 : index
    %17 = vector.load %arg3[%c0_8, %c0_9] : memref<1x128xbf16, #tpu.memory_space<vmem>>, vector<1x128xbf16>
    %18 = arith.extf %17 : vector<1x128xbf16> to vector<1x128xf32>
    %c0_10 = arith.constant 0 : index
    %c0_11 = arith.constant 0 : index
    %19 = vector.load %arg4[%c0_10, %c0_11] : memref<1x128xbf16, #tpu.memory_space<vmem>>, vector<1x128xbf16>
    %20 = arith.extf %19 : vector<1x128xbf16> to vector<1x128xf32>
    %cst_12 = arith.constant dense<0.000000e+00> : vector<30xf32>
    %21 = vector.multi_reduction <add>, %16, %cst_12 [1] : vector<30x128xf32> to vector<30xf32>
    %22 = vector.shape_cast %21 : vector<30xf32> to vector<30x1xf32>
    %cst_13 = arith.constant 1.280000e+02 : f32
    %23 = vector.broadcast %cst_13 : f32 to vector<30x1xf32>
    %24 = arith.divf %22, %23 : vector<30x1xf32>
    %25 = vector.broadcast %24 : vector<30x1xf32> to vector<30x128xf32>
    %26 = arith.subf %16, %25 : vector<30x128xf32>
    %27 = arith.mulf %26, %26 : vector<30x128xf32>
    %cst_14 = arith.constant dense<0.000000e+00> : vector<30xf32>
    %28 = vector.multi_reduction <add>, %27, %cst_14 [1] : vector<30x128xf32> to vector<30xf32>
    %29 = vector.shape_cast %28 : vector<30xf32> to vector<30x1xf32>
    %cst_15 = arith.constant 1.280000e+02 : f32
    %30 = vector.broadcast %cst_15 : f32 to vector<30x1xf32>
    %31 = arith.divf %29, %30 : vector<30x1xf32>
    %32 = vector.broadcast %24 : vector<30x1xf32> to vector<30x128xf32>
    %33 = arith.subf %16, %32 : vector<30x128xf32>
    %cst_16 = arith.constant 9.99999974E-6 : f32
    %34 = vector.broadcast %cst_16 : f32 to vector<30x1xf32>
    %35 = arith.addf %31, %34 : vector<30x1xf32>
    %36 = math.rsqrt %35 : vector<30x1xf32>
    %37 = vector.broadcast %36 : vector<30x1xf32> to vector<30x128xf32>
    %38 = arith.mulf %33, %37 : vector<30x128xf32>
    %39 = vector.broadcast %18 : vector<1x128xf32> to vector<30x128xf32>
    %40 = arith.mulf %38, %39 : vector<30x128xf32>
    %41 = vector.broadcast %20 : vector<1x128xf32> to vector<30x128xf32>
    %42 = arith.addf %40, %41 : vector<30x128xf32>
    %43 = arith.truncf %42 : vector<30x128xf32> to vector<30x128xbf16>
    %c0_17 = arith.constant 0 : index
    %c0_18 = arith.constant 0 : index
    %44 = vector.load %arg5[%c0_17, %c0_18] : memref<128x128xbf16, #tpu.memory_space<vmem>>, vector<128x128xbf16>
    %cst_19 = arith.constant dense<0.000000e+00> : vector<30x128xf32>
    %45 = tpu.matmul %43, %44, %cst_19 {dimension_numbers = #tpu.dot_dimension_numbers<[1], [0], [0], [1], [0, 0, 1, 1], [], []>} : vector<30x128xbf16>, vector<128x128xbf16>, vector<30x128xf32> -> vector<30x128xf32>
    %c0_20 = arith.constant 0 : index
    %c0_21 = arith.constant 0 : index
    %46 = vector.load %arg6[%c0_20, %c0_21] : memref<1x128xbf16, #tpu.memory_space<vmem>>, vector<1x128xbf16>
    %47 = arith.extf %46 : vector<1x128xbf16> to vector<1x128xf32>
    %48 = vector.broadcast %47 : vector<1x128xf32> to vector<30x128xf32>
    %49 = arith.addf %45, %48 : vector<30x128xf32>
    %c0_22 = arith.constant 0 : index
    %c0_23 = arith.constant 0 : index
    %c0_24 = arith.constant 0 : index
    %50 = vector.load %arg7[%c0_22, %c0_23, %c0_24] : memref<5x128x128xbf16, #tpu.memory_space<vmem>>, vector<5x128x128xbf16>
    %51 = arith.extf %50 : vector<5x128x128xbf16> to vector<5x128x128xf32>
    %cst_25 = arith.constant 0.000000e+00 : f32
    %52 = vector.broadcast %cst_25 : f32 to vector<2x128xf32>
    %53 = tpu.concatenate %52, %49, %52 in 0 : vector<2x128xf32>, vector<30x128xf32>, vector<2x128xf32> -> vector<34x128xf32>
    %cst_26 = arith.constant 0.000000e+00 : f32
    %54 = vector.broadcast %cst_26 : f32 to vector<30x128xf32>
    %55 = vector.extract_strided_slice %53 {offsets = [0, 0], sizes = [30, 128], strides = [1, 1]} : vector<34x128xf32> to vector<30x128xf32>
    %56 = vector.extract_strided_slice %51 {offsets = [0, 0, 0], sizes = [1, 128, 128], strides = [1, 1, 1]} : vector<5x128x128xf32> to vector<1x128x128xf32>
    %57 = vector.shape_cast %56 : vector<1x128x128xf32> to vector<128x128xf32>
    %cst_27 = arith.constant dense<0.000000e+00> : vector<30x128xf32>
    %58 = tpu.matmul %55, %57, %cst_27 {dimension_numbers = #tpu.dot_dimension_numbers<[1], [0], [0], [1], [0, 0, 1, 1], [], []>} : vector<30x128xf32>, vector<128x128xf32>, vector<30x128xf32> -> vector<30x128xf32>
    %59 = arith.addf %54, %58 : vector<30x128xf32>
    %60 = vector.extract_strided_slice %53 {offsets = [1, 0], sizes = [30, 128], strides = [1, 1]} : vector<34x128xf32> to vector<30x128xf32>
    %61 = vector.extract_strided_slice %51 {offsets = [1, 0, 0], sizes = [1, 128, 128], strides = [1, 1, 1]} : vector<5x128x128xf32> to vector<1x128x128xf32>
    %62 = vector.shape_cast %61 : vector<1x128x128xf32> to vector<128x128xf32>
    %cst_28 = arith.constant dense<0.000000e+00> : vector<30x128xf32>
    %63 = tpu.matmul %60, %62, %cst_28 {dimension_numbers = #tpu.dot_dimension_numbers<[1], [0], [0], [1], [0, 0, 1, 1], [], []>} : vector<30x128xf32>, vector<128x128xf32>, vector<30x128xf32> -> vector<30x128xf32>
    %64 = arith.addf %59, %63 : vector<30x128xf32>
    %65 = vector.extract_strided_slice %53 {offsets = [2, 0], sizes = [30, 128], strides = [1, 1]} : vector<34x128xf32> to vector<30x128xf32>
    %66 = vector.extract_strided_slice %51 {offsets = [2, 0, 0], sizes = [1, 128, 128], strides = [1, 1, 1]} : vector<5x128x128xf32> to vector<1x128x128xf32>
    %67 = vector.shape_cast %66 : vector<1x128x128xf32> to vector<128x128xf32>
    %cst_29 = arith.constant dense<0.000000e+00> : vector<30x128xf32>
    %68 = tpu.matmul %65, %67, %cst_29 {dimension_numbers = #tpu.dot_dimension_numbers<[1], [0], [0], [1], [0, 0, 1, 1], [], []>} : vector<30x128xf32>, vector<128x128xf32>, vector<30x128xf32> -> vector<30x128xf32>
    %69 = arith.addf %64, %68 : vector<30x128xf32>
    %70 = vector.extract_strided_slice %53 {offsets = [3, 0], sizes = [30, 128], strides = [1, 1]} : vector<34x128xf32> to vector<30x128xf32>
    %71 = vector.extract_strided_slice %51 {offsets = [3, 0, 0], sizes = [1, 128, 128], strides = [1, 1, 1]} : vector<5x128x128xf32> to vector<1x128x128xf32>
    %72 = vector.shape_cast %71 : vector<1x128x128xf32> to vector<128x128xf32>
    %cst_30 = arith.constant dense<0.000000e+00> : vector<30x128xf32>
    %73 = tpu.matmul %70, %72, %cst_30 {dimension_numbers = #tpu.dot_dimension_numbers<[1], [0], [0], [1], [0, 0, 1, 1], [], []>} : vector<30x128xf32>, vector<128x128xf32>, vector<30x128xf32> -> vector<30x128xf32>
    %74 = arith.addf %69, %73 : vector<30x128xf32>
    %75 = vector.extract_strided_slice %53 {offsets = [4, 0], sizes = [30, 128], strides = [1, 1]} : vector<34x128xf32> to vector<30x128xf32>
    %76 = vector.extract_strided_slice %51 {offsets = [4, 0, 0], sizes = [1, 128, 128], strides = [1, 1, 1]} : vector<5x128x128xf32> to vector<1x128x128xf32>
    %77 = vector.shape_cast %76 : vector<1x128x128xf32> to vector<128x128xf32>
    %cst_31 = arith.constant dense<0.000000e+00> : vector<30x128xf32>
    %78 = tpu.matmul %75, %77, %cst_31 {dimension_numbers = #tpu.dot_dimension_numbers<[1], [0], [0], [1], [0, 0, 1, 1], [], []>} : vector<30x128xf32>, vector<128x128xf32>, vector<30x128xf32> -> vector<30x128xf32>
    %79 = arith.addf %74, %78 : vector<30x128xf32>
    %c0_32 = arith.constant 0 : index
    %c0_33 = arith.constant 0 : index
    %80 = vector.load %arg8[%c0_32, %c0_33] : memref<1x128xbf16, #tpu.memory_space<vmem>>, vector<1x128xbf16>
    %81 = arith.extf %80 : vector<1x128xbf16> to vector<1x128xf32>
    %82 = vector.broadcast %81 : vector<1x128xf32> to vector<30x128xf32>
    %83 = arith.addf %79, %82 : vector<30x128xf32>
    %84 = arith.mulf %83, %83 : vector<30x128xf32>
    %85 = arith.mulf %83, %84 : vector<30x128xf32>
    %cst_34 = arith.constant 4.471500e-02 : f32
    %86 = vector.broadcast %cst_34 : f32 to vector<30x128xf32>
    %87 = arith.mulf %86, %85 : vector<30x128xf32>
    %88 = arith.addf %83, %87 : vector<30x128xf32>
    %cst_35 = arith.constant 0.797884583 : f32
    %89 = vector.broadcast %cst_35 : f32 to vector<30x128xf32>
    %90 = arith.mulf %89, %88 : vector<30x128xf32>
    %91 = math.tanh %90 : vector<30x128xf32>
    %cst_36 = arith.constant 1.000000e+00 : f32
    %92 = vector.broadcast %cst_36 : f32 to vector<30x128xf32>
    %93 = arith.addf %92, %91 : vector<30x128xf32>
    %cst_37 = arith.constant 5.000000e-01 : f32
    %94 = vector.broadcast %cst_37 : f32 to vector<30x128xf32>
    %95 = arith.mulf %94, %93 : vector<30x128xf32>
    %96 = arith.mulf %83, %95 : vector<30x128xf32>
    %97 = arith.addf %49, %96 : vector<30x128xf32>
    %c0_38 = arith.constant 0 : index
    %c0_39 = arith.constant 0 : index
    %98 = vector.load %arg9[%c0_38, %c0_39] : memref<1x128xbf16, #tpu.memory_space<vmem>>, vector<1x128xbf16>
    %99 = arith.extf %98 : vector<1x128xbf16> to vector<1x128xf32>
    %c0_40 = arith.constant 0 : index
    %c0_41 = arith.constant 0 : index
    %100 = vector.load %arg10[%c0_40, %c0_41] : memref<1x128xbf16, #tpu.memory_space<vmem>>, vector<1x128xbf16>
    %101 = arith.extf %100 : vector<1x128xbf16> to vector<1x128xf32>
    %cst_42 = arith.constant dense<0.000000e+00> : vector<30xf32>
    %102 = vector.multi_reduction <add>, %97, %cst_42 [1] : vector<30x128xf32> to vector<30xf32>
    %103 = vector.shape_cast %102 : vector<30xf32> to vector<30x1xf32>
    %cst_43 = arith.constant 1.280000e+02 : f32
    %104 = vector.broadcast %cst_43 : f32 to vector<30x1xf32>
    %105 = arith.divf %103, %104 : vector<30x1xf32>
    %106 = vector.broadcast %105 : vector<30x1xf32> to vector<30x128xf32>
    %107 = arith.subf %97, %106 : vector<30x128xf32>
    %108 = arith.mulf %107, %107 : vector<30x128xf32>
    %cst_44 = arith.constant dense<0.000000e+00> : vector<30xf32>
    %109 = vector.multi_reduction <add>, %108, %cst_44 [1] : vector<30x128xf32> to vector<30xf32>
    %110 = vector.shape_cast %109 : vector<30xf32> to vector<30x1xf32>
    %cst_45 = arith.constant 1.280000e+02 : f32
    %111 = vector.broadcast %cst_45 : f32 to vector<30x1xf32>
    %112 = arith.divf %110, %111 : vector<30x1xf32>
    %113 = vector.broadcast %105 : vector<30x1xf32> to vector<30x128xf32>
    %114 = arith.subf %97, %113 : vector<30x128xf32>
    %cst_46 = arith.constant 9.99999974E-6 : f32
    %115 = vector.broadcast %cst_46 : f32 to vector<30x1xf32>
    %116 = arith.addf %112, %115 : vector<30x1xf32>
    %117 = math.rsqrt %116 : vector<30x1xf32>
    %118 = vector.broadcast %117 : vector<30x1xf32> to vector<30x128xf32>
    %119 = arith.mulf %114, %118 : vector<30x128xf32>
    %120 = vector.broadcast %99 : vector<1x128xf32> to vector<30x128xf32>
    %121 = arith.mulf %119, %120 : vector<30x128xf32>
    %122 = vector.broadcast %101 : vector<1x128xf32> to vector<30x128xf32>
    %123 = arith.addf %121, %122 : vector<30x128xf32>
    %124 = vector.shape_cast %123 : vector<30x128xf32> to vector<1x30x128xf32>
    %125 = arith.truncf %124 : vector<1x30x128xf32> to vector<1x30x128xbf16>
    %c0_47 = arith.constant 0 : index
    %c0_48 = arith.constant 0 : index
    %c0_49 = arith.constant 0 : index
    %126 = vector.load %arg11[%c0_47, %c0_48, %c0_49] : memref<1x30x128xbf16, #tpu.memory_space<vmem>>, vector<1x30x128xbf16>
    tpu.vector_store %arg11[%c0_47, %c0_48, %c0_49], %125 {strides = array<i32>} : memref<1x30x128xbf16, #tpu.memory_space<vmem>>, vector<1x30x128xbf16>,
    return
  }
  func.func @transform_0(%arg0: i32) -> (i32, i32, i32) {
    %c0_i32 = arith.constant 0 : i32
    %c0_i32_0 = arith.constant 0 : i32
    %c0_i32_1 = arith.constant 0 : i32
    return %arg0, %c0_i32, %c0_i32_0 : i32, i32, i32
  }
  func.func @transform_1(%arg0: i32) -> (i32, i32) {
    %c0_i32 = arith.constant 0 : i32
    %c0_i32_0 = arith.constant 0 : i32
    %c0_i32_1 = arith.constant 0 : i32
    return %c0_i32, %c0_i32_0 : i32, i32
  }
  func.func @transform_2(%arg0: i32) -> (i32, i32) {
    %c0_i32 = arith.constant 0 : i32
    %c0_i32_0 = arith.constant 0 : i32
    %c0_i32_1 = arith.constant 0 : i32
    return %c0_i32, %c0_i32_0 : i32, i32
  }
  func.func @transform_3(%arg0: i32) -> (i32, i32) {
    %c0_i32 = arith.constant 0 : i32
    %c0_i32_0 = arith.constant 0 : i32
    %c0_i32_1 = arith.constant 0 : i32
    return %c0_i32, %c0_i32_0 : i32, i32
  }
  func.func @transform_4(%arg0: i32) -> (i32, i32) {
    %c0_i32 = arith.constant 0 : i32
    %c0_i32_0 = arith.constant 0 : i32
    %c0_i32_1 = arith.constant 0 : i32
    return %c0_i32, %c0_i32_0 : i32, i32
  }
  func.func @transform_5(%arg0: i32) -> (i32, i32) {
    %c0_i32 = arith.constant 0 : i32
    %c0_i32_0 = arith.constant 0 : i32
    %c0_i32_1 = arith.constant 0 : i32
    return %c0_i32, %c0_i32_0 : i32, i32
  }
  func.func @transform_6(%arg0: i32) -> (i32, i32, i32) {
    %c0_i32 = arith.constant 0 : i32
    %c0_i32_0 = arith.constant 0 : i32
    %c0_i32_1 = arith.constant 0 : i32
    %c0_i32_2 = arith.constant 0 : i32
    return %c0_i32, %c0_i32_0, %c0_i32_1 : i32, i32, i32
  }
  func.func @transform_7(%arg0: i32) -> (i32, i32) {
    %c0_i32 = arith.constant 0 : i32
    %c0_i32_0 = arith.constant 0 : i32
    %c0_i32_1 = arith.constant 0 : i32
    return %c0_i32, %c0_i32_0 : i32, i32
  }
  func.func @transform_8(%arg0: i32) -> (i32, i32) {
    %c0_i32 = arith.constant 0 : i32
    %c0_i32_0 = arith.constant 0 : i32
    %c0_i32_1 = arith.constant 0 : i32
    return %c0_i32, %c0_i32_0 : i32, i32
  }
  func.func @transform_9(%arg0: i32) -> (i32, i32) {
    %c0_i32 = arith.constant 0 : i32
    %c0_i32_0 = arith.constant 0 : i32
    %c0_i32_1 = arith.constant 0 : i32
    return %c0_i32, %c0_i32_0 : i32, i32
  }
  func.func @transform_10(%arg0: i32) -> (i32, i32, i32) {
    %c0_i32 = arith.constant 0 : i32
    %c0_i32_0 = arith.constant 0 : i32
    %c0_i32_1 = arith.constant 0 : i32
    return %arg0, %c0_i32, %c0_i32_0 : i32, i32, i32
  }
}

module attributes {stable_mosaic.version = 11 : i64} {
  func.func @_encoder_stack_kernel(%arg0: i32, %arg1: memref<60x128xbf16, #tpu.memory_space<vmem>>, %arg2: memref<1x128x384xbf16, #tpu.memory_space<vmem>>, %arg3: memref<1x1x384xbf16, #tpu.memory_space<vmem>>, %arg4: memref<1x128x128xbf16, #tpu.memory_space<vmem>>, %arg5: memref<1x1x128xbf16, #tpu.memory_space<vmem>>, %arg6: memref<1x1x128xbf16, #tpu.memory_space<vmem>>, %arg7: memref<1x1x128xbf16, #tpu.memory_space<vmem>>, %arg8: memref<1x128x256xbf16, #tpu.memory_space<vmem>>, %arg9: memref<1x1x256xbf16, #tpu.memory_space<vmem>>, %arg10: memref<1x256x128xbf16, #tpu.memory_space<vmem>>, %arg11: memref<1x1x128xbf16, #tpu.memory_space<vmem>>, %arg12: memref<1x1x128xbf16, #tpu.memory_space<vmem>>, %arg13: memref<1x1x128xbf16, #tpu.memory_space<vmem>>, %arg14: memref<60x128xbf16, #tpu.memory_space<vmem>>, %arg15: memref<60x128xf32, #tpu.memory_space<vmem>>) attributes {dimension_semantics = [#tpu.dimension_semantics<arbitrary>], iteration_bounds = array<i64: 2>, scalar_prefetch = 0 : i64, scratch_operands = 1 : i64, tpu.core_type = #tpu.core_type<tc>, window_params = [{pipeline_mode = #tpu.pipeline_mode<synchronous>, transform_indices = @transform_0, window_bounds = array<i64: 60, 128>}, {transform_indices = @transform_1, window_bounds = array<i64: 1, 128, 384>}, {transform_indices = @transform_2, window_bounds = array<i64: 1, 1, 384>}, {transform_indices = @transform_3, window_bounds = array<i64: 1, 128, 128>}, {transform_indices = @transform_4, window_bounds = array<i64: 1, 1, 128>}, {transform_indices = @transform_5, window_bounds = array<i64: 1, 1, 128>}, {transform_indices = @transform_6, window_bounds = array<i64: 1, 1, 128>}, {transform_indices = @transform_7, window_bounds = array<i64: 1, 128, 256>}, {transform_indices = @transform_8, window_bounds = array<i64: 1, 1, 256>}, {transform_indices = @transform_9, window_bounds = array<i64: 1, 256, 128>}, {transform_indices = @transform_10, window_bounds = array<i64: 1, 1, 128>}, {transform_indices = @transform_11, window_bounds = array<i64: 1, 1, 128>}, {transform_indices = @transform_12, window_bounds = array<i64: 1, 1, 128>}, {pipeline_mode = #tpu.pipeline_mode<synchronous>, transform_indices = @transform_13, window_bounds = array<i64: 60, 128>}]} {
    %c0_i32 = arith.constant 0 : i32
    %0 = arith.cmpi eq, %arg0, %c0_i32 : i32
    %1 = arith.extui %0 : i1 to i32
    %c0_i32_0 = arith.constant 0 : i32
    %2 = arith.cmpi ne, %1, %c0_i32_0 : i32
    scf.if %2 {
      %c0_90 = arith.constant 0 : index
      %c0_91 = arith.constant 0 : index
      %239 = vector.load %arg1[%c0_90, %c0_91] : memref<60x128xbf16, #tpu.memory_space<vmem>>, vector<60x128xbf16>
      %240 = arith.extf %239 : vector<60x128xbf16> to vector<60x128xf32>
      %c0_92 = arith.constant 0 : index
      %c0_93 = arith.constant 0 : index
      %241 = vector.load %arg15[%c0_92, %c0_93] : memref<60x128xf32, #tpu.memory_space<vmem>>, vector<60x128xf32>
      tpu.vector_store %arg15[%c0_92, %c0_93], %240 {strides = array<i32>} : memref<60x128xf32, #tpu.memory_space<vmem>>, vector<60x128xf32>,
    } else {
    }
    %c0 = arith.constant 0 : index
    %c0_1 = arith.constant 0 : index
    %3 = vector.load %arg15[%c0, %c0_1] : memref<60x128xf32, #tpu.memory_space<vmem>>, vector<60x128xf32>
    %c0_2 = arith.constant 0 : index
    %c0_3 = arith.constant 0 : index
    %c0_4 = arith.constant 0 : index
    %4 = vector.load %arg2[%c0_2, %c0_3, %c0_4] : memref<1x128x384xbf16, #tpu.memory_space<vmem>>, vector<1x128x384xbf16>
    %5 = vector.shape_cast %4 : vector<1x128x384xbf16> to vector<128x384xbf16>
    %6 = arith.truncf %3 : vector<60x128xf32> to vector<60x128xbf16>
    %cst = arith.constant dense<0.000000e+00> : vector<60x384xf32>
    %7 = tpu.matmul %6, %5, %cst {dimension_numbers = #tpu.dot_dimension_numbers<[1], [0], [0], [1], [0, 0, 1, 1], [], []>} : vector<60x128xbf16>, vector<128x384xbf16>, vector<60x384xf32> -> vector<60x384xf32>
    %c0_5 = arith.constant 0 : index
    %c0_6 = arith.constant 0 : index
    %c0_7 = arith.constant 0 : index
    %8 = vector.load %arg3[%c0_5, %c0_6, %c0_7] : memref<1x1x384xbf16, #tpu.memory_space<vmem>>, vector<1x1x384xbf16>
    %9 = vector.shape_cast %8 : vector<1x1x384xbf16> to vector<1x384xbf16>
    %10 = arith.extf %9 : vector<1x384xbf16> to vector<1x384xf32>
    %11 = vector.broadcast %10 : vector<1x384xf32> to vector<60x384xf32>
    %12 = arith.addf %7, %11 : vector<60x384xf32>
    %13 = vector.extract_strided_slice %12 {offsets = [0, 0], sizes = [60, 128], strides = [1, 1]} : vector<60x384xf32> to vector<60x128xf32>
    %14 = vector.extract_strided_slice %12 {offsets = [0, 128], sizes = [60, 128], strides = [1, 1]} : vector<60x384xf32> to vector<60x128xf32>
    %15 = vector.extract_strided_slice %12 {offsets = [0, 256], sizes = [60, 128], strides = [1, 1]} : vector<60x384xf32> to vector<60x128xf32>
    %16 = vector.extract_strided_slice %13 {offsets = [0, 0], sizes = [30, 128], strides = [1, 1]} : vector<60x128xf32> to vector<30x128xf32>
    %17 = vector.extract_strided_slice %14 {offsets = [0, 0], sizes = [30, 128], strides = [1, 1]} : vector<60x128xf32> to vector<30x128xf32>
    %18 = vector.extract_strided_slice %15 {offsets = [0, 0], sizes = [30, 128], strides = [1, 1]} : vector<60x128xf32> to vector<30x128xf32>
    %19 = vector.extract_strided_slice %16 {offsets = [0, 0], sizes = [30, 32], strides = [1, 1]} : vector<30x128xf32> to vector<30x32xf32>
    %20 = vector.extract_strided_slice %17 {offsets = [0, 0], sizes = [30, 32], strides = [1, 1]} : vector<30x128xf32> to vector<30x32xf32>
    %cst_8 = arith.constant dense<0.000000e+00> : vector<30x30xf32>
    %21 = tpu.matmul %19, %20, %cst_8 {dimension_numbers = #tpu.dot_dimension_numbers<[1], [1], [0], [0], [0, 0, 1, 0], [], []>} : vector<30x32xf32>, vector<30x32xf32>, vector<30x30xf32> -> vector<30x30xf32>
    %cst_9 = arith.constant dense<0xFF800000> : vector<30xf32>
    %22 = vector.multi_reduction <maximumf>, %21, %cst_9 [1] : vector<30x30xf32> to vector<30xf32>
    %23 = vector.shape_cast %22 : vector<30xf32> to vector<30x1xf32>
    %24 = vector.broadcast %23 : vector<30x1xf32> to vector<30x30xf32>
    %25 = arith.subf %21, %24 : vector<30x30xf32>
    %26 = math.exp %25 : vector<30x30xf32>
    %cst_10 = arith.constant dense<0.000000e+00> : vector<30xf32>
    %27 = vector.multi_reduction <add>, %26, %cst_10 [1] : vector<30x30xf32> to vector<30xf32>
    %28 = vector.shape_cast %27 : vector<30xf32> to vector<30x1xf32>
    %29 = vector.broadcast %28 : vector<30x1xf32> to vector<30x30xf32>
    %30 = arith.divf %26, %29 : vector<30x30xf32>
    %31 = vector.extract_strided_slice %18 {offsets = [0, 0], sizes = [30, 32], strides = [1, 1]} : vector<30x128xf32> to vector<30x32xf32>
    %cst_11 = arith.constant dense<0.000000e+00> : vector<30x32xf32>
    %32 = tpu.matmul %30, %31, %cst_11 {dimension_numbers = #tpu.dot_dimension_numbers<[1], [0], [0], [1], [0, 0, 1, 1], [], []>} : vector<30x30xf32>, vector<30x32xf32>, vector<30x32xf32> -> vector<30x32xf32>
    %33 = vector.extract_strided_slice %16 {offsets = [0, 32], sizes = [30, 32], strides = [1, 1]} : vector<30x128xf32> to vector<30x32xf32>
    %34 = vector.extract_strided_slice %17 {offsets = [0, 32], sizes = [30, 32], strides = [1, 1]} : vector<30x128xf32> to vector<30x32xf32>
    %cst_12 = arith.constant dense<0.000000e+00> : vector<30x30xf32>
    %35 = tpu.matmul %33, %34, %cst_12 {dimension_numbers = #tpu.dot_dimension_numbers<[1], [1], [0], [0], [0, 0, 1, 0], [], []>} : vector<30x32xf32>, vector<30x32xf32>, vector<30x30xf32> -> vector<30x30xf32>
    %cst_13 = arith.constant dense<0xFF800000> : vector<30xf32>
    %36 = vector.multi_reduction <maximumf>, %35, %cst_13 [1] : vector<30x30xf32> to vector<30xf32>
    %37 = vector.shape_cast %36 : vector<30xf32> to vector<30x1xf32>
    %38 = vector.broadcast %37 : vector<30x1xf32> to vector<30x30xf32>
    %39 = arith.subf %35, %38 : vector<30x30xf32>
    %40 = math.exp %39 : vector<30x30xf32>
    %cst_14 = arith.constant dense<0.000000e+00> : vector<30xf32>
    %41 = vector.multi_reduction <add>, %40, %cst_14 [1] : vector<30x30xf32> to vector<30xf32>
    %42 = vector.shape_cast %41 : vector<30xf32> to vector<30x1xf32>
    %43 = vector.broadcast %42 : vector<30x1xf32> to vector<30x30xf32>
    %44 = arith.divf %40, %43 : vector<30x30xf32>
    %45 = vector.extract_strided_slice %18 {offsets = [0, 32], sizes = [30, 32], strides = [1, 1]} : vector<30x128xf32> to vector<30x32xf32>
    %cst_15 = arith.constant dense<0.000000e+00> : vector<30x32xf32>
    %46 = tpu.matmul %44, %45, %cst_15 {dimension_numbers = #tpu.dot_dimension_numbers<[1], [0], [0], [1], [0, 0, 1, 1], [], []>} : vector<30x30xf32>, vector<30x32xf32>, vector<30x32xf32> -> vector<30x32xf32>
    %47 = vector.extract_strided_slice %16 {offsets = [0, 64], sizes = [30, 32], strides = [1, 1]} : vector<30x128xf32> to vector<30x32xf32>
    %48 = vector.extract_strided_slice %17 {offsets = [0, 64], sizes = [30, 32], strides = [1, 1]} : vector<30x128xf32> to vector<30x32xf32>
    %cst_16 = arith.constant dense<0.000000e+00> : vector<30x30xf32>
    %49 = tpu.matmul %47, %48, %cst_16 {dimension_numbers = #tpu.dot_dimension_numbers<[1], [1], [0], [0], [0, 0, 1, 0], [], []>} : vector<30x32xf32>, vector<30x32xf32>, vector<30x30xf32> -> vector<30x30xf32>
    %cst_17 = arith.constant dense<0xFF800000> : vector<30xf32>
    %50 = vector.multi_reduction <maximumf>, %49, %cst_17 [1] : vector<30x30xf32> to vector<30xf32>
    %51 = vector.shape_cast %50 : vector<30xf32> to vector<30x1xf32>
    %52 = vector.broadcast %51 : vector<30x1xf32> to vector<30x30xf32>
    %53 = arith.subf %49, %52 : vector<30x30xf32>
    %54 = math.exp %53 : vector<30x30xf32>
    %cst_18 = arith.constant dense<0.000000e+00> : vector<30xf32>
    %55 = vector.multi_reduction <add>, %54, %cst_18 [1] : vector<30x30xf32> to vector<30xf32>
    %56 = vector.shape_cast %55 : vector<30xf32> to vector<30x1xf32>
    %57 = vector.broadcast %56 : vector<30x1xf32> to vector<30x30xf32>
    %58 = arith.divf %54, %57 : vector<30x30xf32>
    %59 = vector.extract_strided_slice %18 {offsets = [0, 64], sizes = [30, 32], strides = [1, 1]} : vector<30x128xf32> to vector<30x32xf32>
    %cst_19 = arith.constant dense<0.000000e+00> : vector<30x32xf32>
    %60 = tpu.matmul %58, %59, %cst_19 {dimension_numbers = #tpu.dot_dimension_numbers<[1], [0], [0], [1], [0, 0, 1, 1], [], []>} : vector<30x30xf32>, vector<30x32xf32>, vector<30x32xf32> -> vector<30x32xf32>
    %61 = vector.extract_strided_slice %16 {offsets = [0, 96], sizes = [30, 32], strides = [1, 1]} : vector<30x128xf32> to vector<30x32xf32>
    %62 = vector.extract_strided_slice %17 {offsets = [0, 96], sizes = [30, 32], strides = [1, 1]} : vector<30x128xf32> to vector<30x32xf32>
    %cst_20 = arith.constant dense<0.000000e+00> : vector<30x30xf32>
    %63 = tpu.matmul %61, %62, %cst_20 {dimension_numbers = #tpu.dot_dimension_numbers<[1], [1], [0], [0], [0, 0, 1, 0], [], []>} : vector<30x32xf32>, vector<30x32xf32>, vector<30x30xf32> -> vector<30x30xf32>
    %cst_21 = arith.constant dense<0xFF800000> : vector<30xf32>
    %64 = vector.multi_reduction <maximumf>, %63, %cst_21 [1] : vector<30x30xf32> to vector<30xf32>
    %65 = vector.shape_cast %64 : vector<30xf32> to vector<30x1xf32>
    %66 = vector.broadcast %65 : vector<30x1xf32> to vector<30x30xf32>
    %67 = arith.subf %63, %66 : vector<30x30xf32>
    %68 = math.exp %67 : vector<30x30xf32>
    %cst_22 = arith.constant dense<0.000000e+00> : vector<30xf32>
    %69 = vector.multi_reduction <add>, %68, %cst_22 [1] : vector<30x30xf32> to vector<30xf32>
    %70 = vector.shape_cast %69 : vector<30xf32> to vector<30x1xf32>
    %71 = vector.broadcast %70 : vector<30x1xf32> to vector<30x30xf32>
    %72 = arith.divf %68, %71 : vector<30x30xf32>
    %73 = vector.extract_strided_slice %18 {offsets = [0, 96], sizes = [30, 32], strides = [1, 1]} : vector<30x128xf32> to vector<30x32xf32>
    %cst_23 = arith.constant dense<0.000000e+00> : vector<30x32xf32>
    %74 = tpu.matmul %72, %73, %cst_23 {dimension_numbers = #tpu.dot_dimension_numbers<[1], [0], [0], [1], [0, 0, 1, 1], [], []>} : vector<30x30xf32>, vector<30x32xf32>, vector<30x32xf32> -> vector<30x32xf32>
    %75 = tpu.concatenate %32, %46, %60, %74 in 1 : vector<30x32xf32>, vector<30x32xf32>, vector<30x32xf32>, vector<30x32xf32> -> vector<30x128xf32>
    %76 = vector.extract_strided_slice %13 {offsets = [30, 0], sizes = [30, 128], strides = [1, 1]} : vector<60x128xf32> to vector<30x128xf32>
    %77 = vector.extract_strided_slice %14 {offsets = [30, 0], sizes = [30, 128], strides = [1, 1]} : vector<60x128xf32> to vector<30x128xf32>
    %78 = vector.extract_strided_slice %15 {offsets = [30, 0], sizes = [30, 128], strides = [1, 1]} : vector<60x128xf32> to vector<30x128xf32>
    %79 = vector.extract_strided_slice %76 {offsets = [0, 0], sizes = [30, 32], strides = [1, 1]} : vector<30x128xf32> to vector<30x32xf32>
    %80 = vector.extract_strided_slice %77 {offsets = [0, 0], sizes = [30, 32], strides = [1, 1]} : vector<30x128xf32> to vector<30x32xf32>
    %cst_24 = arith.constant dense<0.000000e+00> : vector<30x30xf32>
    %81 = tpu.matmul %79, %80, %cst_24 {dimension_numbers = #tpu.dot_dimension_numbers<[1], [1], [0], [0], [0, 0, 1, 0], [], []>} : vector<30x32xf32>, vector<30x32xf32>, vector<30x30xf32> -> vector<30x30xf32>
    %cst_25 = arith.constant dense<0xFF800000> : vector<30xf32>
    %82 = vector.multi_reduction <maximumf>, %81, %cst_25 [1] : vector<30x30xf32> to vector<30xf32>
    %83 = vector.shape_cast %82 : vector<30xf32> to vector<30x1xf32>
    %84 = vector.broadcast %83 : vector<30x1xf32> to vector<30x30xf32>
    %85 = arith.subf %81, %84 : vector<30x30xf32>
    %86 = math.exp %85 : vector<30x30xf32>
    %cst_26 = arith.constant dense<0.000000e+00> : vector<30xf32>
    %87 = vector.multi_reduction <add>, %86, %cst_26 [1] : vector<30x30xf32> to vector<30xf32>
    %88 = vector.shape_cast %87 : vector<30xf32> to vector<30x1xf32>
    %89 = vector.broadcast %88 : vector<30x1xf32> to vector<30x30xf32>
    %90 = arith.divf %86, %89 : vector<30x30xf32>
    %91 = vector.extract_strided_slice %78 {offsets = [0, 0], sizes = [30, 32], strides = [1, 1]} : vector<30x128xf32> to vector<30x32xf32>
    %cst_27 = arith.constant dense<0.000000e+00> : vector<30x32xf32>
    %92 = tpu.matmul %90, %91, %cst_27 {dimension_numbers = #tpu.dot_dimension_numbers<[1], [0], [0], [1], [0, 0, 1, 1], [], []>} : vector<30x30xf32>, vector<30x32xf32>, vector<30x32xf32> -> vector<30x32xf32>
    %93 = vector.extract_strided_slice %76 {offsets = [0, 32], sizes = [30, 32], strides = [1, 1]} : vector<30x128xf32> to vector<30x32xf32>
    %94 = vector.extract_strided_slice %77 {offsets = [0, 32], sizes = [30, 32], strides = [1, 1]} : vector<30x128xf32> to vector<30x32xf32>
    %cst_28 = arith.constant dense<0.000000e+00> : vector<30x30xf32>
    %95 = tpu.matmul %93, %94, %cst_28 {dimension_numbers = #tpu.dot_dimension_numbers<[1], [1], [0], [0], [0, 0, 1, 0], [], []>} : vector<30x32xf32>, vector<30x32xf32>, vector<30x30xf32> -> vector<30x30xf32>
    %cst_29 = arith.constant dense<0xFF800000> : vector<30xf32>
    %96 = vector.multi_reduction <maximumf>, %95, %cst_29 [1] : vector<30x30xf32> to vector<30xf32>
    %97 = vector.shape_cast %96 : vector<30xf32> to vector<30x1xf32>
    %98 = vector.broadcast %97 : vector<30x1xf32> to vector<30x30xf32>
    %99 = arith.subf %95, %98 : vector<30x30xf32>
    %100 = math.exp %99 : vector<30x30xf32>
    %cst_30 = arith.constant dense<0.000000e+00> : vector<30xf32>
    %101 = vector.multi_reduction <add>, %100, %cst_30 [1] : vector<30x30xf32> to vector<30xf32>
    %102 = vector.shape_cast %101 : vector<30xf32> to vector<30x1xf32>
    %103 = vector.broadcast %102 : vector<30x1xf32> to vector<30x30xf32>
    %104 = arith.divf %100, %103 : vector<30x30xf32>
    %105 = vector.extract_strided_slice %78 {offsets = [0, 32], sizes = [30, 32], strides = [1, 1]} : vector<30x128xf32> to vector<30x32xf32>
    %cst_31 = arith.constant dense<0.000000e+00> : vector<30x32xf32>
    %106 = tpu.matmul %104, %105, %cst_31 {dimension_numbers = #tpu.dot_dimension_numbers<[1], [0], [0], [1], [0, 0, 1, 1], [], []>} : vector<30x30xf32>, vector<30x32xf32>, vector<30x32xf32> -> vector<30x32xf32>
    %107 = vector.extract_strided_slice %76 {offsets = [0, 64], sizes = [30, 32], strides = [1, 1]} : vector<30x128xf32> to vector<30x32xf32>
    %108 = vector.extract_strided_slice %77 {offsets = [0, 64], sizes = [30, 32], strides = [1, 1]} : vector<30x128xf32> to vector<30x32xf32>
    %cst_32 = arith.constant dense<0.000000e+00> : vector<30x30xf32>
    %109 = tpu.matmul %107, %108, %cst_32 {dimension_numbers = #tpu.dot_dimension_numbers<[1], [1], [0], [0], [0, 0, 1, 0], [], []>} : vector<30x32xf32>, vector<30x32xf32>, vector<30x30xf32> -> vector<30x30xf32>
    %cst_33 = arith.constant dense<0xFF800000> : vector<30xf32>
    %110 = vector.multi_reduction <maximumf>, %109, %cst_33 [1] : vector<30x30xf32> to vector<30xf32>
    %111 = vector.shape_cast %110 : vector<30xf32> to vector<30x1xf32>
    %112 = vector.broadcast %111 : vector<30x1xf32> to vector<30x30xf32>
    %113 = arith.subf %109, %112 : vector<30x30xf32>
    %114 = math.exp %113 : vector<30x30xf32>
    %cst_34 = arith.constant dense<0.000000e+00> : vector<30xf32>
    %115 = vector.multi_reduction <add>, %114, %cst_34 [1] : vector<30x30xf32> to vector<30xf32>
    %116 = vector.shape_cast %115 : vector<30xf32> to vector<30x1xf32>
    %117 = vector.broadcast %116 : vector<30x1xf32> to vector<30x30xf32>
    %118 = arith.divf %114, %117 : vector<30x30xf32>
    %119 = vector.extract_strided_slice %78 {offsets = [0, 64], sizes = [30, 32], strides = [1, 1]} : vector<30x128xf32> to vector<30x32xf32>
    %cst_35 = arith.constant dense<0.000000e+00> : vector<30x32xf32>
    %120 = tpu.matmul %118, %119, %cst_35 {dimension_numbers = #tpu.dot_dimension_numbers<[1], [0], [0], [1], [0, 0, 1, 1], [], []>} : vector<30x30xf32>, vector<30x32xf32>, vector<30x32xf32> -> vector<30x32xf32>
    %121 = vector.extract_strided_slice %76 {offsets = [0, 96], sizes = [30, 32], strides = [1, 1]} : vector<30x128xf32> to vector<30x32xf32>
    %122 = vector.extract_strided_slice %77 {offsets = [0, 96], sizes = [30, 32], strides = [1, 1]} : vector<30x128xf32> to vector<30x32xf32>
    %cst_36 = arith.constant dense<0.000000e+00> : vector<30x30xf32>
    %123 = tpu.matmul %121, %122, %cst_36 {dimension_numbers = #tpu.dot_dimension_numbers<[1], [1], [0], [0], [0, 0, 1, 0], [], []>} : vector<30x32xf32>, vector<30x32xf32>, vector<30x30xf32> -> vector<30x30xf32>
    %cst_37 = arith.constant dense<0xFF800000> : vector<30xf32>
    %124 = vector.multi_reduction <maximumf>, %123, %cst_37 [1] : vector<30x30xf32> to vector<30xf32>
    %125 = vector.shape_cast %124 : vector<30xf32> to vector<30x1xf32>
    %126 = vector.broadcast %125 : vector<30x1xf32> to vector<30x30xf32>
    %127 = arith.subf %123, %126 : vector<30x30xf32>
    %128 = math.exp %127 : vector<30x30xf32>
    %cst_38 = arith.constant dense<0.000000e+00> : vector<30xf32>
    %129 = vector.multi_reduction <add>, %128, %cst_38 [1] : vector<30x30xf32> to vector<30xf32>
    %130 = vector.shape_cast %129 : vector<30xf32> to vector<30x1xf32>
    %131 = vector.broadcast %130 : vector<30x1xf32> to vector<30x30xf32>
    %132 = arith.divf %128, %131 : vector<30x30xf32>
    %133 = vector.extract_strided_slice %78 {offsets = [0, 96], sizes = [30, 32], strides = [1, 1]} : vector<30x128xf32> to vector<30x32xf32>
    %cst_39 = arith.constant dense<0.000000e+00> : vector<30x32xf32>
    %134 = tpu.matmul %132, %133, %cst_39 {dimension_numbers = #tpu.dot_dimension_numbers<[1], [0], [0], [1], [0, 0, 1, 1], [], []>} : vector<30x30xf32>, vector<30x32xf32>, vector<30x32xf32> -> vector<30x32xf32>
    %135 = tpu.concatenate %92, %106, %120, %134 in 1 : vector<30x32xf32>, vector<30x32xf32>, vector<30x32xf32>, vector<30x32xf32> -> vector<30x128xf32>
    %136 = tpu.concatenate %75, %135 in 0 : vector<30x128xf32>, vector<30x128xf32> -> vector<60x128xf32>
    %c0_40 = arith.constant 0 : index
    %c0_41 = arith.constant 0 : index
    %c0_42 = arith.constant 0 : index
    %137 = vector.load %arg4[%c0_40, %c0_41, %c0_42] : memref<1x128x128xbf16, #tpu.memory_space<vmem>>, vector<1x128x128xbf16>
    %138 = vector.shape_cast %137 : vector<1x128x128xbf16> to vector<128x128xbf16>
    %139 = arith.truncf %136 : vector<60x128xf32> to vector<60x128xbf16>
    %cst_43 = arith.constant dense<0.000000e+00> : vector<60x128xf32>
    %140 = tpu.matmul %139, %138, %cst_43 {dimension_numbers = #tpu.dot_dimension_numbers<[1], [0], [0], [1], [0, 0, 1, 1], [], []>} : vector<60x128xbf16>, vector<128x128xbf16>, vector<60x128xf32> -> vector<60x128xf32>
    %c0_44 = arith.constant 0 : index
    %c0_45 = arith.constant 0 : index
    %c0_46 = arith.constant 0 : index
    %141 = vector.load %arg5[%c0_44, %c0_45, %c0_46] : memref<1x1x128xbf16, #tpu.memory_space<vmem>>, vector<1x1x128xbf16>
    %142 = vector.shape_cast %141 : vector<1x1x128xbf16> to vector<1x128xbf16>
    %143 = arith.extf %142 : vector<1x128xbf16> to vector<1x128xf32>
    %144 = vector.broadcast %143 : vector<1x128xf32> to vector<60x128xf32>
    %145 = arith.addf %140, %144 : vector<60x128xf32>
    %146 = arith.addf %145, %3 : vector<60x128xf32>
    %c0_47 = arith.constant 0 : index
    %c0_48 = arith.constant 0 : index
    %c0_49 = arith.constant 0 : index
    %147 = vector.load %arg6[%c0_47, %c0_48, %c0_49] : memref<1x1x128xbf16, #tpu.memory_space<vmem>>, vector<1x1x128xbf16>
    %148 = vector.shape_cast %147 : vector<1x1x128xbf16> to vector<1x128xbf16>
    %149 = arith.extf %148 : vector<1x128xbf16> to vector<1x128xf32>
    %c0_50 = arith.constant 0 : index
    %c0_51 = arith.constant 0 : index
    %c0_52 = arith.constant 0 : index
    %150 = vector.load %arg7[%c0_50, %c0_51, %c0_52] : memref<1x1x128xbf16, #tpu.memory_space<vmem>>, vector<1x1x128xbf16>
    %151 = vector.shape_cast %150 : vector<1x1x128xbf16> to vector<1x128xbf16>
    %152 = arith.extf %151 : vector<1x128xbf16> to vector<1x128xf32>
    %cst_53 = arith.constant dense<0.000000e+00> : vector<60xf32>
    %153 = vector.multi_reduction <add>, %146, %cst_53 [1] : vector<60x128xf32> to vector<60xf32>
    %154 = vector.shape_cast %153 : vector<60xf32> to vector<60x1xf32>
    %cst_54 = arith.constant 1.280000e+02 : f32
    %155 = vector.broadcast %cst_54 : f32 to vector<60x1xf32>
    %156 = arith.divf %154, %155 : vector<60x1xf32>
    %157 = vector.broadcast %156 : vector<60x1xf32> to vector<60x128xf32>
    %158 = arith.subf %146, %157 : vector<60x128xf32>
    %159 = arith.mulf %158, %158 : vector<60x128xf32>
    %cst_55 = arith.constant dense<0.000000e+00> : vector<60xf32>
    %160 = vector.multi_reduction <add>, %159, %cst_55 [1] : vector<60x128xf32> to vector<60xf32>
    %161 = vector.shape_cast %160 : vector<60xf32> to vector<60x1xf32>
    %cst_56 = arith.constant 1.280000e+02 : f32
    %162 = vector.broadcast %cst_56 : f32 to vector<60x1xf32>
    %163 = arith.divf %161, %162 : vector<60x1xf32>
    %164 = vector.broadcast %156 : vector<60x1xf32> to vector<60x128xf32>
    %165 = arith.subf %146, %164 : vector<60x128xf32>
    %cst_57 = arith.constant 9.99999974E-6 : f32
    %166 = vector.broadcast %cst_57 : f32 to vector<60x1xf32>
    %167 = arith.addf %163, %166 : vector<60x1xf32>
    %168 = math.rsqrt %167 : vector<60x1xf32>
    %169 = vector.broadcast %168 : vector<60x1xf32> to vector<60x128xf32>
    %170 = arith.mulf %165, %169 : vector<60x128xf32>
    %171 = vector.broadcast %149 : vector<1x128xf32> to vector<60x128xf32>
    %172 = arith.mulf %170, %171 : vector<60x128xf32>
    %173 = vector.broadcast %152 : vector<1x128xf32> to vector<60x128xf32>
    %174 = arith.addf %172, %173 : vector<60x128xf32>
    %c0_58 = arith.constant 0 : index
    %c0_59 = arith.constant 0 : index
    %c0_60 = arith.constant 0 : index
    %175 = vector.load %arg8[%c0_58, %c0_59, %c0_60] : memref<1x128x256xbf16, #tpu.memory_space<vmem>>, vector<1x128x256xbf16>
    %176 = vector.shape_cast %175 : vector<1x128x256xbf16> to vector<128x256xbf16>
    %177 = arith.truncf %174 : vector<60x128xf32> to vector<60x128xbf16>
    %cst_61 = arith.constant dense<0.000000e+00> : vector<60x256xf32>
    %178 = tpu.matmul %177, %176, %cst_61 {dimension_numbers = #tpu.dot_dimension_numbers<[1], [0], [0], [1], [0, 0, 1, 1], [], []>} : vector<60x128xbf16>, vector<128x256xbf16>, vector<60x256xf32> -> vector<60x256xf32>
    %c0_62 = arith.constant 0 : index
    %c0_63 = arith.constant 0 : index
    %c0_64 = arith.constant 0 : index
    %179 = vector.load %arg9[%c0_62, %c0_63, %c0_64] : memref<1x1x256xbf16, #tpu.memory_space<vmem>>, vector<1x1x256xbf16>
    %180 = vector.shape_cast %179 : vector<1x1x256xbf16> to vector<1x256xbf16>
    %181 = arith.extf %180 : vector<1x256xbf16> to vector<1x256xf32>
    %182 = vector.broadcast %181 : vector<1x256xf32> to vector<60x256xf32>
    %183 = arith.addf %178, %182 : vector<60x256xf32>
    %184 = arith.mulf %183, %183 : vector<60x256xf32>
    %185 = arith.mulf %183, %184 : vector<60x256xf32>
    %cst_65 = arith.constant 4.471500e-02 : f32
    %186 = vector.broadcast %cst_65 : f32 to vector<60x256xf32>
    %187 = arith.mulf %186, %185 : vector<60x256xf32>
    %188 = arith.addf %183, %187 : vector<60x256xf32>
    %cst_66 = arith.constant 0.797884583 : f32
    %189 = vector.broadcast %cst_66 : f32 to vector<60x256xf32>
    %190 = arith.mulf %189, %188 : vector<60x256xf32>
    %191 = math.tanh %190 : vector<60x256xf32>
    %cst_67 = arith.constant 1.000000e+00 : f32
    %192 = vector.broadcast %cst_67 : f32 to vector<60x256xf32>
    %193 = arith.addf %192, %191 : vector<60x256xf32>
    %cst_68 = arith.constant 5.000000e-01 : f32
    %194 = vector.broadcast %cst_68 : f32 to vector<60x256xf32>
    %195 = arith.mulf %194, %193 : vector<60x256xf32>
    %196 = arith.mulf %183, %195 : vector<60x256xf32>
    %c0_69 = arith.constant 0 : index
    %c0_70 = arith.constant 0 : index
    %c0_71 = arith.constant 0 : index
    %197 = vector.load %arg10[%c0_69, %c0_70, %c0_71] : memref<1x256x128xbf16, #tpu.memory_space<vmem>>, vector<1x256x128xbf16>
    %198 = vector.shape_cast %197 : vector<1x256x128xbf16> to vector<256x128xbf16>
    %199 = arith.truncf %196 : vector<60x256xf32> to vector<60x256xbf16>
    %cst_72 = arith.constant dense<0.000000e+00> : vector<60x128xf32>
    %200 = tpu.matmul %199, %198, %cst_72 {dimension_numbers = #tpu.dot_dimension_numbers<[1], [0], [0], [1], [0, 0, 1, 1], [], []>} : vector<60x256xbf16>, vector<256x128xbf16>, vector<60x128xf32> -> vector<60x128xf32>
    %c0_73 = arith.constant 0 : index
    %c0_74 = arith.constant 0 : index
    %c0_75 = arith.constant 0 : index
    %201 = vector.load %arg11[%c0_73, %c0_74, %c0_75] : memref<1x1x128xbf16, #tpu.memory_space<vmem>>, vector<1x1x128xbf16>
    %202 = vector.shape_cast %201 : vector<1x1x128xbf16> to vector<1x128xbf16>
    %203 = arith.extf %202 : vector<1x128xbf16> to vector<1x128xf32>
    %204 = vector.broadcast %203 : vector<1x128xf32> to vector<60x128xf32>
    %205 = arith.addf %200, %204 : vector<60x128xf32>
    %206 = arith.addf %205, %174 : vector<60x128xf32>
    %c0_76 = arith.constant 0 : index
    %c0_77 = arith.constant 0 : index
    %c0_78 = arith.constant 0 : index
    %207 = vector.load %arg12[%c0_76, %c0_77, %c0_78] : memref<1x1x128xbf16, #tpu.memory_space<vmem>>, vector<1x1x128xbf16>
    %208 = vector.shape_cast %207 : vector<1x1x128xbf16> to vector<1x128xbf16>
    %209 = arith.extf %208 : vector<1x128xbf16> to vector<1x128xf32>
    %c0_79 = arith.constant 0 : index
    %c0_80 = arith.constant 0 : index
    %c0_81 = arith.constant 0 : index
    %210 = vector.load %arg13[%c0_79, %c0_80, %c0_81] : memref<1x1x128xbf16, #tpu.memory_space<vmem>>, vector<1x1x128xbf16>
    %211 = vector.shape_cast %210 : vector<1x1x128xbf16> to vector<1x128xbf16>
    %212 = arith.extf %211 : vector<1x128xbf16> to vector<1x128xf32>
    %cst_82 = arith.constant dense<0.000000e+00> : vector<60xf32>
    %213 = vector.multi_reduction <add>, %206, %cst_82 [1] : vector<60x128xf32> to vector<60xf32>
    %214 = vector.shape_cast %213 : vector<60xf32> to vector<60x1xf32>
    %cst_83 = arith.constant 1.280000e+02 : f32
    %215 = vector.broadcast %cst_83 : f32 to vector<60x1xf32>
    %216 = arith.divf %214, %215 : vector<60x1xf32>
    %217 = vector.broadcast %216 : vector<60x1xf32> to vector<60x128xf32>
    %218 = arith.subf %206, %217 : vector<60x128xf32>
    %219 = arith.mulf %218, %218 : vector<60x128xf32>
    %cst_84 = arith.constant dense<0.000000e+00> : vector<60xf32>
    %220 = vector.multi_reduction <add>, %219, %cst_84 [1] : vector<60x128xf32> to vector<60xf32>
    %221 = vector.shape_cast %220 : vector<60xf32> to vector<60x1xf32>
    %cst_85 = arith.constant 1.280000e+02 : f32
    %222 = vector.broadcast %cst_85 : f32 to vector<60x1xf32>
    %223 = arith.divf %221, %222 : vector<60x1xf32>
    %224 = vector.broadcast %216 : vector<60x1xf32> to vector<60x128xf32>
    %225 = arith.subf %206, %224 : vector<60x128xf32>
    %cst_86 = arith.constant 9.99999974E-6 : f32
    %226 = vector.broadcast %cst_86 : f32 to vector<60x1xf32>
    %227 = arith.addf %223, %226 : vector<60x1xf32>
    %228 = math.rsqrt %227 : vector<60x1xf32>
    %229 = vector.broadcast %228 : vector<60x1xf32> to vector<60x128xf32>
    %230 = arith.mulf %225, %229 : vector<60x128xf32>
    %231 = vector.broadcast %209 : vector<1x128xf32> to vector<60x128xf32>
    %232 = arith.mulf %230, %231 : vector<60x128xf32>
    %233 = vector.broadcast %212 : vector<1x128xf32> to vector<60x128xf32>
    %234 = arith.addf %232, %233 : vector<60x128xf32>
    %c0_87 = arith.constant 0 : index
    %c0_88 = arith.constant 0 : index
    %235 = vector.load %arg15[%c0_87, %c0_88] : memref<60x128xf32, #tpu.memory_space<vmem>>, vector<60x128xf32>
    tpu.vector_store %arg15[%c0_87, %c0_88], %234 {strides = array<i32>} : memref<60x128xf32, #tpu.memory_space<vmem>>, vector<60x128xf32>,
    %c1_i32 = arith.constant 1 : i32
    %236 = arith.cmpi eq, %arg0, %c1_i32 : i32
    %237 = arith.extui %236 : i1 to i32
    %c0_i32_89 = arith.constant 0 : i32
    %238 = arith.cmpi ne, %237, %c0_i32_89 : i32
    scf.if %238 {
      %239 = arith.truncf %205 : vector<60x128xf32> to vector<60x128xbf16>
      %c0_90 = arith.constant 0 : index
      %c0_91 = arith.constant 0 : index
      %240 = vector.load %arg14[%c0_90, %c0_91] : memref<60x128xbf16, #tpu.memory_space<vmem>>, vector<60x128xbf16>
      tpu.vector_store %arg14[%c0_90, %c0_91], %239 {strides = array<i32>} : memref<60x128xbf16, #tpu.memory_space<vmem>>, vector<60x128xbf16>,
    } else {
    }
    return
  }
  func.func @transform_0(%arg0: i32) -> (i32, i32) {
    %c0_i32 = arith.constant 0 : i32
    %c0_i32_0 = arith.constant 0 : i32
    %c0_i32_1 = arith.constant 0 : i32
    return %c0_i32, %c0_i32_0 : i32, i32
  }
  func.func @transform_1(%arg0: i32) -> (i32, i32, i32) {
    %c0_i32 = arith.constant 0 : i32
    %c0_i32_0 = arith.constant 0 : i32
    %c0_i32_1 = arith.constant 0 : i32
    return %arg0, %c0_i32, %c0_i32_0 : i32, i32, i32
  }
  func.func @transform_2(%arg0: i32) -> (i32, i32, i32) {
    %c0_i32 = arith.constant 0 : i32
    %c0_i32_0 = arith.constant 0 : i32
    %c0_i32_1 = arith.constant 0 : i32
    return %arg0, %c0_i32, %c0_i32_0 : i32, i32, i32
  }
  func.func @transform_3(%arg0: i32) -> (i32, i32, i32) {
    %c0_i32 = arith.constant 0 : i32
    %c0_i32_0 = arith.constant 0 : i32
    %c0_i32_1 = arith.constant 0 : i32
    return %arg0, %c0_i32, %c0_i32_0 : i32, i32, i32
  }
  func.func @transform_4(%arg0: i32) -> (i32, i32, i32) {
    %c0_i32 = arith.constant 0 : i32
    %c0_i32_0 = arith.constant 0 : i32
    %c0_i32_1 = arith.constant 0 : i32
    return %arg0, %c0_i32, %c0_i32_0 : i32, i32, i32
  }
  func.func @transform_5(%arg0: i32) -> (i32, i32, i32) {
    %c0_i32 = arith.constant 0 : i32
    %c0_i32_0 = arith.constant 0 : i32
    %c0_i32_1 = arith.constant 0 : i32
    return %arg0, %c0_i32, %c0_i32_0 : i32, i32, i32
  }
  func.func @transform_6(%arg0: i32) -> (i32, i32, i32) {
    %c0_i32 = arith.constant 0 : i32
    %c0_i32_0 = arith.constant 0 : i32
    %c0_i32_1 = arith.constant 0 : i32
    return %arg0, %c0_i32, %c0_i32_0 : i32, i32, i32
  }
  func.func @transform_7(%arg0: i32) -> (i32, i32, i32) {
    %c0_i32 = arith.constant 0 : i32
    %c0_i32_0 = arith.constant 0 : i32
    %c0_i32_1 = arith.constant 0 : i32
    return %arg0, %c0_i32, %c0_i32_0 : i32, i32, i32
  }
  func.func @transform_8(%arg0: i32) -> (i32, i32, i32) {
    %c0_i32 = arith.constant 0 : i32
    %c0_i32_0 = arith.constant 0 : i32
    %c0_i32_1 = arith.constant 0 : i32
    return %arg0, %c0_i32, %c0_i32_0 : i32, i32, i32
  }
  func.func @transform_9(%arg0: i32) -> (i32, i32, i32) {
    %c0_i32 = arith.constant 0 : i32
    %c0_i32_0 = arith.constant 0 : i32
    %c0_i32_1 = arith.constant 0 : i32
    return %arg0, %c0_i32, %c0_i32_0 : i32, i32, i32
  }
  func.func @transform_10(%arg0: i32) -> (i32, i32, i32) {
    %c0_i32 = arith.constant 0 : i32
    %c0_i32_0 = arith.constant 0 : i32
    %c0_i32_1 = arith.constant 0 : i32
    return %arg0, %c0_i32, %c0_i32_0 : i32, i32, i32
  }
  func.func @transform_11(%arg0: i32) -> (i32, i32, i32) {
    %c0_i32 = arith.constant 0 : i32
    %c0_i32_0 = arith.constant 0 : i32
    %c0_i32_1 = arith.constant 0 : i32
    return %arg0, %c0_i32, %c0_i32_0 : i32, i32, i32
  }
  func.func @transform_12(%arg0: i32) -> (i32, i32, i32) {
    %c0_i32 = arith.constant 0 : i32
    %c0_i32_0 = arith.constant 0 : i32
    %c0_i32_1 = arith.constant 0 : i32
    return %arg0, %c0_i32, %c0_i32_0 : i32, i32, i32
  }
  func.func @transform_13(%arg0: i32) -> (i32, i32) {
    %c0_i32 = arith.constant 0 : i32
    %c0_i32_0 = arith.constant 0 : i32
    %c0_i32_1 = arith.constant 0 : i32
    return %c0_i32, %c0_i32_0 : i32, i32
  }
}

</mosaic_0001>

<bundles_post_ra>
// kernel: wav2vec2_forward.3
= control target key start
LH: loop header
LB: loop body
LE: loop exit
PB: predicated region body
PF: predicated region fallthrough
CT: control target
= control target key end

     0   :  { %s799_s15 = smov 0   ;;  %s917_s0 = inlined_call_operand.vmem [shape: bf16[2,63,128], index: 0, kind: input, shape index: {}]   ;;  %s918_s1 = inlined_call_operand.vmem [shape: bf16[128,128], index: 1, kind: input, shape index: {}]   ;;  %s919_s2 = inlined_call_operand.vmem [shape: bf16[1,128], index: 2, kind: input, shape index: {}]   ;;  %s920_s3 = inlined_call_operand.vmem [shape: bf16[1,128], index: 3, kind: input, shape index: {}]   ;;  %s921_s4 = inlined_call_operand.vmem [shape: bf16[2,63,128], index: 4, kind: output, shape index: {}]  }
   0x1 LB: > { %s618_s16 = sadd.s32 4294967295, %s772_s15   ;;  %p622_p0 = scmp.ge.s32.totalorder %s772_s15, 1  ;;  %s772_s15 = sphi %s799_s15, %s14_s15  }
   0x2   : > { %p162_p1 = scmp.lt.s32.totalorder %s772_s15, 3 }
   0x4   : > { %p163_p2 = pnand %p622_p0, %p162_p1 }
   0x5   : > { %v736_v0 = vld [vmem:[%s918_s1] sm:$0xff] (!%p163_p2)   ;;  %p188_p3 = scmp.lt.s32.totalorder (!%p163_p2), %s618_s16, 1  ;;  %v737_v1 = vld [vmem:[%s918_s1 + $0x8] sm:$0xff] (!%p163_p2)   ;;  %v738_v2 = vld [vmem:[%s918_s1 + $0x10] sm:$0xff] (!%p163_p2)   ;;  %vm366_vm0 = vcmask (!%p163_p2), 1046528   ;;  %vm557_vm1 = vcmask (!%p163_p2), 1043456  }
   0x6   : > { %166 = sbr.rel (%p163_p2) target bundleno = 370 (0x172), region = 36  ;;  %688 = vmatprep.subr.bf16.mxu0 (!%p163_p2), %v736_v0  ;;  %712 = vmatprep.subr.bf16.mxu1 (!%p163_p2), %v736_v0  ;;  %v739_v3 = vld [vmem:[%s918_s1 + $0x18] sm:$0xff] (!%p163_p2)   ;;  %v740_v6 = vld [vmem:[%s918_s1 + $0x20] sm:$0xff] (!%p163_p2)   ;;  %v741_v7 = vld [vmem:[%s918_s1 + $0x28] sm:$0xff] (!%p163_p2)   ;;  %vm558_vm2 = vsmask.f32 (!%p163_p2), 3328 }
   0x7   : > { %689 = vmatpush3.bf16.msra.mxu0 (!%p163_p2), %v736_v0  ;;  %720 = vmatpush3.bf16.msra.mxu1 (!%p163_p2), %v736_v0  ;;  %v742_v8 = vld [vmem:[%s918_s1 + $0x30] sm:$0xff] (!%p163_p2)   ;;  %v743_v9 = vld [vmem:[%s918_s1 + $0x38] sm:$0xff] (!%p163_p2)   ;;  %vm559_vm3 = vmand (!%p163_p2), %vm557_vm1, %vm558_vm2 }
   0x8   : > { %690 = vmatprep.subr.bf16.mxu0 (!%p163_p2), %v737_v1  ;;  %713 = vmatprep.subr.bf16.mxu1 (!%p163_p2), %v737_v1 }
   0xb   : > { %691 = vmatpush3.bf16.msra.mxu0 (!%p163_p2), %v737_v1  ;;  %721 = vmatpush3.bf16.msra.mxu1 (!%p163_p2), %v737_v1 }
   0xc   : > { %692 = vmatprep.subr.bf16.mxu0 (!%p163_p2), %v738_v2  ;;  %714 = vmatprep.subr.bf16.mxu1 (!%p163_p2), %v738_v2 }
   0xd   : > { %s923_s16 = smov (!%p188_p3, %s618_s16), 1 }
   0xe   : > { %s649_s23 = sshll.u32 %s923_s16, 5 }
   0xf   : > { %s824_s26 = scalar_lea.vmem %s917_s0, %s649_s23  ;;  %693 = vmatpush3.bf16.msra.mxu0 %v738_v2  ;;  %722 = vmatpush3.bf16.msra.mxu1 %v738_v2  ;;  %v420_v2 = vlaneseq  ;;  %s197_s19 = scalar_lea.vmem %s921_s4, %s649_s23 }
  0x10   : > { %v744_v4 = vld [vmem:[%s824_s26] sm:$0xff]   ;;  %v746_v5 = vld [vmem:[%s824_s26 + $0x10] sm:$0xff]   ;;  %694 = vmatprep.subr.bf16.mxu0 %v739_v3  ;;  %715 = vmatprep.subr.bf16.mxu1 %v739_v3  ;;  %v745_v10 = vld [vmem:[%s824_s26 + $0x8] sm:$0xff]  }
  0x11   : > { %704 = vmatprep.mubr.bf16.mxu0 %v744_v4  ;;  %708 = vmatprep.mubr.bf16.mxu1 %v746_v5  ;;  %v747_v11 = vld [vmem:[%s824_s26 + $0x18] sm:$0xff]   ;;  %v421_v4 = vshrl.u32 %v420_v2, 7  ;;  %v418_v5 = vld [vmem:[%s919_s2] sm:$0x1] }
  0x13   : > { %695 = vmatpush3.bf16.msra.mxu0 %v739_v3  ;;  %723 = vmatpush3.bf16.msra.mxu1 %v739_v3 }
  0x14   : > { %696 = vmatprep.subr.bf16.mxu0 %v740_v6  ;;  %716 = vmatprep.subr.bf16.mxu1 %v740_v6 }
  0x17   : > { %697 = vmatpush3.bf16.msra.mxu0 %v740_v6  ;;  %724 = vmatpush3.bf16.msra.mxu1 %v740_v6  ;;  %v432_v6 = vld [vmem:[%s920_s3] sm:$0x1] }
  0x18   : > { %698 = vmatprep.subr.bf16.mxu0 %v741_v7  ;;  %717 = vmatprep.subr.bf16.mxu1 %v741_v7 }
  0x1b   : > { %699 = vmatpush3.bf16.msra.mxu0 %v741_v7  ;;  %725 = vmatpush3.bf16.msra.mxu1 %v741_v7  ;;  %v419_v7 = vunpack.c.l.bf16 %v418_v5 }
  0x1c   : > { %700 = vmatprep.subr.bf16.mxu0 %v742_v8  ;;  %718 = vmatprep.subr.bf16.mxu1 %v742_v8 }
  0x1f   : > { %701 = vmatpush3.bf16.msra.mxu0 %v742_v8  ;;  %726 = vmatpush3.bf16.msra.mxu1 %v742_v8  ;;  %v422_v8 = vsub.s32 0, %v421_v4 }
  0x20   : > { %702 = vmatprep.subr.bf16.mxu0 %v743_v9  ;;  %719 = vmatprep.subr.bf16.mxu1 %v743_v9 }
  0x23   : > { %703 = vmatpush3.bf16.msra.mxu0 %v743_v9  ;;  %727 = vmatpush3.bf16.msra.mxu1 %v743_v9  ;;  %v433_v9 = vunpack.c.l.bf16 %v432_v6 }
  0x26   : > { %705 = vmatmul.mubr.bf16.vlgmr.msra.gmra.mrb[0].mxu0 %v745_v10  ;;  %709 = vmatmul.mubr.bf16.vlgmr.msra.gmra.mrb[0].mxu1 %v747_v11  ;;  %v423_v10 = vrot.slane %v419_v7, %v422_v8 }
  0xf9   : > { %v706_v12 = vpop.f32.mrb[0].mxu0  ;;  %v710_v13 = vpop.f32.mrb[0].mxu1 }
  0xfa   : > { %v329_v14 = vpop.f32.mrb[1].mxu0  ;;  %v345_v15 = vpop.f32.mrb[1].mxu1 }
  0xfb   : > { %v707_v16 = vpop.f32.mrb[2].mxu0  ;;  %v711_v17 = vpop.f32.mrb[2].mxu1 }
  0xfc   : > { %v332_v18 = vpop.f32.mrb[3].mxu0  ;;  %v348_v19 = vpop.f32.mrb[3].mxu1  ;;  %v367_v26 = vsel %vm366_vm0, %v711_v17, 0.0 }
  0xfd   : > { %v360_v20 = vadd.f32 %v332_v18, %v329_v14 }
  0xff   : > { %v361_v21 = vadd.f32 %v706_v12, %v360_v20 }
 0x101   : > { %v362_v22 = vadd.f32 %v707_v16, %v361_v21 }
 0x103   : > { %v363_v23 = vadd.f32 %v362_v22, %v345_v15 }
 0x105   : > { %v364_v24 = vadd.f32 %v363_v23, %v348_v19 }
 0x107   : > { %v365_v25 = vadd.f32 %v710_v13, %v364_v24 }
 0x109   : > { %v368_v27 = vadd.f32 %v367_v26, %v365_v25 }
 0x10b   : > { %v369_v28 = vrot.slane %v368_v27, 4 }
 0x10d   : > { %v370_v29 = vadd.f32 %v369_v28, %v368_v27 }
 0x10f   : > { %v371_v30 = vrot.slane %v370_v29, 2 }
 0x111   : > { %v372_v31 = vadd.f32 %v371_v30, %v370_v29 }
 0x113   : > { %v373_v32 = vrot.slane %v372_v31, 1 }
 0x115   : > { %v374_v33 = vadd.f32 %v373_v32, %v372_v31 }
 0x117   : > { %v376_v34 = vmul.f32 0.015873017, %v374_v33 }
 0x119   : > { %v377_v35 = vsub.f32 %v329_v14, %v376_v34  ;;  %v378_v36 = vsub.f32 %v332_v18, %v376_v34  ;;  %v379_v37 = vsub.f32 %v706_v12, %v376_v34  ;;  %v380_v38 = vsub.f32 %v707_v16, %v376_v34 }
 0x11a   : > { %v381_v39 = vsub.f32 %v345_v15, %v376_v34  ;;  %v382_v40 = vsub.f32 %v348_v19, %v376_v34  ;;  %v383_v41 = vsub.f32 %v710_v13, %v376_v34  ;;  %v384_v42 = vsub.f32 %v711_v17, %v376_v34 }
 0x11b   : > { %v385_v43 = vmul.f32 %v377_v35, %v377_v35  ;;  %v386_v44 = vmul.f32 %v378_v36, %v378_v36  ;;  %v387_v45 = vmul.f32 %v379_v37, %v379_v37  ;;  %v388_v47 = vmul.f32 %v380_v38, %v380_v38 }
 0x11c   : > { %v389_v49 = vmul.f32 %v381_v39, %v381_v39  ;;  %v390_v51 = vmul.f32 %v382_v40, %v382_v40  ;;  %v392_v53 = vmul.f32 %v384_v42, %v384_v42  ;;  %v391_v54 = vmul.f32 %v383_v41, %v383_v41 }
 0x11d   : > { %v393_v46 = vadd.f32 %v386_v44, %v385_v43  ;;  %v437_v12 = vrot.slane %v433_v9, %v422_v8 }
 0x11e   : > { %v399_v57 = vsel %vm366_vm0, %v392_v53, 0.0 }
 0x11f   : > { %v394_v48 = vadd.f32 %v393_v46, %v387_v45 }
 0x121   : > { %v395_v50 = vadd.f32 %v394_v48, %v388_v47 }
 0x123   : > { %v396_v52 = vadd.f32 %v395_v50, %v389_v49 }
 0x125   : > { %v397_v55 = vadd.f32 %v396_v52, %v390_v51 }
 0x127   : > { %v398_v56 = vadd.f32 %v397_v55, %v391_v54 }
 0x129   : > { %v400_v58 = vadd.f32 %v399_v57, %v398_v56 }
 0x12b   : > { %v401_v59 = vrot.slane %v400_v58, 4 }
 0x12d   : > { %v402_v60 = vadd.f32 %v401_v59, %v400_v58 }
 0x12f   : > { %v403_v61 = vrot.slane %v402_v60, 2 }
 0x131   : > { %v404_v62 = vadd.f32 %v403_v61, %v402_v60 }
 0x133   : > { %v405_v63 = vrot.slane %v404_v62, 1 }
 0x135   : > { %v406_v0 = vadd.f32 %v405_v63, %v404_v62 }
 0x137   : > { %v407_v1 = vmul.f32 0.015873017, %v406_v0 }
 0x139   : > { %v408_v3 = vadd.f32 1e-05, %v407_v1 }
 0x13b   : > { %748 = vrsqrt.f32 %v408_v3 }
 0x145   : > { %v749_v11 = vpop.eup %748 }
 0x146   : > { %v410_v13 = vmul.f32 %v749_v11, %v377_v35  ;;  %v411_v14 = vmul.f32 %v749_v11, %v378_v36  ;;  %v412_v15 = vmul.f32 %v749_v11, %v379_v37  ;;  %v413_v16 = vmul.f32 %v749_v11, %v380_v38 }
 0x147   : > { %v414_v17 = vmul.f32 %v749_v11, %v381_v39  ;;  %v415_v18 = vmul.f32 %v749_v11, %v382_v40  ;;  %v416_v19 = vmul.f32 %v749_v11, %v383_v41  ;;  %v417_v20 = vmul.f32 %v749_v11, %v384_v42 }
 0x148   : > { %v424_v21 = vmul.f32 %v423_v10, %v410_v13  ;;  %v425_v22 = vmul.f32 %v423_v10, %v411_v14  ;;  %v426_v23 = vmul.f32 %v423_v10, %v412_v15  ;;  %v427_v24 = vmul.f32 %v423_v10, %v413_v16 }
 0x149   : > { %v428_v25 = vmul.f32 %v423_v10, %v414_v17  ;;  %v429_v26 = vmul.f32 %v423_v10, %v415_v18  ;;  %v430_v27 = vmul.f32 %v423_v10, %v416_v19  ;;  %v431_v28 = vmul.f32 %v423_v10, %v417_v20 }
 0x14a   : > { %v853_v29 = vadd.f32 %v437_v12, %v424_v21  ;;  %v855_v30 = vadd.f32 %v437_v12, %v425_v22  ;;  %v857_v31 = vadd.f32 %v437_v12, %v426_v23  ;;  %v859_v32 = vadd.f32 %v437_v12, %v427_v24 }
 0x14b   : > { %v861_v33 = vadd.f32 %v437_v12, %v428_v25  ;;  %v863_v34 = vadd.f32 %v437_v12, %v429_v26  ;;  %v865_v35 = vadd.f32 %v437_v12, %v430_v27  ;;  %v867_v36 = vadd.f32 %v437_v12, %v431_v28 }
 0x14c   : > { %v446_v37 = vmul.f32 %v853_v29, %v853_v29  ;;  %v447_v38 = vmul.f32 %v855_v30, %v855_v30  ;;  %v448_v39 = vmul.f32 %v857_v31, %v857_v31  ;;  %v449_v40 = vmul.f32 %v859_v32, %v859_v32 }
 0x14d   : > { %v450_v41 = vmul.f32 %v861_v33, %v861_v33  ;;  %v451_v42 = vmul.f32 %v863_v34, %v863_v34  ;;  %v452_v43 = vmul.f32 %v865_v35, %v865_v35  ;;  %v453_v44 = vmul.f32 %v867_v36, %v867_v36 }
 0x14e   : > { %v454_v45 = vmul.f32 %v446_v37, %v853_v29  ;;  %v455_v46 = vmul.f32 %v447_v38, %v855_v30  ;;  %v456_v47 = vmul.f32 %v448_v39, %v857_v31  ;;  %v457_v48 = vmul.f32 %v449_v40, %v859_v32 }
 0x14f   : > { %v458_v49 = vmul.f32 %v450_v41, %v861_v33  ;;  %v459_v50 = vmul.f32 %v451_v42, %v863_v34  ;;  %v460_v51 = vmul.f32 %v452_v43, %v865_v35  ;;  %v461_v52 = vmul.f32 %v453_v44, %v867_v36 }
 0x150   : > { %v462_v53 = vmul.f32 0.044715, %v454_v45  ;;  %v463_v54 = vmul.f32 0.044715, %v455_v46  ;;  %v464_v55 = vmul.f32 0.044715, %v456_v47 }
 0x151   : > { %v465_v56 = vmul.f32 0.044715, %v457_v48  ;;  %v466_v57 = vmul.f32 0.044715, %v458_v49  ;;  %v467_v58 = vmul.f32 0.044715, %v459_v50 }
 0x152   : > { %v468_v59 = vmul.f32 0.044715, %v460_v51  ;;  %v469_v60 = vmul.f32 0.044715, %v461_v52  ;;  %v470_v61 = vadd.f32 %v462_v53, %v853_v29  ;;  %v471_v62 = vadd.f32 %v463_v54, %v855_v30  ;;  %v560_v53 = vld [vmem:[%s197_s19 + $0x1c] sm:$0xf] }
 0x153   : > { %v472_v63 = vadd.f32 %v464_v55, %v857_v31  ;;  %v473_v0 = vadd.f32 %v465_v56, %v859_v32  ;;  %v474_v1 = vadd.f32 %v466_v57, %v861_v33  ;;  %v475_v2 = vadd.f32 %v467_v58, %v863_v34 }
 0x154   : > { %v476_v3 = vadd.f32 %v468_v59, %v865_v35  ;;  %v478_v4 = vmul.f32 0.7978846, %v470_v61  ;;  %v479_v5 = vmul.f32 0.7978846, %v471_v62  ;;  %v477_v6 = vadd.f32 %v469_v60, %v867_v36 }
 0x155   : > { %v480_v7 = vmul.f32 0.7978846, %v472_v63  ;;  %v481_v8 = vmul.f32 0.7978846, %v473_v0  ;;  %v482_v9 = vmul.f32 0.7978846, %v474_v1 }
 0x156   : > { %750 = vtanh.f32 %v478_v4  ;;  %v483_v10 = vmul.f32 0.7978846, %v475_v2  ;;  %v484_v11 = vmul.f32 0.7978846, %v476_v3  ;;  %v485_v12 = vmul.f32 0.7978846, %v477_v6 }
 0x157   : > { %752 = vtanh.f32 %v479_v5 }
 0x158   : > { %754 = vtanh.f32 %v480_v7 }
 0x159   : > { %756 = vtanh.f32 %v481_v8 }
 0x15a   : > { %758 = vtanh.f32 %v482_v9 }
 0x15b   : > { %760 = vtanh.f32 %v483_v10 }
 0x15c   : > { %762 = vtanh.f32 %v484_v11 }
 0x15d   : > { %764 = vtanh.f32 %v485_v12 }
 0x160   : > { %v751_v13 = vpop.eup %750 }
 0x161   : > { %v753_v14 = vpop.eup %752  ;;  %v494_v15 = vadd.f32 1.0, %v751_v13 }
 0x162   : > { %v755_v16 = vpop.eup %754  ;;  %v495_v17 = vadd.f32 1.0, %v753_v14 }
 0x163   : > { %v757_v18 = vpop.eup %756  ;;  %v496_v19 = vadd.f32 1.0, %v755_v16  ;;  %v502_v20 = vmul.f32 0.5, %v494_v15 }
 0x164   : > { %v759_v21 = vpop.eup %758  ;;  %v497_v22 = vadd.f32 1.0, %v757_v18  ;;  %v503_v23 = vmul.f32 0.5, %v495_v17 }
 0x165   : > { %v761_v24 = vpop.eup %760  ;;  %v498_v25 = vadd.f32 1.0, %v759_v21  ;;  %v504_v26 = vmul.f32 0.5, %v496_v19  ;;  %v510_v27 = vmul.f32 %v502_v20, %v853_v29 }
 0x166   : > { %v763_v28 = vpop.eup %762  ;;  %v499_v37 = vadd.f32 1.0, %v761_v24  ;;  %v505_v38 = vmul.f32 0.5, %v497_v22  ;;  %v511_v39 = vmul.f32 %v503_v23, %v855_v30 }
 0x167   : > { %v765_v40 = vpop.eup %764  ;;  %v500_v41 = vadd.f32 1.0, %v763_v28  ;;  %v506_v42 = vmul.f32 0.5, %v498_v25  ;;  %v512_v43 = vmul.f32 %v504_v26, %v857_v31 }
 0x168   : > { %v501_v44 = vadd.f32 1.0, %v765_v40  ;;  %v507_v45 = vmul.f32 0.5, %v499_v37  ;;  %v513_v46 = vmul.f32 %v505_v38, %v859_v32  ;;  %v662_v29 = vpack.c.bf16 %v511_v39, %v510_v27 }
 0x169   : > { %v508_v47 = vmul.f32 0.5, %v500_v41  ;;  %v514_v48 = vmul.f32 %v506_v42, %v861_v33 }
 0x16a   : > { %v509_v30 = vmul.f32 0.5, %v501_v44  ;;  %v515_v49 = vmul.f32 %v507_v45, %v863_v34  ;;  %663 = vst [vmem:[%s197_s19] sm:$0xff] %v662_v29   ;;  %v667_v50 = vpack.c.bf16 %v513_v46, %v512_v43 }
 0x16b   : > { %v516_v51 = vmul.f32 %v508_v47, %v865_v35 }
 0x16c   : > { %v517_v52 = vmul.f32 %v509_v30, %v867_v36  ;;  %674 = vst [vmem:[%s197_s19 + $0x8] sm:$0xff] %v667_v50   ;;  %v672_v31 = vpack.c.bf16 %v515_v49, %v514_v48 }
 0x16d   : > { %v657_v54 = vpack.c.bf16 %v516_v51, %v516_v51 }
 0x16e   : > { %v658_v32 = vpack.c.bf16 %v517_v52, %v517_v52  ;;  %675 = vst [vmem:[%s197_s19 + $0x10] sm:$0xff] %v672_v31  }
 0x16f   : > { %556 = vst [vmem:[%s197_s19 + $0x18] sm:$0xf] %v657_v54 }
 0x170   : > { %v561_v33 = vsel %vm559_vm3, %v658_v32, %v560_v53 }
 0x171   : > { %562 = vst [vmem:[%s197_s19 + $0x1c] sm:$0xf] %v561_v33 }
 0x172 PF: > { %s14_s15 = sadd.s32 1, %s772_s15  }
 0x173   : > { %p11_p4 = scmp.ge.s32.totalorder %s14_s15, 4  }
 0x175   :  { %13 = sbr.rel (!%p11_p4) target bundleno = 1 (0x1), region = 66 }

// kernel: wav2vec2_forward.4
= control target key start
LH: loop header
LB: loop body
LE: loop exit
PB: predicated region body
PF: predicated region fallthrough
CT: control target
= control target key end

     0   :  { %s2830_s13 = smov 0   ;;  %s3230_s0 = inlined_call_operand.vmem [shape: bf16[2,30,512], index: 0, kind: input, shape index: {}]   ;;  %s3231_s1 = inlined_call_operand.vmem [shape: bf16[512,128], index: 1, kind: input, shape index: {}]   ;;  %s3232_s2 = inlined_call_operand.vmem [shape: bf16[1,128], index: 2, kind: input, shape index: {}]   ;;  %s3233_s3 = inlined_call_operand.vmem [shape: bf16[1,128], index: 3, kind: input, shape index: {}]   ;;  %s3234_s4 = inlined_call_operand.vmem [shape: bf16[128,128], index: 4, kind: input, shape index: {}]   ;;  %s3235_s5 = inlined_call_operand.vmem [shape: bf16[1,128], index: 5, kind: input, shape index: {}]   ;;  %s3236_s6 = inlined_call_operand.vmem [shape: bf16[5,128,128], index: 6, kind: input, shape index: {}]   ;;  %s3237_s7 = inlined_call_operand.vmem [shape: bf16[1,128], index: 7, kind: input, shape index: {}]   ;;  %s3238_s8 = inlined_call_operand.vmem [shape: bf16[1,128], index: 8, kind: input, shape index: {}]   ;;  %s3239_s9 = inlined_call_operand.vmem [shape: bf16[1,128], index: 9, kind: input, shape index: {}]   ;;  %s3240_s10 = inlined_call_operand.vmem [shape: bf16[2,30,128], index: 10, kind: output, shape index: {}]  }
   0x1 LB: > { %s1846_s14 = sadd.s32 4294967295, %s2772_s13   ;;  %p1850_p0 = scmp.ge.s32.totalorder %s2772_s13, 1  ;;  %s2772_s13 = sphi %s2830_s13, %s20_s13  }
   0x2   : > { %p312_p1 = scmp.lt.s32.totalorder %s2772_s13, 3 }
   0x4   : > { %p313_p2 = pnand %p1850_p0, %p312_p1 }
   0x5   : > { %v2682_v0 = vld [vmem:[%s3231_s1 + $0x40] sm:$0xff] (!%p313_p2)   ;;  %v2684_v2 = vld [vmem:[%s3231_s1 + $0x48] sm:$0xff] (!%p313_p2)   ;;  %p350_p3 = scmp.lt.s32.totalorder (!%p313_p2), %s1846_s14, 1  ;;  %v2686_v4 = vld [vmem:[%s3231_s1 + $0x50] sm:$0xff] (!%p313_p2)   ;;  %vm809_vm0 = vcmask (!%p313_p2), 1045504   ;;  %vm1152_vm1 = vcmask (!%p313_p2), 1041408  }
   0x6   : > { %316 = sbr.rel (%p313_p2) target bundleno = 1530 (0x5fa), region = 60  ;;  %v2683_v1 = vld [vmem:[%s3231_s1] sm:$0xff] (!%p313_p2)   ;;  %2121 = vmatprep.subr.bf16.mxu0 (!%p313_p2), %v2682_v0  ;;  %v2685_v3 = vld [vmem:[%s3231_s1 + $0x8] sm:$0xff] (!%p313_p2)   ;;  %v2687_v5 = vld [vmem:[%s3231_s1 + $0x10] sm:$0xff] (!%p313_p2)   ;;  %vm1166_vm3 = vcmask (!%p313_p2), 1046528   ;;  %vm1552_vm4 = vcmask (!%p313_p2), 1043456  }
   0x7   : > { %2122 = vmatpush3.bf16.msra.mxu0 (!%p313_p2), %v2683_v1  ;;  %v2688_v6 = vld [vmem:[%s3231_s1 + $0x58] sm:$0xff] (!%p313_p2)   ;;  %v2690_v8 = vld [vmem:[%s3231_s1 + $0x60] sm:$0xff] (!%p313_p2)   ;;  %v2692_v10 = vld [vmem:[%s3231_s1 + $0x68] sm:$0xff] (!%p313_p2)   ;;  %vm1449_vm5 = vcmask (!%p313_p2), 1044480  }
   0x8   : > { %2123 = vmatprep.subr.bf16.mxu0 (!%p313_p2), %v2684_v2  ;;  %v2689_v7 = vld [vmem:[%s3231_s1 + $0x18] sm:$0xff] (!%p313_p2)   ;;  %v2691_v9 = vld [vmem:[%s3231_s1 + $0x20] sm:$0xff] (!%p313_p2)   ;;  %v2693_v12 = vld [vmem:[%s3231_s1 + $0x28] sm:$0xff] (!%p313_p2)  }
   0x9   : > { %v2694_v13 = vld [vmem:[%s3231_s1 + $0x70] sm:$0xff] (!%p313_p2)   ;;  %v2696_v15 = vld [vmem:[%s3231_s1 + $0x78] sm:$0xff] (!%p313_p2)   ;;  %v2701_v18 = vld [vmem:[%s3231_s1 + $0xc0] sm:$0xff] (!%p313_p2)  }
   0xa   : > { %v2695_v14 = vld [vmem:[%s3231_s1 + $0x30] sm:$0xff] (!%p313_p2)   ;;  %v2697_v16 = vld [vmem:[%s3231_s1 + $0x38] sm:$0xff] (!%p313_p2)   ;;  %v2702_v20 = vld [vmem:[%s3231_s1 + $0x80] sm:$0xff] (!%p313_p2)  }
   0xb   : > { %2124 = vmatpush3.bf16.msra.mxu0 (!%p313_p2), %v2685_v3  ;;  %v2703_v21 = vld [vmem:[%s3231_s1 + $0xc8] sm:$0xff] (!%p313_p2)   ;;  %v2705_v23 = vld [vmem:[%s3231_s1 + $0xd0] sm:$0xff] (!%p313_p2)   ;;  %v2707_v27 = vld [vmem:[%s3231_s1 + $0xd8] sm:$0xff] (!%p313_p2)  }
   0xc   : > { %2125 = vmatprep.subr.bf16.mxu0 (!%p313_p2), %v2686_v4  ;;  %v2704_v22 = vld [vmem:[%s3231_s1 + $0x88] sm:$0xff] (!%p313_p2)   ;;  %v2706_v25 = vld [vmem:[%s3231_s1 + $0x90] sm:$0xff] (!%p313_p2)   ;;  %v2708_v28 = vld [vmem:[%s3231_s1 + $0x98] sm:$0xff] (!%p313_p2)  }
   0xd   : > { %s3242_s14 = smov (!%p350_p3, %s1846_s14), 1  ;;  %v2709_v29 = vld [vmem:[%s3231_s1 + $0xe0] sm:$0xff]   ;;  %v2713_v31 = vld [vmem:[%s3231_s1 + $0xe8] sm:$0xff]   ;;  %v2716_v33 = vld [vmem:[%s3231_s1 + $0xf0] sm:$0xff]  }
   0xe   : > { %s1911_s11 = sshll.u32 %s3242_s14, 6  ;;  %v2710_v30 = vld [vmem:[%s3231_s1 + $0xa0] sm:$0xff]   ;;  %v2715_v32 = vld [vmem:[%s3231_s1 + $0xa8] sm:$0xff]   ;;  %v2717_v34 = vld [vmem:[%s3231_s1 + $0xb0] sm:$0xff]  }
   0xf   : > { %2126 = vmatpush3.bf16.msra.mxu0 %v2687_v5  ;;  %s2871_s18 = scalar_lea.vmem %s3230_s0, %s1911_s11  ;;  %v2718_v35 = vld [vmem:[%s3231_s1 + $0xf8] sm:$0xff]   ;;  %vm1903_vm2 = vmneg %vm1152_vm1 }
  0x10   : > { %2127 = vmatprep.subr.bf16.mxu0 %v2688_v6  ;;  %v2700_v11 = vld [vmem:[%s2871_s18 + $0x4] ss:$16 sps:$4 sm:$0xff]   ;;  %v2698_v17 = vld [vmem:[%s2871_s18] ss:$16 sps:$4 sm:$0xff]   ;;  %v2722_v26 = vld [vmem:[%s2871_s18 + $0xc] ss:$16 sps:$4 sm:$0xff]  }
  0x11   : > { %697 = vmatprep.mubr.bf16.mxu0 %v2700_v11  ;;  %v2711_v19 = vld [vmem:[%s2871_s18 + $0x24] ss:$16 sps:$4 sm:$0x7f]   ;;  %v2714_v24 = vld [vmem:[%s2871_s18 + $0x20] ss:$16 sps:$4 sm:$0x7f]  }
  0x12   : > { %v2719_v36 = vld [vmem:[%s3231_s1 + $0xb8] sm:$0xff]  }
  0x13   : > { %2128 = vmatpush3.bf16.msra.mxu0 %v2689_v7  ;;  %v2720_v37 = vld [vmem:[%s2871_s18 + $0x8] ss:$16 sps:$4 sm:$0xff]   ;;  %v2723_v38 = vld [vmem:[%s2871_s18 + $0x2c] ss:$16 sps:$4 sm:$0x7f]  }
  0x14   : > { %2129 = vmatprep.subr.bf16.mxu0 %v2690_v8  ;;  %v2725_v39 = vld [vmem:[%s2871_s18 + $0x28] ss:$16 sps:$4 sm:$0x7f]   ;;  %s1912_s18 = sshll.u32 %s3242_s14, 4 }
  0x15   : > { %s359_s15 = scalar_lea.vmem %s3240_s10, %s1912_s18 }
  0x17   : > { %2130 = vmatpush3.bf16.msra.mxu0 %v2691_v9 }
  0x18   : > { %2131 = vmatprep.subr.bf16.mxu0 %v2692_v10 }
  0x1b   : > { %2132 = vmatpush3.bf16.msra.mxu0 %v2693_v12 }
  0x1c   : > { %2133 = vmatprep.subr.bf16.mxu0 %v2694_v13 }
  0x1f   : > { %2134 = vmatpush3.bf16.msra.mxu0 %v2695_v14 }
  0x20   : > { %2135 = vmatprep.subr.bf16.mxu0 %v2696_v15 }
  0x23   : > { %2136 = vmatpush3.bf16.msra.mxu0 %v2697_v16 }
  0x24   : > { %2149 = vmatprep.subr.bf16.mxu0 %v2701_v18 }
  0x26   : > { %698 = vmatmul.mubr.bf16.vlgmr.msra.gmra.mrb[0].mxu0 %v2698_v17 }
  0x27   : > { %2150 = vmatpush3.bf16.msra.mxu0 %v2702_v20  ;;  %705 = vmatprep.mubr.bf16.mxu0 %v2711_v19 }
  0x28   : > { %2151 = vmatprep.subr.bf16.mxu0 %v2703_v21 }
  0x2b   : > { %2152 = vmatpush3.bf16.msra.mxu0 %v2704_v22 }
  0x2c   : > { %2153 = vmatprep.subr.bf16.mxu0 %v2705_v23 }
  0x2e   : > { %706 = vmatmul.mubr.bf16.gmra.mrb[4].mxu0 %v2714_v24 }
  0x2f   : > { %2154 = vmatpush3.bf16.msra.mxu0 %v2706_v25  ;;  %746 = vmatprep.mubr.bf16.mxu0 %v2722_v26 }
  0x30   : > { %2155 = vmatprep.subr.bf16.mxu0 %v2707_v27 }
  0x33   : > { %2156 = vmatpush3.bf16.msra.mxu0 %v2708_v28 }
  0x34   : > { %2157 = vmatprep.subr.bf16.mxu0 %v2709_v29 }
  0x37   : > { %2158 = vmatpush3.bf16.msra.mxu0 %v2710_v30 }
  0x38   : > { %2159 = vmatprep.subr.bf16.mxu0 %v2713_v31 }
  0x3b   : > { %2160 = vmatpush3.bf16.msra.mxu0 %v2715_v32 }
  0x3c   : > { %2161 = vmatprep.subr.bf16.mxu0 %v2716_v33 }
  0x3f   : > { %2162 = vmatpush3.bf16.msra.mxu0 %v2717_v34 }
  0x40   : > { %2163 = vmatprep.subr.bf16.mxu0 %v2718_v35 }
  0x43   : > { %2164 = vmatpush3.bf16.msra.mxu0 %v2719_v36 }
  0x46   : > { %747 = vmatmul.mubr.bf16.vlgmr.msra.gmra.mrb[8].mxu0 %v2720_v37 }
  0x47   : > { %754 = vmatprep.mubr.bf16.mxu0 %v2723_v38 }
  0x4e   : > { %755 = vmatmul.mubr.bf16.gmra.mrb[12].mxu0 %v2725_v39 }
  0xf9   : > { %v2137_v40 = vpop.f32.mrb[0].mxu0 }
  0xfa   : > { %v2138_v41 = vpop.f32.mrb[1].mxu0 }
  0xfb   : > { %v2139_v42 = vadd.f32 %v2138_v41, %v2137_v40  ;;  %v2140_v43 = vpop.f32.mrb[2].mxu0 }
  0xfc   : > { %v2141_v44 = vpop.f32.mrb[3].mxu0 }
  0xfd   : > { %v2142_v45 = vadd.f32 %v2141_v44, %v2140_v43 }
 0x101   : > { %v2143_v46 = vpop.f32.mrb[4].mxu0 }
 0x102   : > { %v2144_v47 = vpop.f32.mrb[5].mxu0 }
 0x103   : > { %v2145_v48 = vadd.f32 %v2144_v47, %v2143_v46  ;;  %v2146_v49 = vpop.f32.mrb[6].mxu0 }
 0x104   : > { %v2147_v50 = vpop.f32.mrb[7].mxu0 }
 0x105   : > { %v2148_v51 = vadd.f32 %v2147_v50, %v2146_v49 }
 0x119   : > { %v2165_v52 = vpop.f32.mrb[8].mxu0 }
 0x11a   : > { %v2166_v53 = vpop.f32.mrb[9].mxu0 }
 0x11b   : > { %v2167_v54 = vadd.f32 %v2166_v53, %v2165_v52  ;;  %v2168_v55 = vpop.f32.mrb[10].mxu0 }
 0x11c   : > { %v2169_v56 = vpop.f32.mrb[11].mxu0 }
 0x11d   : > { %v749_v57 = vadd.f32 %v2167_v54, %v2139_v42  ;;  %v2170_v58 = vadd.f32 %v2169_v56, %v2168_v55 }
 0x11f   : > { %v763_v59 = vmul.f32 %v749_v57, %v749_v57  ;;  %v752_v60 = vadd.f32 %v2170_v58, %v2142_v45  ;;  %v2726_v58 = vld [vmem:[%s3234_s4] sm:$0xff]  }
 0x120   : > { %2287 = vmatprep.subr.bf16.mxu0 %v2726_v58 }
 0x121   : > { %v764_v61 = vmul.f32 %v752_v60, %v752_v60  ;;  %v2171_v62 = vpop.f32.mrb[12].mxu0  ;;  %v767_v63 = vmul.f32 %v763_v59, %v749_v57  ;;  %2288 = vmatpush3.bf16.msra.mxu0 %v2726_v58  ;;  %v2727_v59 = vld [vmem:[%s3234_s4 + $0x8] sm:$0xff]   ;;  %v885_v58 = vld [vmem:[%s3235_s5] sm:$0x1] }
 0x122   : > { %v2172_v0 = vpop.f32.mrb[13].mxu0  ;;  %2289 = vmatprep.subr.bf16.mxu0 %v2727_v59 }
 0x123   : > { %v2173_v1 = vadd.f32 %v2172_v0, %v2171_v62  ;;  %v2174_v2 = vpop.f32.mrb[14].mxu0  ;;  %v771_v3 = vmul.f32 0.044715, %v767_v63  ;;  %v768_v4 = vmul.f32 %v764_v61, %v752_v60  ;;  %v2729_v61 = vld [vmem:[%s3234_s4 + $0x18] sm:$0xff]   ;;  %v2730_v62 = vld [vmem:[%s3234_s4 + $0x20] sm:$0xff]   ;;  %v2731_v63 = vld [vmem:[%s3234_s4 + $0x28] sm:$0xff]  }
 0x124   : > { %v2175_v5 = vpop.f32.mrb[15].mxu0  ;;  %v2732_v0 = vld [vmem:[%s3234_s4 + $0x30] sm:$0xff]  }
 0x125   : > { %v757_v6 = vadd.f32 %v2173_v1, %v2145_v48  ;;  %v2176_v7 = vadd.f32 %v2175_v5, %v2174_v2  ;;  %v775_v8 = vadd.f32 %v771_v3, %v749_v57  ;;  %v772_v9 = vmul.f32 0.044715, %v768_v4  ;;  %2290 = vmatpush3.bf16.msra.mxu0 %v2727_v59  ;;  %v2733_v1 = vld [vmem:[%s3234_s4 + $0x38] sm:$0xff]   ;;  %v1918_v2 = vld [vmem:[%s3236_s6] sm:$0xff]   ;;  %v2082_v3 = vld [vmem:[%s3236_s6 + $0x8] sm:$0xff]  }
 0x126   : > { %v3001_v4 = vld [vmem:[%s3236_s6 + $0x40] sm:$0xff]   ;;  %2530 = vmatprep.subr.bf16.mxu1 %v1918_v2  ;;  %v2083_v5 = vld [vmem:[%s3236_s6 + $0x10] sm:$0xff]   ;;  %v886_v59 = vunpack.c.l.bf16 %v885_v58 }
 0x127   : > { %v765_v10 = vmul.f32 %v757_v6, %v757_v6  ;;  %v760_v11 = vadd.f32 %v2176_v7, %v2148_v51  ;;  %v779_v12 = vmul.f32 0.7978846, %v775_v8  ;;  %v776_v13 = vadd.f32 %v772_v9, %v752_v60  ;;  %2532 = vmatpush3.bf16.msra.mxu1 %v1918_v2  ;;  %v2085_v7 = vld [vmem:[%s3236_s6 + $0x20] sm:$0xff]   ;;  %v2086_v8 = vld [vmem:[%s3236_s6 + $0x28] sm:$0xff]  }
 0x128   : > { %2534 = vmatprep.subr.bf16.mxu1 %v2082_v3 }
 0x129   : > { %v766_v14 = vmul.f32 %v760_v11, %v760_v11  ;;  %2734 = vtanh.f32 %v779_v12  ;;  %v780_v15 = vmul.f32 0.7978846, %v776_v13  ;;  %v769_v16 = vmul.f32 %v765_v10, %v757_v6 }
 0x12a   : > { %v851_v13 = vlaneseq }
 0x12b   : > { %2736 = vtanh.f32 %v780_v15  ;;  %v770_v17 = vmul.f32 %v766_v14, %v760_v11  ;;  %v773_v18 = vmul.f32 0.044715, %v769_v16  ;;  %2536 = vmatpush3.bf16.msra.mxu1 %v2082_v3 }
 0x12c   : > { %2538 = vmatprep.subr.bf16.mxu1 %v2083_v5  ;;  %v852_v16 = vshrl.u32 %v851_v13, 7  ;;  %v2098_v13 = vld [vmem:[%s3236_s6 + $0x88] sm:$0xff]  }
 0x12d   : > { %v774_v19 = vmul.f32 0.044715, %v770_v17  ;;  %v777_v20 = vadd.f32 %v773_v18, %v757_v6  ;;  %v799_v17 = vld [vmem:[%s3232_s2] sm:$0x1] }
 0x12e   : > { %v800_v18 = vunpack.c.l.bf16 %v799_v17 }
 0x12f   : > { %v778_v21 = vadd.f32 %v774_v19, %v760_v11  ;;  %v781_v22 = vmul.f32 0.7978846, %v777_v20  ;;  %2540 = vmatpush3.bf16.msra.mxu1 %v2083_v5  ;;  %v3019_v19 = vsub.s32 0, %v852_v16 }
 0x131   : > { %v782_v23 = vmul.f32 0.7978846, %v778_v21  ;;  %2738 = vtanh.f32 %v781_v22  ;;  %v801_v22 = vld [vmem:[%s3233_s3] sm:$0x1] }
 0x133   : > { %v2735_v24 = vpop.eup %2734  ;;  %2740 = vtanh.f32 %v782_v23 }
 0x134   : > { %v787_v25 = vadd.f32 1.0, %v2735_v24 }
 0x135   : > { %v2737_v26 = vpop.eup %2736 }
 0x136   : > { %v791_v27 = vmul.f32 0.5, %v787_v25  ;;  %v788_v28 = vadd.f32 1.0, %v2737_v26  ;;  %v854_v26 = vrot.slane %v800_v18, %v3019_v19 }
 0x138   : > { %v795_v29 = vmul.f32 %v791_v27, %v749_v57  ;;  %v792_v30 = vmul.f32 0.5, %v788_v28  ;;  %v802_v28 = vunpack.c.l.bf16 %v801_v22 }
 0x13a   : > { %803 = vadd.xlane.f32.xlu0 %v795_v29  ;;  %v796_v32 = vmul.f32 %v792_v30, %v752_v60  ;;  %v2728_v60 = vld [vmem:[%s3234_s4 + $0x10] sm:$0xff]  }
 0x13b   : > { %v2739_v31 = vpop.eup %2738  ;;  %2291 = vmatprep.subr.bf16.mxu0 %v2728_v60 }
 0x13c   : > { %v789_v35 = vadd.f32 1.0, %v2739_v31  ;;  %2292 = vmatpush3.bf16.msra.mxu0 %v2728_v60  ;;  %v890_v60 = vrot.slane %v886_v59, %v3019_v19  ;;  %v2114_v59 = vld [vmem:[%s3236_s6 + $0x108] sm:$0xff]  }
 0x13d   : > { %v2741_v33 = vpop.eup %2740  ;;  %2293 = vmatprep.subr.bf16.mxu0 %v2729_v61 }
 0x13e   : > { %805 = vadd.xlane.f32.xlu0 %v796_v32  ;;  %v790_v34 = vadd.f32 1.0, %v2741_v33  ;;  %v793_v38 = vmul.f32 0.5, %v789_v35 }
 0x140   : > { %v794_v36 = vmul.f32 0.5, %v790_v34  ;;  %v797_v40 = vmul.f32 %v793_v38, %v757_v6  ;;  %2294 = vmatpush3.bf16.msra.mxu0 %v2729_v61  ;;  %v2084_v6 = vld [vmem:[%s3236_s6 + $0x18] sm:$0xff]   ;;  %v862_v34 = vrot.slane %v802_v28, %v3019_v19 }
 0x141   : > { %2295 = vmatprep.subr.bf16.mxu0 %v2730_v62  ;;  %2542 = vmatprep.subr.bf16.mxu1 %v2084_v6 }
 0x142   : > { %v798_v37 = vmul.f32 %v794_v36, %v760_v11  ;;  %2544 = vmatpush3.bf16.msra.mxu1 %v2084_v6 }
 0x143   : > { %2546 = vmatprep.subr.bf16.mxu1 %v2085_v7 }
 0x144   : > { %v810_v39 = vsel %vm809_vm0, %v798_v37, 0.0  ;;  %2296 = vmatpush3.bf16.msra.mxu0 %v2730_v62 }
 0x145   : > { %811 = vadd.xlane.f32.xlu1 %v810_v39  ;;  %2297 = vmatprep.subr.bf16.mxu0 %v2731_v63 }
 0x146   : > { %2548 = vmatpush3.bf16.msra.mxu1 %v2085_v7 }
 0x147   : > { %2550 = vmatprep.subr.bf16.mxu1 %v2086_v8 }
 0x148   : > { %2298 = vmatpush3.bf16.msra.mxu0 %v2731_v63 }
 0x149   : > { %807 = vadd.xlane.f32.xlu1 %v797_v40  ;;  %2299 = vmatprep.subr.bf16.mxu0 %v2732_v0 }
 0x14a   : > { %2552 = vmatpush3.bf16.msra.mxu1 %v2086_v8 }
 0x14c   : > { %2300 = vmatpush3.bf16.msra.mxu0 %v2732_v0 }
 0x14d   : > { %2301 = vmatprep.subr.bf16.mxu0 %v2733_v1 }
 0x150   : > { %2302 = vmatpush3.bf16.msra.mxu0 %v2733_v1 }
 0x151   : > { %2498 = vmatprep.subr.bf16.mxu0 %v3001_v4 }
 0x1c7   : > { %v804_v41 = vpop.xlane.xlu0 %803 }
 0x1c8   : > { %v814_v42 = vmul.f32 0.0078125, %v804_v41 }
 0x1ca   : > { %v2951_v43 = vsub.f32 %v795_v29, %v814_v42 }
 0x1cb   : > { %v806_v44 = vpop.xlane.xlu0 %805 }
 0x1cc   : > { %v815_v45 = vmul.f32 0.0078125, %v806_v44  ;;  %v822_v46 = vmul.f32 %v2951_v43, %v2951_v43 }
 0x1ce   : > { %v2955_v47 = vsub.f32 %v796_v32, %v815_v45  ;;  %826 = vadd.xlane.f32.xlu0 %v822_v46 }
 0x1d0   : > { %v823_v48 = vmul.f32 %v2955_v47, %v2955_v47 }
 0x1d2   : > { %v812_v49 = vpop.xlane.xlu1 %811  ;;  %828 = vadd.xlane.f32.xlu1 %v823_v48 }
 0x1d3   : > { %v817_v50 = vmul.f32 0.0078125, %v812_v49  ;;  %v2091_v49 = vld [vmem:[%s3236_s6 + $0x50] sm:$0xff]  }
 0x1d5   : > { %v2959_v51 = vsub.f32 %v798_v37, %v817_v50  ;;  %v2092_v50 = vld [vmem:[%s3236_s6 + $0x58] sm:$0xff]  }
 0x1d6   : > { %v808_v52 = vpop.xlane.xlu1 %807 }
 0x1d7   : > { %v816_v53 = vmul.f32 0.0078125, %v808_v52  ;;  %v825_v54 = vmul.f32 %v2959_v51, %v2959_v51  ;;  %v2087_v52 = vld [vmem:[%s3236_s6 + $0x30] sm:$0xff]  }
 0x1d8   : > { %2554 = vmatprep.subr.bf16.mxu1 %v2087_v52 }
 0x1d9   : > { %v2963_v55 = vsub.f32 %v797_v40, %v816_v53  ;;  %v832_v56 = vsel %vm809_vm0, %v825_v54, 0.0  ;;  %v2094_v53 = vld [vmem:[%s3236_s6 + $0x68] sm:$0xff]   ;;  %2556 = vmatpush3.bf16.msra.mxu1 %v2087_v52  ;;  %v2088_v54 = vld [vmem:[%s3236_s6 + $0x38] sm:$0xff]  }
 0x1da   : > { %833 = vadd.xlane.f32.xlu1 %v832_v56  ;;  %2558 = vmatprep.subr.bf16.mxu1 %v2088_v54  ;;  %v2097_v56 = vld [vmem:[%s3236_s6 + $0x80] sm:$0xff]   ;;  %v2112_v52 = vld [vmem:[%s3236_s6 + $0xf8] sm:$0xff]  }
 0x1db   : > { %v824_v57 = vmul.f32 %v2963_v55, %v2963_v55 }
 0x1dd   : > { %830 = vadd.xlane.f32.xlu0 %v824_v57  ;;  %2560 = vmatpush3.bf16.msra.mxu1 %v2088_v54  ;;  %v2096_v57 = vld [vmem:[%s3236_s6 + $0x78] sm:$0xff]   ;;  %v2113_v54 = vld [vmem:[%s3236_s6 + $0x100] sm:$0xff]  }
 0x1de   : > { %2562 = vmatprep.subr.bf16.mxu1 %v2097_v56 }
 0x25b   : > { %v827_v9 = vpop.xlane.xlu0 %826 }
 0x25c   : > { %v835_v10 = vmul.f32 0.0078125, %v827_v9 }
 0x25e   : > { %v839_v11 = vadd.f32 1e-05, %v835_v10 }
 0x25f   : > { %v829_v12 = vpop.xlane.xlu1 %828 }
 0x260   : > { %2742 = vrsqrt.f32 %v839_v11  ;;  %v836_v14 = vmul.f32 0.0078125, %v829_v12 }
 0x262   : > { %v840_v15 = vadd.f32 1e-05, %v836_v14 }
 0x264   : > { %2744 = vrsqrt.f32 %v840_v15 }
 0x267   : > { %v834_v20 = vpop.xlane.xlu1 %833 }
 0x268   : > { %v838_v21 = vmul.f32 0.0078125, %v834_v20 }
 0x26a   : > { %v2743_v23 = vpop.eup %2742  ;;  %v842_v24 = vadd.f32 1e-05, %v838_v21  ;;  %v831_v25 = vpop.xlane.xlu0 %830 }
 0x26b   : > { %v837_v27 = vmul.f32 0.0078125, %v831_v25  ;;  %v847_v29 = vmul.f32 %v2743_v23, %v2951_v43  ;;  %v2099_v23 = vld [vmem:[%s3236_s6 + $0x90] sm:$0xff]  }
 0x26c   : > { %2746 = vrsqrt.f32 %v842_v24 }
 0x26d   : > { %v841_v30 = vadd.f32 1e-05, %v837_v27  ;;  %v855_v33 = vmul.f32 %v854_v26, %v847_v29 }
 0x26e   : > { %v2745_v31 = vpop.eup %2744 }
 0x26f   : > { %2748 = vrsqrt.f32 %v841_v30  ;;  %v848_v32 = vmul.f32 %v2745_v31, %v2955_v47  ;;  %v863_v36 = vadd.f32 %v862_v34, %v855_v33  ;;  %v2090_v47 = vld [vmem:[%s3236_s6 + $0x48] sm:$0xff]  }
 0x271   : > { %v856_v35 = vmul.f32 %v854_v26, %v848_v32  ;;  %v2100_v32 = vld [vmem:[%s3236_s6 + $0x98] sm:$0xff]  }
 0x273   : > { %v864_v37 = vadd.f32 %v862_v34, %v856_v35  ;;  %v2102_v35 = vld [vmem:[%s3236_s6 + $0xa8] sm:$0xff]  }
 0x275   : > { %v867_v38 = vpack.c.bf16 %v864_v37, %v863_v36  ;;  %v2103_v36 = vld [vmem:[%s3236_s6 + $0xb0] sm:$0xff]   ;;  %v2104_v37 = vld [vmem:[%s3236_s6 + $0xb8] sm:$0xff]  }
 0x276   : > { %v2747_v39 = vpop.eup %2746 }
 0x277   : > { %v850_v40 = vmul.f32 %v2747_v39, %v2959_v51  ;;  %2303 = vmatprep.mubr.bf16.mxu0 %v867_v38  ;;  %v2093_v51 = vld [vmem:[%s3236_s6 + $0x60] sm:$0xff]  }
 0x278   : > { %v2105_v39 = vld [vmem:[%s3236_s6 + $0xc0] sm:$0xff]  }
 0x279   : > { %v2749_v41 = vpop.eup %2748  ;;  %v858_v42 = vmul.f32 %v854_v26, %v850_v40 }
 0x27a   : > { %v849_v43 = vmul.f32 %v2749_v41, %v2963_v55  ;;  %v2095_v55 = vld [vmem:[%s3236_s6 + $0x70] sm:$0xff]  }
 0x27b   : > { %v866_v46 = vadd.f32 %v862_v34, %v858_v42  ;;  %v2106_v42 = vld [vmem:[%s3236_s6 + $0xc8] sm:$0xff]  }
 0x27c   : > { %v857_v44 = vmul.f32 %v854_v26, %v849_v43 }
 0x27e   : > { %v865_v45 = vadd.f32 %v862_v34, %v857_v44  ;;  %v2101_v34 = vld [vmem:[%s3236_s6 + $0xa0] sm:$0xff]  }
 0x280   : > { %v868_v48 = vpack.c.bf16 %v866_v46, %v865_v45  ;;  %v2107_v46 = vld [vmem:[%s3236_s6 + $0xd0] sm:$0xff]  }
 0x282   : > { %2304 = vmatmul.mubr.bf16.vlgmr.msra.gmra.mrb[16].mxu0 %v868_v48 }
 0x283   : > { %2500 = vmatpush3.bf16.msra.mxu0 %v3001_v4 }
 0x284   : > { %2502 = vmatprep.subr.bf16.mxu0 %v2090_v47 }
 0x287   : > { %2504 = vmatpush3.bf16.msra.mxu0 %v2090_v47  ;;  %v2108_v47 = vld [vmem:[%s3236_s6 + $0xd8] sm:$0xff]  }
 0x288   : > { %2506 = vmatprep.subr.bf16.mxu0 %v2091_v49 }
 0x28b   : > { %2508 = vmatpush3.bf16.msra.mxu0 %v2091_v49  ;;  %v2109_v49 = vld [vmem:[%s3236_s6 + $0xe0] sm:$0xff]  }
 0x28c   : > { %2510 = vmatprep.subr.bf16.mxu0 %v2092_v50 }
 0x28f   : > { %2512 = vmatpush3.bf16.msra.mxu0 %v2092_v50  ;;  %v2110_v50 = vld [vmem:[%s3236_s6 + $0xe8] sm:$0xff]  }
 0x290   : > { %2514 = vmatprep.subr.bf16.mxu0 %v2093_v51 }
 0x293   : > { %2516 = vmatpush3.bf16.msra.mxu0 %v2093_v51  ;;  %v2111_v51 = vld [vmem:[%s3236_s6 + $0xf0] sm:$0xff]  }
 0x294   : > { %2518 = vmatprep.subr.bf16.mxu0 %v2094_v53 }
 0x297   : > { %2520 = vmatpush3.bf16.msra.mxu0 %v2094_v53 }
 0x298   : > { %2522 = vmatprep.subr.bf16.mxu0 %v2095_v55 }
 0x29b   : > { %2524 = vmatpush3.bf16.msra.mxu0 %v2095_v55 }
 0x29c   : > { %2526 = vmatprep.subr.bf16.mxu0 %v2096_v57 }
 0x29f   : > { %2528 = vmatpush3.bf16.msra.mxu0 %v2096_v57  ;;  %v2774_v57 = vmov 0.0  }
 0x2a0   : > { %v1457_v58 = vrot.slane %v2774_v57, 3 }
 0x355   : > { %v2305_v61 = vpop.f32.mrb[16].mxu0 }
 0x356   : > { %v3065_v62 = vadd.f32 %v2305_v61, %v890_v60  ;;  %v973_v63 = vpop.f32.mrb[17].mxu0 }
 0x357   : > { %v3067_v0 = vadd.f32 %v973_v63, %v890_v60  ;;  %v2306_v1 = vpop.f32.mrb[18].mxu0  ;;  %v2115_v63 = vld [vmem:[%s3236_s6 + $0x110] sm:$0xff]  }
 0x358   : > { %v3069_v2 = vadd.f32 %v2306_v1, %v890_v60  ;;  %v976_v3 = vpop.f32.mrb[19].mxu0  ;;  %v1156_v6 = vrot.slane %v3065_v62, 6  ;;  %v2116_v1 = vld [vmem:[%s3236_s6 + $0x118] sm:$0xff]  }
 0x359   : > { %v1153_v4 = vrot.slane %v3067_v0, 6  ;;  %v3073_v5 = vadd.f32 %v976_v3, %v890_v60  ;;  %v2117_v3 = vld [vmem:[%s3236_s6 + $0x120] sm:$0xff]  }
 0x35a   : > { %v1158_v7 = vrot.slane %v3069_v2, 6 }
 0x35b   : > { %v1154_v8 = vrot.slane %v3073_v5, 6  ;;  %2377 = vmatprep.mubr.msk.f32.mxu1 %vm1903_vm2, %v1153_v4  ;;  %v3079_v9 = vsel %vm1152_vm1, 0.0, %v1153_v4 }
 0x35c   : > { %v3082_v10 = vsel %vm1152_vm1, %v1156_v6, %v1158_v7  ;;  %v1167_v14 = vrot.slane %v3079_v9, 1  ;;  %v1348_v22 = vrot.slane %v3079_v9, 2  ;;  %v1553_v25 = vrot.slane %v3079_v9, 4  ;;  %v2120_v7 = vld [vmem:[%s3236_s6 + $0x138] sm:$0xff]  }
 0x35d   : > { %v3085_v11 = vsel %vm1152_vm1, %v1153_v4, %v1154_v8  ;;  %v3088_v12 = vsel %vm1152_vm1, %v1154_v8, %v1156_v6  ;;  %v1172_v17 = vrot.slane %v3082_v10, 1  ;;  %v1558_v29 = vrot.slane %v3082_v10, 4  ;;  %v2118_v4 = vld [vmem:[%s3236_s6 + $0x128] sm:$0xff]   ;;  %v2119_v6 = vld [vmem:[%s3236_s6 + $0x130] sm:$0xff]  }
 0x35e   : > { %2378 = vmatmul.mubr.f32.vlgmr.msra.gmra.mrb[0].mxu1 %v3085_v11  ;;  %v1168_v15 = vrot.slane %v3085_v11, 1  ;;  %v1170_v16 = vrot.slane %v3088_v12, 1  ;;  %v1349_v18 = vrot.slane %v3085_v11, 2  ;;  %v1554_v26 = vrot.slane %v3085_v11, 4 }
 0x35f   : > { %2564 = vmatpush3.bf16.msra.mxu1 %v2097_v56  ;;  %2380 = vmatprep.mubr.f32.mxu1 %v3088_v12  ;;  %v1556_v27 = vrot.slane %v3088_v12, 4  ;;  %v1351_v38 = vrot.slane %v3088_v12, 2  ;;  %v1353_v40 = vrot.slane %v3082_v10, 2  ;;  %v1451_v44 = vrot.slane %v3085_v11, 3 }
 0x360   : > { %v1169_v20 = vsel %vm1166_vm3, %v1167_v14, %v1168_v15  ;;  %2566 = vmatprep.subr.bf16.mxu1 %v2098_v13  ;;  %v1171_v21 = vsel %vm1166_vm3, %v1168_v15, %v1170_v16  ;;  %v1173_v24 = vsel %vm1166_vm3, %v1170_v16, %v1172_v17  ;;  %v1350_v28 = vsel %vm809_vm0, %v1348_v22, %v1349_v18  ;;  %v1655_v15 = vld [vmem:[%s3237_s7] sm:$0x1] }
 0x361   : > { %2339 = vmatprep.mubr.f32.mxu0 %v1169_v20  ;;  %v3114_v30 = vsel %vm1552_vm4, %v1553_v25, %v1554_v26  ;;  %v3117_v31 = vsel %vm1552_vm4, %v1554_v26, %v1556_v27  ;;  %v3125_v33 = vsel %vm1552_vm4, %v1556_v27, %v1558_v29  ;;  %v1352_v41 = vsel %vm809_vm0, %v1349_v18, %v1351_v38 }
 0x362   : > { %2340 = vmatmul.mubr.f32.vlgmr.msra.gmra.mrb[20].mxu0 %v1171_v21  ;;  %2381 = vmatmul.mubr.f32.gmra.mrb[2].mxu1 %v3082_v10  ;;  %v1354_v43 = vsel %vm809_vm0, %v1351_v38, %v1353_v40  ;;  %v1450_v45 = vrot.slane %v3079_v9, 3  ;;  %v1453_v53 = vrot.slane %v3088_v12, 3  ;;  %v1455_v55 = vrot.slane %v3082_v10, 3 }
 0x363   : > { %2568 = vmatpush3.bf16.msra.mxu1 %v2098_v13  ;;  %2342 = vmatprep.mubr.f32.mxu0 %v1173_v24  ;;  %v1560_v8 = vrot.slane %v2774_v57, 4  ;;  %v1656_v16 = vunpack.c.l.bf16 %v1655_v15 }
 0x364   : > { %2415 = vmatprep.mubr.f32.mxu1 %v1350_v28  ;;  %2570 = vmatprep.subr.bf16.mxu1 %v2099_v23  ;;  %v1452_v48 = vsel %vm1449_vm5, %v1450_v45, %v1451_v44  ;;  %v1454_v56 = vsel %vm1449_vm5, %v1451_v44, %v1453_v53  ;;  %v1456_v60 = vsel %vm1449_vm5, %v1453_v53, %v1455_v55 }
 0x365   : > { %v1458_v61 = vsel %vm1449_vm5, %v1455_v55, %v1457_v58  ;;  %v1561_v9 = vsel %vm1552_vm4, %v1558_v29, %v1560_v8 }
 0x366   : > { %2343 = vmatmul.mubr.f32.gmra.mrb[22].mxu0 %v1172_v17  ;;  %v1660_v17 = vrot.slane %v1656_v16, %v3019_v19 }
 0x367   : > { %2572 = vmatpush3.bf16.msra.mxu1 %v2099_v23 }
 0x368   : > { %2574 = vmatprep.subr.bf16.mxu1 %v2100_v32 }
 0x36b   : > { %2576 = vmatpush3.bf16.msra.mxu1 %v2100_v32 }
 0x36c   : > { %2578 = vmatprep.subr.bf16.mxu1 %v2101_v34 }
 0x36f   : > { %2580 = vmatpush3.bf16.msra.mxu1 %v2101_v34 }
 0x370   : > { %2582 = vmatprep.subr.bf16.mxu1 %v2102_v35 }
 0x373   : > { %2584 = vmatpush3.bf16.msra.mxu1 %v2102_v35 }
 0x374   : > { %2586 = vmatprep.subr.bf16.mxu1 %v2103_v36 }
 0x377   : > { %2588 = vmatpush3.bf16.msra.mxu1 %v2103_v36 }
 0x378   : > { %2590 = vmatprep.subr.bf16.mxu1 %v2104_v37 }
 0x37b   : > { %2592 = vmatpush3.bf16.msra.mxu1 %v2104_v37 }
 0x37c   : > { %2594 = vmatprep.subr.bf16.mxu1 %v2105_v39 }
 0x37e   : > { %2416 = vmatmul.mubr.f32.vlgmr.msra.gmra.mrb[0].mxu1 %v1352_v41 }
 0x37f   : > { %2418 = vmatprep.mubr.f32.mxu1 %v1354_v43  ;;  %2596 = vmatpush3.bf16.msra.mxu1 %v2105_v39 }
 0x380   : > { %2598 = vmatprep.subr.bf16.mxu1 %v2106_v42 }
 0x382   : > { %2419 = vmatmul.mubr.f32.gmra.mrb[2].mxu1 %v1353_v40 }
 0x383   : > { %2600 = vmatpush3.bf16.msra.mxu1 %v2106_v42  ;;  %2453 = vmatprep.mubr.f32.mxu1 %v1452_v48 }
 0x384   : > { %2602 = vmatprep.subr.bf16.mxu1 %v2107_v46 }
 0x387   : > { %2604 = vmatpush3.bf16.msra.mxu1 %v2107_v46 }
 0x388   : > { %2606 = vmatprep.subr.bf16.mxu1 %v2108_v47 }
 0x38b   : > { %2608 = vmatpush3.bf16.msra.mxu1 %v2108_v47 }
 0x38c   : > { %2610 = vmatprep.subr.bf16.mxu1 %v2109_v49 }
 0x38f   : > { %2612 = vmatpush3.bf16.msra.mxu1 %v2109_v49 }
 0x390   : > { %2614 = vmatprep.subr.bf16.mxu1 %v2110_v50 }
 0x393   : > { %2616 = vmatpush3.bf16.msra.mxu1 %v2110_v50 }
 0x394   : > { %2618 = vmatprep.subr.bf16.mxu1 %v2111_v51 }
 0x397   : > { %2620 = vmatpush3.bf16.msra.mxu1 %v2111_v51 }
 0x398   : > { %2622 = vmatprep.subr.bf16.mxu1 %v2112_v52 }
 0x39b   : > { %2624 = vmatpush3.bf16.msra.mxu1 %v2112_v52 }
 0x39c   : > { %2626 = vmatprep.subr.bf16.mxu1 %v2113_v54 }
 0x39e   : > { %2454 = vmatmul.mubr.f32.vlgmr.msra.gmra.mrb[0].mxu1 %v1454_v56 }
 0x39f   : > { %2456 = vmatprep.mubr.f32.mxu1 %v1456_v60  ;;  %2628 = vmatpush3.bf16.msra.mxu1 %v2113_v54 }
 0x3a0   : > { %2630 = vmatprep.subr.bf16.mxu1 %v2114_v59 }
 0x3a2   : > { %2457 = vmatmul.mubr.f32.gmra.mrb[2].mxu1 %v1458_v61 }
 0x3a3   : > { %2632 = vmatpush3.bf16.msra.mxu1 %v2114_v59  ;;  %2491 = vmatprep.mubr.f32.mxu1 %v3114_v30 }
 0x3a4   : > { %2634 = vmatprep.subr.bf16.mxu1 %v2115_v63 }
 0x3a7   : > { %2636 = vmatpush3.bf16.msra.mxu1 %v2115_v63 }
 0x3a8   : > { %2638 = vmatprep.subr.bf16.mxu1 %v2116_v1 }
 0x3ab   : > { %2640 = vmatpush3.bf16.msra.mxu1 %v2116_v1 }
 0x3ac   : > { %2642 = vmatprep.subr.bf16.mxu1 %v2117_v3 }
 0x3af   : > { %2644 = vmatpush3.bf16.msra.mxu1 %v2117_v3 }
 0x3b0   : > { %2646 = vmatprep.subr.bf16.mxu1 %v2118_v4 }
 0x3b3   : > { %2648 = vmatpush3.bf16.msra.mxu1 %v2118_v4 }
 0x3b4   : > { %2650 = vmatprep.subr.bf16.mxu1 %v2119_v6 }
 0x3b7   : > { %2652 = vmatpush3.bf16.msra.mxu1 %v2119_v6 }
 0x3b8   : > { %2654 = vmatprep.subr.bf16.mxu1 %v2120_v7 }
 0x3bb   : > { %2656 = vmatpush3.bf16.msra.mxu1 %v2120_v7 }
 0x3be   : > { %2492 = vmatmul.mubr.f32.vlgmr.msra.gmra.mrb[0].mxu1 %v3117_v31 }
 0x3bf   : > { %2494 = vmatprep.mubr.f32.mxu1 %v3125_v33 }
 0x3c2   : > { %2495 = vmatmul.mubr.f32.gmra.mrb[2].mxu1 %v1561_v9 }
 0x435   : > { %v2341_v11 = vpop.f32.mrb[20].mxu0 }
 0x436   : > { %v1244_v12 = vpop.f32.mrb[21].mxu0 }
 0x439   : > { %v2344_v13 = vpop.f32.mrb[22].mxu0 }
 0x43a   : > { %v1254_v14 = vpop.f32.mrb[23].mxu0 }
 0x491   : > { %v2493_v18 = vpop.f32.mrb[0].mxu1 }
 0x492   : > { %v2657_v20 = vadd.f32 %v2493_v18, %v2341_v11  ;;  %v1632_v21 = vpop.f32.mrb[1].mxu1 }
 0x493   : > { %v2658_v22 = vadd.f32 %v1632_v21, %v1244_v12 }
 0x494   : > { %v1662_v23 = vadd.f32 %v2657_v20, %v1660_v17 }
 0x495   : > { %v1661_v10 = vadd.f32 %v2658_v22, %v1660_v17  ;;  %v2496_v24 = vpop.f32.mrb[2].mxu1 }
 0x496   : > { %v1666_v25 = vmul.f32 %v1662_v23, %v1662_v23  ;;  %v2659_v26 = vadd.f32 %v2496_v24, %v2344_v13  ;;  %v1642_v27 = vpop.f32.mrb[3].mxu1 }
 0x497   : > { %v1665_v28 = vmul.f32 %v1661_v10, %v1661_v10  ;;  %v2660_v29 = vadd.f32 %v1642_v27, %v1254_v14 }
 0x498   : > { %v1670_v30 = vmul.f32 %v1666_v25, %v1662_v23  ;;  %v1664_v31 = vadd.f32 %v2659_v26, %v1660_v17 }
 0x499   : > { %v1669_v32 = vmul.f32 %v1665_v28, %v1661_v10  ;;  %v1663_v33 = vadd.f32 %v2660_v29, %v1660_v17 }
 0x49a   : > { %v1674_v34 = vmul.f32 0.044715, %v1670_v30  ;;  %v1668_v35 = vmul.f32 %v1664_v31, %v1664_v31 }
 0x49b   : > { %v1673_v36 = vmul.f32 0.044715, %v1669_v32  ;;  %v1667_v37 = vmul.f32 %v1663_v33, %v1663_v33 }
 0x49c   : > { %v1672_v38 = vmul.f32 %v1668_v35, %v1664_v31  ;;  %v1678_v39 = vadd.f32 %v1674_v34, %v1662_v23  ;;  %v1705_v35 = vld [vmem:[%s3238_s8] sm:$0x1] }
 0x49d   : > { %v1671_v40 = vmul.f32 %v1667_v37, %v1663_v33  ;;  %v1677_v41 = vadd.f32 %v1673_v36, %v1661_v10  ;;  %v1707_v37 = vld [vmem:[%s3239_s9] sm:$0x1] }
 0x49e   : > { %v1676_v42 = vmul.f32 0.044715, %v1672_v38  ;;  %v1682_v43 = vmul.f32 0.7978846, %v1678_v39  ;;  %v1706_v39 = vunpack.c.l.bf16 %v1705_v35 }
 0x49f   : > { %v1675_v44 = vmul.f32 0.044715, %v1671_v40  ;;  %v1681_v45 = vmul.f32 0.7978846, %v1677_v41  ;;  %v1708_v41 = vunpack.c.l.bf16 %v1707_v37 }
 0x4a0   : > { %v1680_v46 = vadd.f32 %v1676_v42, %v1664_v31  ;;  %2750 = vtanh.f32 %v1682_v43  ;;  %v1758_v43 = vrot.slane %v1706_v39, %v3019_v19 }
 0x4a1   : > { %2752 = vtanh.f32 %v1681_v45  ;;  %v1679_v48 = vadd.f32 %v1675_v44, %v1663_v33 }
 0x4a2   : > { %v1684_v47 = vmul.f32 0.7978846, %v1680_v46  ;;  %v1766_v46 = vrot.slane %v1708_v41, %v3019_v19 }
 0x4a3   : > { %v1683_v49 = vmul.f32 0.7978846, %v1679_v48 }
 0x4a4   : > { %2754 = vtanh.f32 %v1684_v47 }
 0x4a5   : > { %2756 = vtanh.f32 %v1683_v49 }
 0x4aa   : > { %v2751_v50 = vpop.eup %2750 }
 0x4ab   : > { %v2753_v51 = vpop.eup %2752  ;;  %v1690_v55 = vadd.f32 1.0, %v2751_v50 }
 0x4ac   : > { %v1689_v52 = vadd.f32 1.0, %v2753_v51 }
 0x4ad   : > { %v1694_v1 = vmul.f32 0.5, %v1690_v55 }
 0x4ae   : > { %v2755_v53 = vpop.eup %2754  ;;  %v1693_v54 = vmul.f32 0.5, %v1689_v52 }
 0x4af   : > { %v2757_v56 = vpop.eup %2756  ;;  %v1692_v57 = vadd.f32 1.0, %v2755_v53  ;;  %v1698_v8 = vmul.f32 %v1694_v1, %v1662_v23 }
 0x4b0   : > { %v1697_v58 = vmul.f32 %v1693_v54, %v1661_v10  ;;  %v1691_v59 = vadd.f32 1.0, %v2757_v56 }
 0x4b1   : > { %v1696_v60 = vmul.f32 0.5, %v1692_v57  ;;  %v1702_v11 = vadd.f32 %v1698_v8, %v3073_v5 }
 0x4b2   : > { %v1701_v61 = vadd.f32 %v1697_v58, %v3067_v0  ;;  %v1695_v63 = vmul.f32 0.5, %v1691_v59 }
 0x4b3   : > { %v1700_v3 = vmul.f32 %v1696_v60, %v1664_v31 }
 0x4b4   : > { %1709 = vadd.xlane.f32.xlu1 %v1701_v61  ;;  %v1699_v4 = vmul.f32 %v1695_v63, %v1663_v33 }
 0x4b5   : > { %v1704_v6 = vadd.f32 %v1700_v3, %v3069_v2 }
 0x4b6   : > { %v1703_v7 = vadd.f32 %v1699_v4, %v3065_v62 }
 0x4b7   : > { %v1715_v9 = vsel %vm809_vm0, %v1704_v6, 0.0 }
 0x4b8   : > { %1716 = vadd.xlane.f32.xlu0 %v1715_v9  ;;  %1713 = vadd.xlane.f32.xlu1 %v1703_v7 }
 0x4bc   : > { %1711 = vadd.xlane.f32.xlu0 %v1702_v11 }
 0x541   : > { %v1710_v12 = vpop.xlane.xlu1 %1709 }
 0x542   : > { %v1718_v13 = vmul.f32 0.0078125, %v1710_v12 }
 0x544   : > { %v1722_v0 = vsub.f32 %v1701_v61, %v1718_v13 }
 0x545   : > { %v1717_v14 = vpop.xlane.xlu0 %1716  ;;  %v1714_v15 = vpop.xlane.xlu1 %1713 }
 0x546   : > { %v1720_v16 = vmul.f32 0.0078125, %v1714_v15  ;;  %v1726_v17 = vmul.f32 %v1722_v0, %v1722_v0  ;;  %v1721_v18 = vmul.f32 0.0078125, %v1717_v14 }
 0x548   : > { %v1724_v20 = vsub.f32 %v1703_v7, %v1720_v16  ;;  %1730 = vadd.xlane.f32.xlu0 %v1726_v17  ;;  %v1725_v22 = vsub.f32 %v1704_v6, %v1721_v18 }
 0x549   : > { %v1712_v2 = vpop.xlane.xlu0 %1711 }
 0x54a   : > { %v1719_v62 = vmul.f32 0.0078125, %v1712_v2  ;;  %v1728_v21 = vmul.f32 %v1724_v20, %v1724_v20  ;;  %v1729_v24 = vmul.f32 %v1725_v22, %v1725_v22 }
 0x54c   : > { %v1723_v23 = vsub.f32 %v1702_v11, %v1719_v62  ;;  %1734 = vadd.xlane.f32.xlu0 %v1728_v21  ;;  %v1736_v5 = vsel %vm809_vm0, %v1729_v24, 0.0 }
 0x54e   : > { %v1727_v10 = vmul.f32 %v1723_v23, %v1723_v23 }
 0x550   : > { %1732 = vadd.xlane.f32.xlu1 %v1727_v10 }
 0x554   : > { %1737 = vadd.xlane.f32.xlu1 %v1736_v5 }
 0x5d5   : > { %v1731_v25 = vpop.xlane.xlu0 %1730 }
 0x5d6   : > { %v1739_v26 = vmul.f32 0.0078125, %v1731_v25 }
 0x5d8   : > { %v1743_v27 = vadd.f32 1e-05, %v1739_v26 }
 0x5d9   : > { %v1735_v28 = vpop.xlane.xlu0 %1734 }
 0x5da   : > { %v1741_v29 = vmul.f32 0.0078125, %v1735_v28  ;;  %2758 = vrsqrt.f32 %v1743_v27 }
 0x5dc   : > { %v1745_v30 = vadd.f32 1e-05, %v1741_v29 }
 0x5dd   : > { %v1733_v31 = vpop.xlane.xlu1 %1732 }
 0x5de   : > { %2760 = vrsqrt.f32 %v1745_v30  ;;  %v1740_v32 = vmul.f32 0.0078125, %v1733_v31 }
 0x5e0   : > { %v1744_v33 = vadd.f32 1e-05, %v1740_v32 }
 0x5e1   : > { %v1738_v34 = vpop.xlane.xlu1 %1737 }
 0x5e2   : > { %2762 = vrsqrt.f32 %v1744_v33  ;;  %v1742_v36 = vmul.f32 0.0078125, %v1738_v34 }
 0x5e4   : > { %v1746_v38 = vadd.f32 1e-05, %v1742_v36  ;;  %v2759_v40 = vpop.eup %2758 }
 0x5e5   : > { %v1751_v44 = vmul.f32 %v2759_v40, %v1722_v0 }
 0x5e6   : > { %2764 = vrsqrt.f32 %v1746_v38 }
 0x5e7   : > { %v1759_v49 = vmul.f32 %v1758_v43, %v1751_v44 }
 0x5e8   : > { %v2761_v42 = vpop.eup %2760 }
 0x5e9   : > { %v1753_v45 = vmul.f32 %v2761_v42, %v1724_v20  ;;  %v1767_v55 = vadd.f32 %v1766_v46, %v1759_v49 }
 0x5eb   : > { %v1761_v48 = vmul.f32 %v1758_v43, %v1753_v45 }
 0x5ec   : > { %v2763_v47 = vpop.eup %2762 }
 0x5ed   : > { %v1769_v50 = vadd.f32 %v1766_v46, %v1761_v48  ;;  %v1752_v51 = vmul.f32 %v2763_v47, %v1723_v23 }
 0x5ef   : > { %v1915_v52 = vpack.c.bf16 %v1769_v50, %v1769_v50  ;;  %v1760_v53 = vmul.f32 %v1758_v43, %v1752_v51 }
 0x5f0   : > { %v2765_v54 = vpop.eup %2764 }
 0x5f1   : > { %1789 = vst [vmem:[%s359_s15 + $0x8] sm:$0xf] %v1915_v52  ;;  %v1768_v56 = vadd.f32 %v1766_v46, %v1760_v53  ;;  %v1754_v57 = vmul.f32 %v2765_v54, %v1725_v22 }
 0x5f3   : > { %v2080_v58 = vpack.c.bf16 %v1768_v56, %v1767_v55  ;;  %v1762_v59 = vmul.f32 %v1758_v43, %v1754_v57 }
 0x5f5   : > { %2081 = vst [vmem:[%s359_s15] sm:$0xff] %v2080_v58   ;;  %v1770_v19 = vadd.f32 %v1766_v46, %v1762_v59 }
 0x5f7   : > { %v1916_v60 = vpack.c.bf16 %v1770_v19, %v1770_v19 }
 0x5f9   : > { %1790 = vst [vmem:[%s359_s15 + $0xc] sm:$0x7] %v1916_v60 }
 0x5fa PF: > { %s20_s13 = sadd.s32 1, %s2772_s13  }
 0x5fb   : > { %p17_p4 = scmp.ge.s32.totalorder %s20_s13, 4  }
 0x5fd   :  { %19 = sbr.rel (!%p17_p4) target bundleno = 1 (0x1), region = 90 }

// kernel: wav2vec2_forward.5
= control target key start
LH: loop header
LB: loop body
LE: loop exit
PB: predicated region body
PF: predicated region fallthrough
CT: control target
= control target key end

     0   :  { %s5839_s25 = smov 0   ;;  %s6973_s0 = inlined_call_operand.vmem [shape: bf16[60,128], index: 0, kind: input, shape index: {}]   ;;  %s6974_s1 = inlined_call_operand.vmem [shape: bf16[2,128,384], index: 1, kind: input, shape index: {}]   ;;  %s6975_s2 = inlined_call_operand.vmem [shape: bf16[2,1,384], index: 2, kind: input, shape index: {}]   ;;  %s6976_s3 = inlined_call_operand.vmem [shape: bf16[2,128,128], index: 3, kind: input, shape index: {}]   ;;  %s6977_s4 = inlined_call_operand.vmem [shape: bf16[2,1,128], index: 4, kind: input, shape index: {}]   ;;  %s6978_s5 = inlined_call_operand.vmem [shape: bf16[2,1,128], index: 5, kind: input, shape index: {}]   ;;  %s6979_s6 = inlined_call_operand.vmem [shape: bf16[2,1,128], index: 6, kind: input, shape index: {}]   ;;  %s6980_s7 = inlined_call_operand.vmem [shape: bf16[2,128,256], index: 7, kind: input, shape index: {}]   ;;  %s6981_s8 = inlined_call_operand.vmem [shape: bf16[2,1,256], index: 8, kind: input, shape index: {}]   ;;  %s6982_s9 = inlined_call_operand.vmem [shape: bf16[2,256,128], index: 9, kind: input, shape index: {}]   ;;  %s6983_s10 = inlined_call_operand.vmem [shape: bf16[2,1,128], index: 10, kind: input, shape index: {}]   ;;  %s6984_s11 = inlined_call_operand.vmem [shape: bf16[2,1,128], index: 11, kind: input, shape index: {}]   ;;  %s6985_s12 = inlined_call_operand.vmem [shape: bf16[2,1,128], index: 12, kind: input, shape index: {}]   ;;  %s6986_s13 = inlined_call_operand.vmem [shape: bf16[60,128], index: 13, kind: output, shape index: {}]  }
   0x1   :  { %6990 = sst [smem:[#allocation4_spill]] %s6973_s0 }
   0x2   :  { %6991 = sst [smem:[#allocation5_spill]] %s6974_s1 }
   0x3   :  { %6992 = sst [smem:[#allocation6_spill]] %s6975_s2 }
   0x4   :  { %6993 = sst [smem:[#allocation7_spill]] %s6976_s3 }
   0x5   :  { %6994 = sst [smem:[#allocation8_spill]] %s6980_s7 }
   0x6   :  { %6995 = sst [smem:[#allocation9_spill]] %s6986_s13 }
   0x7 LB: > { %6996 = sst [smem:[#allocation3_spill]] %s5762_s25  ;;  %s5845_s26 = sadd.s32 4294967295, %s5762_s25   ;;  %s5762_s25 = sphi %s5839_s25, %s23_s25  }
   0x8   : > { %p4420_p0 = scmp.ge.s32.totalorder %s5762_s25, 1  ;;  %p478_p1 = scmp.lt.s32.totalorder %s5762_s25, 3 }
   0xa   : > { %p479_p2 = pnand %p4420_p0, %p478_p1 }
   0xb   : > { %p558_p3 = scmp.lt.s32.totalorder (!%p479_p2), %s5845_s26, 1  ;;  %s6997_s3 = sld [smem:[#allocation7_spill]] (!%p479_p2) }
   0xc   : > { %482 = sbr.rel (%p479_p2) target bundleno = 5981 (0x175d), region = 72  ;;  %s6998_s1 = sld [smem:[#allocation5_spill]] (!%p479_p2) }
   0xd   : > { %s6999_s2 = sld [smem:[#allocation6_spill]] (!%p479_p2)  ;;  %s7000_s7 = sld [smem:[#allocation8_spill]] (!%p479_p2) }
   0xe   : > { %p4429_p4 = scmp.ne.s32.totalorder (!%p479_p2), %s5845_s26, 0 }
  0x13   : > { %s5851_s27 = scalar_select %p558_p3, %s5845_s26, 1 }
  0x14   : > { %s7001_s21 = sld [smem:[#allocation4_spill]] (!%p4429_p4) }
  0x15   : > { %s5291_s28 = smul.u32 192, %s5851_s27  ;;  %s4609_s29 = sshll.u32 %s5851_s27, 6 }
  0x16   : > { %s5292_s30 = smul.u32 3, %s5851_s27  ;;  %s5859_s16 = scalar_lea.vmem %s6997_s3, %s4609_s29 }
  0x17   : > { %s5864_s19 = scalar_lea.vmem %s6998_s1, %s5291_s28  ;;  %s4610_s17 = sshll.u32 %s5851_s27, 7 }
  0x18   : > { %s5873_s25 = scalar_lea.vmem %s6999_s2, %s5292_s30  ;;  %s5887_s1 = scalar_lea.vmem %s7000_s7, %s4610_s17 }
  0x19   : > { %s4426_s20 = sshll.u32 %s5851_s27, 1  ;;  %s5898_s0 = scalar_lea.vmem %s6982_s9, %s4610_s17 }
  0x1a   : > { %s5893_s30 = scalar_lea.vmem %s6981_s8, %s4426_s20  ;;  %s597_s15 = scalar_lea.vmem %s6983_s10, %s5851_s27  ;;  %v4621_v0 = vld [vmem:[%s7001_s21] sm:$0xff] (!%p4429_p4)   ;;  %v4647_v1 = vld [vmem:[%s7001_s21 + $0x8] sm:$0xff] (!%p4429_p4)   ;;  %v4648_v2 = vld [vmem:[%s7001_s21 + $0x10] sm:$0xff] (!%p4429_p4)  }
  0x1b   : > { %s600_s28 = scalar_lea.vmem %s6984_s11, %s5851_s27  ;;  %s603_s7 = scalar_lea.vmem %s6985_s12, %s5851_s27  ;;  %v4622_v3 = vunpack.c.l.bf16 (!%p4429_p4), %v4621_v0  ;;  %v4623_v4 = vunpack.c.h.bf16 (!%p4429_p4), %v4621_v0  ;;  %v4626_v5 = vunpack.c.l.bf16 (!%p4429_p4), %v4647_v1  ;;  %v4627_v6 = vunpack.c.h.bf16 (!%p4429_p4), %v4647_v1  ;;  %v615_v7 = vld [vmem:[%s7001_s21 + $0x18] sm:$0xf] (!%p4429_p4)  ;;  %v616_v8 = vld [vmem:[%s7001_s21 + $0x1c] sm:$0x3] (!%p4429_p4) }
  0x1c   : > { %608 = sbr.rel (%p4429_p4) target bundleno = 35 (0x23), region = 76  ;;  %v4630_v9 = vunpack.c.l.bf16 (!%p4429_p4), %v4648_v2  ;;  %v4631_v10 = vunpack.c.h.bf16 (!%p4429_p4), %v4648_v2  ;;  %v623_v11 = vunpack.c.l.bf16 (!%p4429_p4), %v615_v7  ;;  %v624_v12 = vunpack.c.l.bf16 (!%p4429_p4), %v616_v8 }
  0x1d   : > { %625 = vst [vmem:[#allocation2] sm:$0xff] (!%p4429_p4), %v4622_v3  ;;  %626 = vst [vmem:[#allocation2 + $0x8] sm:$0xff] (!%p4429_p4), %v4623_v4 }
  0x1e   : > { %627 = vst [vmem:[#allocation2 + $0x10] sm:$0xff] (!%p4429_p4), %v4626_v5  ;;  %628 = vst [vmem:[#allocation2 + $0x18] sm:$0xff] (!%p4429_p4), %v4627_v6 }
  0x1f   : > { %629 = vst [vmem:[#allocation2 + $0x20] sm:$0xff] (!%p4429_p4), %v4630_v9  ;;  %630 = vst [vmem:[#allocation2 + $0x28] sm:$0xff] (!%p4429_p4), %v4631_v10 }
  0x20   : > { %631 = vst [vmem:[#allocation2 + $0x30] sm:$0xff] (!%p4429_p4), %v623_v11  ;;  %632 = vst [vmem:[#allocation2 + $0x38] sm:$0xf] (!%p4429_p4), %v624_v12 }
  0x23 PF: > { %v5476_v13 = vld [vmem:[%s5864_s19 + $0x4] ss:$12 sps:$4 sm:$0xff]   ;;  %v5478_v14 = vld [vmem:[%s5864_s19] ss:$12 sps:$4 sm:$0xff]   ;;  %v5764_v15 = vmov 0   ;;  %v680_v50 = vlaneseq  ;;  %vm973_vm0 = vcmask 261120   ;;  %s7006_s20 = scalar_lea.vmem %s6977_s4, %s5851_s27  ;;  %s7007_s24 = scalar_lea.vmem %s6978_s5, %s5851_s27 }
  0x24   : > { %867 = vmatprep.mubr.bf16.mxu0 %v5764_v15  ;;  %835 = vmatprep.subr.bf16.mxu0 %v5476_v13  ;;  %v5479_v16 = vld [vmem:[%s5864_s19 + $0x1c] ss:$12 sps:$4 sm:$0xff]   ;;  %v5481_v17 = vld [vmem:[%s5864_s19 + $0x18] ss:$12 sps:$4 sm:$0xff]   ;;  %v5482_v18 = vld [vmem:[%s5864_s19 + $0x34] ss:$12 sps:$4 sm:$0xff]   ;;  %s7008_s2 = scalar_lea.vmem %s6979_s6, %s5851_s27 }
  0x25   : > { %836 = vmatpush1.bf16.msra.mxu0 %v5478_v14  ;;  %v5484_v19 = vld [vmem:[%s5864_s19 + $0x30] ss:$12 sps:$4 sm:$0xff]   ;;  %v5485_v20 = vld [vmem:[%s5864_s19 + $0x4c] ss:$12 sps:$4 sm:$0xff]   ;;  %v633_v21 = vld [vmem:[#allocation2] sm:$0xff]  ;;  %v5956_v51 = vshrl.u32 %v680_v50, 7 }
  0x26   : > { %837 = vmatprep.subr.bf16.mxu0 %v5479_v16  ;;  %v5487_v22 = vld [vmem:[%s5864_s19 + $0x48] ss:$12 sps:$4 sm:$0xff]   ;;  %v5488_v24 = vld [vmem:[%s5864_s19 + $0x64] ss:$12 sps:$4 sm:$0xff]   ;;  %v5501_v27 = vld [vmem:[%s5864_s19 + $0x20] ss:$12 sps:$4 sm:$0xff]  }
  0x27   : > { %v634_v23 = vld [vmem:[#allocation2 + $0x8] sm:$0xff]  ;;  %v5502_v30 = vld [vmem:[%s5864_s19 + $0x38] ss:$12 sps:$4 sm:$0xff]   ;;  %v5494_v32 = vld [vmem:[%s5864_s19 + $0x94] ss:$12 sps:$4 sm:$0xff]   ;;  %v5960_v54 = vsub.s32 0, %v5956_v51 }
  0x28   : > { %v673_v25 = vpack.c.bf16 %v634_v23, %v633_v21  ;;  %v5500_v26 = vld [vmem:[%s5864_s19 + $0x8] ss:$12 sps:$4 sm:$0xff]   ;;  %v5490_v28 = vld [vmem:[%s5864_s19 + $0x60] ss:$12 sps:$4 sm:$0xff]   ;;  %v5493_v31 = vld [vmem:[%s5864_s19 + $0x78] ss:$12 sps:$4 sm:$0xff]  }
  0x29   : > { %838 = vmatpush1.bf16.msra.mxu0 %v5481_v17  ;;  %4843 = vmatprep.subr.bf16.mxu1 %v5500_v26  ;;  %v5491_v29 = vld [vmem:[%s5864_s19 + $0x7c] ss:$12 sps:$4 sm:$0xff]   ;;  %v5497_v35 = vld [vmem:[%s5864_s19 + $0xac] ss:$12 sps:$4 sm:$0xff]   ;;  %v635_v40 = vld [vmem:[#allocation2 + $0x10] sm:$0xff]  ;;  %v686_v55 = vsub.s32 2, %v5956_v51 }
  0x2a   : > { %839 = vmatprep.subr.bf16.mxu0 %v5482_v18  ;;  %4859 = vmatprep.mubr.bf16.mxu1 %v673_v25  ;;  %v5503_v33 = vld [vmem:[%s5864_s19 + $0x50] ss:$12 sps:$4 sm:$0xff]   ;;  %v5504_v36 = vld [vmem:[%s5864_s19 + $0x68] ss:$12 sps:$4 sm:$0xff]   ;;  %v5505_v38 = vld [vmem:[%s5864_s19 + $0x80] ss:$12 sps:$4 sm:$0xff]  }
  0x2b   : > { %4844 = vmatpush3.bf16.msra.mxu1 %v5500_v26  ;;  %v5496_v34 = vld [vmem:[%s5864_s19 + $0x90] ss:$12 sps:$4 sm:$0xff]   ;;  %v5499_v37 = vld [vmem:[%s5864_s19 + $0xa8] ss:$12 sps:$4 sm:$0xff]   ;;  %v5506_v39 = vld [vmem:[%s5864_s19 + $0x98] ss:$12 sps:$4 sm:$0xff]  }
  0x2c   : > { %4845 = vmatprep.subr.bf16.mxu1 %v5501_v27  ;;  %v636_v41 = vld [vmem:[#allocation2 + $0x18] sm:$0xff]  ;;  %v637_v44 = vld [vmem:[#allocation2 + $0x20] sm:$0xff]  ;;  %v638_v45 = vld [vmem:[#allocation2 + $0x28] sm:$0xff]  ;;  %v690_v1 = vsub.s32 4, %v5956_v51  ;;  %vm2112_vm2 = vcmask 1041408   ;;  %vm1141_vm3 = vcmask 1045504  }
  0x2d   : > { %840 = vmatpush1.bf16.msra.mxu0 %v5484_v19  ;;  %v5507_v42 = vld [vmem:[%s5864_s19 + $0xb0] ss:$12 sps:$4 sm:$0xff]   ;;  %v674_v43 = vpack.c.bf16 %v636_v41, %v635_v40  ;;  %v675_v46 = vpack.c.bf16 %v638_v45, %v637_v44  ;;  %v640_v48 = vld [vmem:[#allocation2 + $0x38] sm:$0xf]  ;;  %v677_v52 = vld [vmem:[%s5873_s25] sm:$0x7] }
  0x2e   : > { %841 = vmatprep.subr.bf16.mxu0 %v5485_v20  ;;  %v639_v47 = vld [vmem:[#allocation2 + $0x30] sm:$0xff]  ;;  %v678_v53 = vunpack.c.l.bf16 %v677_v52  ;;  %vm5982_vm1 = vmpackc.low %vm973_vm0, %vm973_vm0  ;;  %vm5765_vm4 = vmmov 1   ;;  %vm1083_vm6 = vcmask 244736   ;;  %vm1093_vm7 = vcmask 242688   ;;  %s5766_s25 = smov 96   ;;  %s5767_s19 = smov 64  }
  0x2f   : > { %4846 = vmatpush3.bf16.msra.mxu1 %v5501_v27  ;;  %v676_v49 = vpack.c.bf16 %v640_v48, %v639_v47  ;;  %vm6041_vm5 = vmpackc.low %vm1141_vm3, %vm5765_vm4  ;;  %s5768_s18 = smov 32   ;;  %v5510_v45 = vld [vmem:[%s5859_s16 + $0x10] sm:$0xff]   ;;  %vm2098_vm8 = vcmask 523264   ;;  %vm2103_vm9 = vcmask 785408   ;;  %vm3450_vm10 = vcmask 1043456   ;;  %p4598_p5 = scmp.ne.s32.totalorder %s5845_s26, 1 }
  0x30   : > { %4847 = vmatprep.subr.bf16.mxu1 %v5502_v30  ;;  %v683_v56 = vrot.slane %v678_v53, %v5960_v54  ;;  %v687_v57 = vrot.slane %v678_v53, %v686_v55  ;;  %v691_v7 = vrot.slane %v678_v53, %v690_v1 }
  0x31   : > { %842 = vmatpush1.bf16.msra.mxu0 %v5487_v22 }
  0x32   : > { %843 = vmatprep.subr.bf16.mxu0 %v5488_v24  ;;  %v5967_v58 = vrot.slane %v683_v56, %v5960_v54  ;;  %v5970_v60 = vrot.slane %v687_v57, %v5960_v54  ;;  %v706_v12 = vrot.slane %v691_v7, %v5960_v54 }
  0x33   : > { %4848 = vmatpush3.bf16.msra.mxu1 %v5502_v30 }
  0x34   : > { %4849 = vmatprep.subr.bf16.mxu1 %v5503_v33 }
  0x35   : > { %844 = vmatpush1.bf16.msra.mxu0 %v5490_v28 }
  0x36   : > { %845 = vmatprep.subr.bf16.mxu0 %v5491_v29 }
  0x37   : > { %4850 = vmatpush3.bf16.msra.mxu1 %v5503_v33 }
  0x38   : > { %4851 = vmatprep.subr.bf16.mxu1 %v5504_v36 }
  0x39   : > { %846 = vmatpush1.bf16.msra.mxu0 %v5493_v31 }
  0x3a   : > { %847 = vmatprep.subr.bf16.mxu0 %v5494_v32 }
  0x3b   : > { %4852 = vmatpush3.bf16.msra.mxu1 %v5504_v36 }
  0x3c   : > { %4853 = vmatprep.subr.bf16.mxu1 %v5505_v38 }
  0x3d   : > { %848 = vmatpush1.bf16.msra.mxu0 %v5496_v34 }
  0x3e   : > { %849 = vmatprep.subr.bf16.mxu0 %v5497_v35 }
  0x3f   : > { %4854 = vmatpush3.bf16.msra.mxu1 %v5505_v38 }
  0x40   : > { %4855 = vmatprep.subr.bf16.mxu1 %v5506_v39 }
  0x41   : > { %850 = vmatpush1.bf16.msra.mxu0 %v5499_v37 }
  0x43   : > { %4856 = vmatpush3.bf16.msra.mxu1 %v5506_v39 }
  0x44   : > { %868 = vmatmul.mubr.bf16.vlgmr.msra.gmra.mrb[0].mxu0 %v673_v25  ;;  %4857 = vmatprep.subr.bf16.mxu1 %v5507_v42 }
  0x45   : > { %877 = vmatprep.mubr.bf16.mxu0 %v5764_v15 }
  0x47   : > { %4858 = vmatpush3.bf16.msra.mxu1 %v5507_v42 }
  0x4a   : > { %4860 = vmatmul.mubr.bf16.vlgmr.msra.gmra.mrb[0].mxu1 %v674_v43 }
  0x4b   : > { %4863 = vmatprep.mubr.bf16.mxu1 %v675_v46 }
  0x4c   : > { %878 = vmatmul.mubr.bf16.gmra.mrb[4].mxu0 %v674_v43 }
  0x4d   : > { %887 = vmatprep.mubr.bf16.mxu0 %v5764_v15 }
  0x52   : > { %4864 = vmatmul.mubr.bf16.gmra.mrb[4].mxu1 %v676_v49 }
  0x54   : > { %888 = vmatmul.mubr.bf16.gmra.mrb[8].mxu0 %v675_v46 }
  0x55   : > { %897 = vmatprep.mubr.bf16.mxu0 %v5764_v15 }
  0x5c   : > { %898 = vmatmul.mubr.bf16.gmra.mrb[12].mxu0 %v676_v49 }
 0x117   : > { %v869_v59 = vpop.f32.mrb[0].mxu0 }
 0x118   : > { %v5973_v61 = vadd.f32 %v869_v59, %v5967_v58  ;;  %v871_v62 = vpop.f32.mrb[1].mxu0 }
 0x119   : > { %v873_v63 = vpop.f32.mrb[2].mxu0  ;;  %v872_v2 = vadd.f32 %v871_v62, %v5970_v60 }
 0x11a   : > { %v875_v0 = vpop.f32.mrb[3].mxu0  ;;  %4875 = vmatprep.mubr.msk.f32.mxu1 %vm973_vm0, %v5973_v61  ;;  %v6024_v39 = vadd.f32 %v873_v63, %v5967_v58 }
 0x11b   : > { %v876_v3 = vadd.f32 %v875_v0, %v5970_v60 }
 0x11d   : > { %v5115_v5 = vpack.c.bf16 %v876_v3, %v872_v2  ;;  %v5986_v6 = vpack.i.bf16 %v876_v3, %v872_v2  ;;  %v4861_v16 = vpop.f32.mrb[0].mxu1 }
 0x11e   : > { %v942_v18 = vpop.f32.mrb[1].mxu1  ;;  %v6009_v29 = vadd.f32 %v4861_v16, %v706_v12 }
 0x11f   : > { %v879_v8 = vpop.f32.mrb[4].mxu0  ;;  %5117 = vmatprep.subr.msk.bf16.mxu1 %vm5982_vm1, %v5115_v5  ;;  %v5997_v20 = vadd.f32 %v942_v18, %v706_v12  ;;  %v4862_v21 = vpop.f32.mrb[2].mxu1 }
 0x120   : > { %v881_v9 = vpop.f32.mrb[5].mxu0  ;;  %5120 = vmatpush3.bf16.xpose.msk.msra.mxu1 %vm5982_vm1, %v5115_v5  ;;  %v945_v23 = vpop.f32.mrb[3].mxu1  ;;  %v6011_v30 = vadd.f32 %v4862_v21, %v706_v12  ;;  %v6031_v43 = vadd.f32 %v879_v8, %v5967_v58 }
 0x121   : > { %v883_v10 = vpop.f32.mrb[6].mxu0  ;;  %v882_v13 = vadd.f32 %v881_v9, %v5970_v60  ;;  %v6006_v26 = vadd.f32 %v945_v23, %v706_v12 }
 0x122   : > { %v885_v11 = vpop.f32.mrb[7].mxu0  ;;  %v5131_v42 = vpack.c.bf16 %v6011_v30, %v6009_v29  ;;  %v6057_v49 = vadd.f32 %v883_v10, %v5967_v58  ;;  %v2284_v5 = vrot.slane %v6011_v30, 6 }
 0x123   : > { %v886_v14 = vadd.f32 %v885_v11, %v5970_v60  ;;  %v5127_v33 = vpack.c.bf16 %v6006_v26, %v5997_v20 }
 0x125   : > { %v5121_v17 = vpack.c.bf16 %v886_v14, %v882_v13  ;;  %v5995_v19 = vpack.i.bf16 %v886_v14, %v882_v13  ;;  %v2126_v34 = vrot.slane %v886_v14, 6  ;;  %v4865_v50 = vpop.f32.mrb[4].mxu1 }
 0x126   : > { %v967_v52 = vadd.f32 %v4865_v50, %v706_v12  ;;  %v958_v53 = vpop.f32.mrb[5].mxu1 }
 0x127   : > { %v889_v22 = vpop.f32.mrb[8].mxu0  ;;  %5123 = vmatprep.subr.msk.bf16.mxu1 %vm5982_vm1, %v5121_v17  ;;  %v959_v56 = vadd.f32 %v958_v53, %v706_v12  ;;  %v4866_v57 = vpop.f32.mrb[6].mxu1 }
 0x128   : > { %v6002_v24 = vadd.f32 %v889_v22, %v5967_v58  ;;  %v891_v25 = vpop.f32.mrb[9].mxu0  ;;  %5126 = vmatpush3.bf16.xpose.msk.msra.mxu1 %vm5982_vm1, %v5121_v17  ;;  %v2289_v59 = vrot.slane %v967_v52, 6  ;;  %v970_v62 = vadd.f32 %v4866_v57, %v706_v12  ;;  %v961_v63 = vpop.f32.mrb[7].mxu1 }
 0x129   : > { %v892_v27 = vadd.f32 %v891_v25, %v5970_v60  ;;  %v893_v28 = vpop.f32.mrb[10].mxu0  ;;  %5128 = vmatprep.subr.bf16.mxu1 %v5127_v33  ;;  %v2285_v0 = vrot.slane %v959_v56, 6  ;;  %v962_v1 = vadd.f32 %v961_v63, %v706_v12 }
 0x12a   : > { %v6014_v31 = vadd.f32 %v893_v28, %v5967_v58  ;;  %v895_v32 = vpop.f32.mrb[11].mxu0  ;;  %v2114_v37 = vrot.slane %v6002_v24, 6  ;;  %v2291_v2 = vrot.slane %v970_v62, 6 }
 0x12b   : > { %v2127_v35 = vrot.slane %v892_v27, 6  ;;  %v6019_v36 = vadd.f32 %v895_v32, %v5970_v60  ;;  %v2287_v3 = vrot.slane %v962_v1, 6  ;;  %v2286_v10 = vsel %vm2112_vm2, %v2284_v5, %v2285_v0 }
 0x12c   : > { %v2116_v38 = vrot.slane %v6014_v31, 6  ;;  %v2292_v7 = vsel %vm2112_vm2, %v2289_v59, %v2291_v2 }
 0x12d   : > { %v2128_v40 = vsel %vm2112_vm2, %v2126_v34, %v2127_v35  ;;  %v2129_v41 = vrot.slane %v6019_v36, 6  ;;  %v2288_v8 = vsel %vm2112_vm2, %v2285_v0, %v2287_v3  ;;  %v2290_v9 = vsel %vm2112_vm2, %v2287_v3, %v2289_v59 }
 0x12e   : > { %v6038_v44 = vsel %vm2112_vm2, %v2114_v37, %v2116_v38  ;;  %v6070_v11 = vpack.c.bf16 %v2288_v8, %v2286_v10  ;;  %v6072_v13 = vpack.i.bf16 %v2288_v8, %v2286_v10  ;;  %v6074_v14 = vpack.c.bf16 %v2292_v7, %v2290_v9 }
 0x12f   : > { %v2130_v46 = vsel %vm2112_vm2, %v2127_v35, %v2129_v41  ;;  %4876 = vmatmul.mubr.msk.f32.vlgmr.msra.gmra.mrb[8].mxu1 %vm973_vm0, %v6024_v39  ;;  %v6076_v16 = vpack.i.bf16 %v2292_v7, %v2290_v9 }
 0x130   : > { %4878 = vmatprep.mubr.msk.f32.mxu1 %vm973_vm0, %v6031_v43  ;;  %5130 = vmatpush3.bf16.msra.mxu1 %v5127_v33  ;;  %v6052_v47 = vpack.c.bf16 %v2130_v46, %v2128_v40  ;;  %v6054_v48 = vpack.i.bf16 %v2130_v46, %v2128_v40 }
 0x131   : > { %5133 = vmatprep.subr.msk.bf16.mxu1 %vm6041_vm5, %v5131_v42 }
 0x133   : > { %4879 = vmatmul.mubr.msk.f32.gmra.mrb[10].mxu1 %vm973_vm0, %v6057_v49 }
 0x134   : > { %5136 = vmatpush3.bf16.msk.msra.mxu1 %vm6041_vm5, %v5131_v42 }
 0x202   : > { %v4877_v12 = vpop.f32.mrb[8].mxu1 }
 0x203   : > { %v1064_v17 = vpop.f32.mrb[9].mxu1  ;;  %v1087_v23 = vsel %vm1083_vm6, %v4877_v12, -inf }
 0x204   : > { %v1084_v18 = vsel %vm1083_vm6, %v1064_v17, -inf }
 0x205   : > { %1085 = vmax.xlane.f32.xlu0 %v1084_v18 }
 0x206   : > { %v4880_v21 = vpop.f32.mrb[10].mxu1 }
 0x207   : > { %v1074_v22 = vpop.f32.mrb[11].mxu1  ;;  %v1094_v27 = vsel %vm1093_vm7, %v4880_v21, -inf }
 0x208   : > { %v1090_v25 = vsel %vm1083_vm6, %v1074_v22, -inf }
 0x209   : > { %1088 = vmax.xlane.f32.xlu0 %v1087_v23  ;;  %1091 = vmax.xlane.f32.xlu1 %v1090_v25 }
 0x20d   : > { %1095 = vmax.xlane.f32.xlu1 %v1094_v27 }
 0x292   : > { %v1086_v28 = vpop.xlane.xlu0 %1085 }
 0x293   : > { %v1097_v32 = vsub.f32 %v1064_v17, %v1086_v28 }
 0x295   : > { %v1101_v33 = vmul.f32 1.442695, %v1097_v32 }
 0x296   : > { %v1089_v34 = vpop.xlane.xlu0 %1088  ;;  %v1092_v35 = vpop.xlane.xlu1 %1091 }
 0x297   : > { %5556 = vpow2.f32 %v1101_v33  ;;  %v1098_v40 = vsub.f32 %v4877_v12, %v1089_v34  ;;  %v1099_v42 = vsub.f32 %v1074_v22, %v1092_v35 }
 0x299   : > { %v1103_v46 = vmul.f32 1.442695, %v1098_v40  ;;  %v1105_v50 = vmul.f32 1.442695, %v1099_v42 }
 0x29a   : > { %v1096_v52 = vpop.xlane.xlu1 %1095 }
 0x29b   : > { %5558 = vpow2.f32 %v1103_v46  ;;  %v1100_v53 = vsub.f32 %v4880_v21, %v1096_v52 }
 0x29c   : > { %5560 = vpow2.f32 %v1105_v50 }
 0x29d   : > { %v1107_v56 = vmul.f32 1.442695, %v1100_v53 }
 0x29f   : > { %5562 = vpow2.f32 %v1107_v56 }
 0x2a1   : > { %v5557_v57 = vpop.eup %5556 }
 0x2a2   : > { %v1109_v59 = vsel %vm1083_vm6, %v5557_v57, 0.0 }
 0x2a3   : > { %1110 = vadd.xlane.f32.xlu0 %v1109_v59 }
 0x2a5   : > { %v5559_v62 = vpop.eup %5558 }
 0x2a6   : > { %v5561_v63 = vpop.eup %5560  ;;  %v1112_v0 = vsel %vm1083_vm6, %v5559_v62, 0.0 }
 0x2a7   : > { %1113 = vadd.xlane.f32.xlu1 %v1112_v0  ;;  %v1115_v1 = vsel %vm1083_vm6, %v5561_v63, 0.0 }
 0x2a8   : > { %1116 = vadd.xlane.f32.xlu0 %v1115_v1 }
 0x2a9   : > { %v5563_v2 = vpop.eup %5562 }
 0x2aa   : > { %v1118_v3 = vsel %vm1093_vm7, %v5563_v2, 0.0 }
 0x2ab   : > { %1119 = vadd.xlane.f32.xlu1 %v1118_v3 }
 0x2bc   : > { %5312 = vrot.lane.b32.xlu1 %v5995_v19, %s5766_s25 }
 0x2be   : > { %5307 = vrot.lane.b32.xlu0 %v5986_v6, %s5766_s25 }
 0x2c0   : > { %5317 = vrot.lane.b32.xlu1 %v5986_v6, %s5767_s19 }
 0x2c2   : > { %1232 = vrot.lane.b32.xlu0 %v6024_v39, %s5766_s25 }
 0x2c4   : > { %1230 = vrot.lane.b32.xlu1 %v5973_v61, %s5766_s25 }
 0x2c6   : > { %1234 = vrot.lane.b32.xlu0 %v6031_v43, %s5766_s25 }
 0x2c8   : > { %5322 = vrot.lane.b32.xlu1 %v5995_v19, %s5767_s19 }
 0x2ca   : > { %1504 = vrot.lane.b32.xlu0 %v5973_v61, %s5767_s19 }
 0x2cc   : > { %1236 = vrot.lane.b32.xlu1 %v6057_v49, %s5766_s25 }
 0x2ce   : > { %1508 = vrot.lane.b32.xlu0 %v6031_v43, %s5767_s19 }
 0x2d0   : > { %1506 = vrot.lane.b32.xlu1 %v6024_v39, %s5767_s19 }
 0x2d4   : > { %1510 = vrot.lane.b32.xlu1 %v6057_v49, %s5767_s19 }
 0x330   : > { %v1111_v5 = vpop.xlane.xlu0 %1110 }
 0x331   : > { %5564 = vrcp.f32 %v1111_v5 }
 0x334   : > { %v1114_v7 = vpop.xlane.xlu1 %1113 }
 0x335   : > { %v1117_v8 = vpop.xlane.xlu0 %1116  ;;  %5566 = vrcp.f32 %v1114_v7 }
 0x336   : > { %5568 = vrcp.f32 %v1117_v8 }
 0x338   : > { %v1120_v9 = vpop.xlane.xlu1 %1119 }
 0x339   : > { %v5308_v10 = vpop.permute.xlu0 %5307  ;;  %5570 = vrcp.f32 %v1120_v9  ;;  %v899_v9 = vpop.f32.mrb[12].mxu0 }
 0x33a   : > { %v5310_v12 = vunpack.i.h.bf16 %v5308_v10  ;;  %v5309_v17 = vunpack.i.l.bf16 %v5308_v10  ;;  %v900_v10 = vadd.f32 %v899_v9, %v5967_v58 }
 0x33b   : > { %v5565_v18 = vpop.eup %5564 }
 0x33c   : > { %v5137_v21 = vpack.c.bf16 %v5310_v12, %v5309_v17  ;;  %v5313_v22 = vpop.permute.xlu1 %5312  ;;  %v1122_v23 = vmul.f32 %v5565_v18, %v5557_v57  ;;  %v901_v12 = vpop.f32.mrb[13].mxu0 }
 0x33d   : > { %v1233_v25 = vpop.permute.xlu0 %1232  ;;  %v5315_v27 = vunpack.i.h.bf16 %v5313_v22  ;;  %v5314_v28 = vunpack.i.l.bf16 %v5313_v22  ;;  %v903_v17 = vpop.f32.mrb[14].mxu0 }
 0x33e   : > { %5139 = vmatprep.subr.msk.bf16.mxu1 %vm5982_vm1, %v5137_v21  ;;  %4889 = vmatprep.mubr.msk.f32.mxu1 %vm1083_vm6, %v1122_v23  ;;  %v905_v18 = vpop.f32.mrb[15].mxu0  ;;  %v2118_v23 = vrot.slane %v900_v10, 6 }
 0x33f   : > { %v5567_v32 = vpop.eup %5566  ;;  %v5143_v52 = vpack.c.bf16 %v5315_v27, %v5314_v28  ;;  %v906_v22 = vadd.f32 %v905_v18, %v5970_v60 }
 0x340   : > { %v5569_v33 = vpop.eup %5568  ;;  %v1124_v34 = vmul.f32 %v5567_v32, %v5559_v62  ;;  %v5318_v35 = vpop.permute.xlu1 %5317 }
 0x341   : > { %v1235_v40 = vpop.permute.xlu0 %1234  ;;  %v5320_v42 = vunpack.i.h.bf16 %v5318_v35  ;;  %v5319_v46 = vunpack.i.l.bf16 %v5318_v35  ;;  %v1126_v50 = vmul.f32 %v5569_v33, %v5561_v63  ;;  %v2133_v27 = vrot.slane %v906_v22, 6 }
 0x342   : > { %4890 = vmatmul.mubr.msk.f32.vlgmr.msra.gmra.mrb[12].mxu1 %vm1083_vm6, %v1124_v34  ;;  %v904_v33 = vadd.f32 %v903_v17, %v5967_v58  ;;  %v6149_v34 = vsel %vm2112_vm2, %v2116_v38, %v2118_v23 }
 0x343   : > { %v5571_v53 = vpop.eup %5570  ;;  %v5159_v56 = vpack.c.bf16 %v5320_v42, %v5319_v46  ;;  %5142 = vmatpush3.bf16.xpose.msk.msra.mxu1 %vm5982_vm1, %v5137_v21  ;;  %4892 = vmatprep.mubr.msk.f32.mxu1 %vm1083_vm6, %v1126_v50  ;;  %v902_v21 = vadd.f32 %v901_v12, %v5970_v60 }
 0x344   : > { %5145 = vmatprep.subr.msk.bf16.mxu1 %vm5982_vm1, %v5143_v52  ;;  %v1231_v57 = vpop.permute.xlu1 %1230  ;;  %v1128_v59 = vmul.f32 %v5571_v53, %v5563_v2  ;;  %v2120_v60 = vrot.slane %v904_v33, 6 }
 0x345   : > { %v1505_v62 = vpop.permute.xlu0 %1504  ;;  %5161 = vmatprep.subr.msk.bf16.mxu0 %vm5982_vm1, %v5159_v56 }
 0x346   : > { %4931 = vmatprep.mubr.msk.f32.mxu0 %vm973_vm0, %v1505_v62  ;;  %4893 = vmatmul.mubr.msk.f32.gmra.mrb[14].mxu1 %vm1083_vm6, %v1128_v59  ;;  %v6156_v42 = vsel %vm2112_vm2, %v2118_v23, %v2120_v60  ;;  %v6184_v60 = vpack.i.bf16 %v6011_v30, %v6009_v29 }
 0x347   : > { %5164 = vmatpush3.bf16.xpose.msk.msra.mxu0 %vm5982_vm1, %v5159_v56  ;;  %4903 = vmatprep.mubr.msk.f32.mxu1 %vm973_vm0, %v1231_v57 }
 0x348   : > { %v5323_v63 = vpop.permute.xlu1 %5322 }
 0x349   : > { %v5325_v0 = vunpack.i.h.bf16 %v5323_v63  ;;  %v5324_v1 = vunpack.i.l.bf16 %v5323_v63  ;;  %v1509_v7 = vpop.permute.xlu0 %1508 }
 0x34b   : > { %v5165_v3 = vpack.c.bf16 %v5325_v0, %v5324_v1  ;;  %5148 = vmatpush3.bf16.xpose.msk.msra.mxu1 %vm5982_vm1, %v5143_v52 }
 0x34c   : > { %v1237_v2 = vpop.permute.xlu1 %1236 }
 0x34d   : > { %5167 = vmatprep.subr.msk.bf16.mxu0 %vm5982_vm1, %v5165_v3 }
 0x34f   : > { %5170 = vmatpush3.bf16.xpose.msk.msra.mxu0 %vm5982_vm1, %v5165_v3 }
 0x350   : > { %v1507_v5 = vpop.permute.xlu1 %1506 }
 0x352   : > { %4904 = vmatmul.mubr.msk.f32.vlgmr.msra.gmra.mrb[16].mxu1 %vm973_vm0, %v1233_v25  ;;  %v2131_v25 = vrot.slane %v902_v21, 6 }
 0x353   : > { %4906 = vmatprep.mubr.msk.f32.mxu1 %vm973_vm0, %v1235_v40 }
 0x354   : > { %v1511_v8 = vpop.permute.xlu1 %1510  ;;  %v2132_v28 = vsel %vm2112_vm2, %v2129_v41, %v2131_v25  ;;  %v2134_v32 = vsel %vm2112_vm2, %v2131_v25, %v2133_v27 }
 0x355   : > { %v6151_v35 = vpack.c.bf16 %v2134_v32, %v2132_v28  ;;  %v6153_v40 = vpack.i.bf16 %v2134_v32, %v2132_v28 }
 0x356   : > { %4907 = vmatmul.mubr.msk.f32.gmra.mrb[18].mxu1 %vm973_vm0, %v1237_v2  ;;  %4932 = vmatmul.mubr.msk.f32.vlgmr.msra.gmra.mrb[16].mxu0 %vm973_vm0, %v1507_v5 }
 0x357   : > { %4934 = vmatprep.mubr.msk.f32.mxu0 %vm973_vm0, %v1509_v7 }
 0x35a   : > { %4935 = vmatmul.mubr.msk.f32.gmra.mrb[18].mxu0 %vm973_vm0, %v1511_v8 }
 0x415   : > { %v6158_v36 = vpop.f32.mrb[12].mxu1 }
 0x416   : > { %v6160_v41 = vpop.f32.mrb[13].mxu1 }
 0x419   : > { %v6162_v46 = vpop.f32.mrb[14].mxu1 }
 0x41a   : > { %v6164_v58 = vpop.f32.mrb[15].mxu1 }
 0x425   : > { %v4905_v31 = vpop.f32.mrb[16].mxu1 }
 0x426   : > { %v1328_v50 = vpop.f32.mrb[17].mxu1  ;;  %v1350_v38 = vsel %vm1083_vm6, %v4905_v31, -inf }
 0x427   : > { %1351 = vmax.xlane.f32.xlu1 %v1350_v38  ;;  %v1347_v52 = vsel %vm1083_vm6, %v1328_v50, -inf }
 0x428   : > { %1348 = vmax.xlane.f32.xlu0 %v1347_v52  ;;  %v6190_v52 = vpack.i.bf16 %v6006_v26, %v5997_v20 }
 0x429   : > { %v4908_v53 = vpop.f32.mrb[18].mxu1  ;;  %v4933_v56 = vpop.f32.mrb[16].mxu0 }
 0x42a   : > { %v1338_v57 = vpop.f32.mrb[19].mxu1  ;;  %v1602_v59 = vpop.f32.mrb[17].mxu0  ;;  %v1624_v62 = vsel %vm1083_vm6, %v4933_v56, -inf  ;;  %v1356_v63 = vsel %vm1093_vm7, %v4908_v53, -inf }
 0x42b   : > { %1625 = vmax.xlane.f32.xlu1 %v1624_v62  ;;  %v1353_v2 = vsel %vm1083_vm6, %v1338_v57, -inf  ;;  %v1621_v5 = vsel %vm1083_vm6, %v1602_v59, -inf }
 0x42c   : > { %1357 = vmax.xlane.f32.xlu0 %v1356_v63 }
 0x42d   : > { %v4936_v0 = vpop.f32.mrb[18].mxu0 }
 0x42e   : > { %v1612_v1 = vpop.f32.mrb[19].mxu0  ;;  %v1630_v3 = vsel %vm1093_vm7, %v4936_v0, -inf }
 0x42f   : > { %1631 = vmax.xlane.f32.xlu1 %v1630_v3  ;;  %v1627_v7 = vsel %vm1083_vm6, %v1612_v1, -inf }
 0x430   : > { %1354 = vmax.xlane.f32.xlu0 %v1353_v2 }
 0x434   : > { %1622 = vmax.xlane.f32.xlu0 %v1621_v5 }
 0x438   : > { %1628 = vmax.xlane.f32.xlu0 %v1627_v7 }
 0x4b4   : > { %v1352_v8 = vpop.xlane.xlu1 %1351 }
 0x4b5   : > { %v1349_v9 = vpop.xlane.xlu0 %1348 }
 0x4b6   : > { %v1359_v5 = vsub.f32 %v1328_v50, %v1349_v9 }
 0x4b8   : > { %v1626_v10 = vpop.xlane.xlu1 %1625 }
 0x4b9   : > { %v1634_v12 = vsub.f32 %v4933_v56, %v1626_v10  ;;  %v1358_v17 = vpop.xlane.xlu0 %1357  ;;  %v1363_v10 = vmul.f32 1.442695, %v1359_v5 }
 0x4ba   : > { %v1362_v2 = vsub.f32 %v4908_v53, %v1358_v17 }
 0x4bb   : > { %v1639_v18 = vmul.f32 1.442695, %v1634_v12 }
 0x4bc   : > { %v1632_v63 = vpop.xlane.xlu1 %1631  ;;  %v1369_v30 = vmul.f32 1.442695, %v1362_v2 }
 0x4bd   : > { %5572 = vpow2.f32 %v1639_v18  ;;  %v1355_v21 = vpop.xlane.xlu0 %1354  ;;  %v1636_v29 = vsub.f32 %v4936_v0, %v1632_v63 }
 0x4be   : > { %v1361_v20 = vsub.f32 %v1338_v57, %v1355_v21 }
 0x4bf   : > { %v1643_v7 = vmul.f32 1.442695, %v1636_v29 }
 0x4c1   : > { %v1623_v22 = vpop.xlane.xlu0 %1622 }
 0x4c2   : > { %v1633_v23 = vsub.f32 %v1602_v59, %v1623_v22  ;;  %v1360_v59 = vsub.f32 %v4905_v31, %v1352_v8 }
 0x4c4   : > { %v1637_v25 = vmul.f32 1.442695, %v1633_v23  ;;  %v1365_v3 = vmul.f32 1.442695, %v1360_v59 }
 0x4c5   : > { %v1629_v38 = vpop.xlane.xlu0 %1628 }
 0x4c6   : > { %5574 = vpow2.f32 %v1637_v25  ;;  %v1635_v56 = vsub.f32 %v1612_v1, %v1629_v38  ;;  %v1367_v1 = vmul.f32 1.442695, %v1361_v20 }
 0x4c7   : > { %v6174_v27 = vpop.eup %5572 }
 0x4c8   : > { %v1648_v28 = vsel %vm1083_vm6, %v6174_v27, 0.0  ;;  %v1641_v62 = vmul.f32 1.442695, %v1635_v56 }
 0x4c9   : > { %1649 = vadd.xlane.f32.xlu1 %v1648_v28 }
 0x4ca   : > { %5576 = vpow2.f32 %v1641_v62 }
 0x4cb   : > { %5578 = vpow2.f32 %v1365_v3 }
 0x4cc   : > { %5580 = vpow2.f32 %v1369_v30 }
 0x4cd   : > { %5582 = vpow2.f32 %v1643_v7 }
 0x4ce   : > { %5584 = vpow2.f32 %v1363_v10 }
 0x4cf   : > { %5586 = vpow2.f32 %v1367_v1 }
 0x4d0   : > { %v6178_v32 = vpop.eup %5574 }
 0x4d1   : > { %v1645_v33 = vsel %vm1083_vm6, %v6178_v32, 0.0 }
 0x4d2   : > { %1646 = vadd.xlane.f32.xlu0 %v1645_v33 }
 0x4d4   : > { %v6194_v26 = vpop.eup %5576 }
 0x4d5   : > { %v1651_v31 = vsel %vm1083_vm6, %v6194_v26, 0.0  ;;  %v6198_v8 = vpop.eup %5578 }
 0x4d6   : > { %v1374_v53 = vsel %vm1083_vm6, %v6198_v8, 0.0  ;;  %v6202_v50 = vpop.eup %5580 }
 0x4d7   : > { %v6204_v0 = vpop.eup %5582  ;;  %v1380_v57 = vsel %vm1093_vm7, %v6202_v50, 0.0 }
 0x4d8   : > { %v1654_v9 = vsel %vm1093_vm7, %v6204_v0, 0.0  ;;  %v5585_v12 = vpop.eup %5584 }
 0x4d9   : > { %v1371_v17 = vsel %vm1083_vm6, %v5585_v12, 0.0  ;;  %v6211_v18 = vpop.eup %5586 }
 0x4da   : > { %5332 = vrot.lane.b32.xlu1 %v6184_v60, %s5766_s25  ;;  %v1377_v21 = vsel %vm1083_vm6, %v6211_v18, 0.0 }
 0x4e8   : > { %5327 = vrot.lane.b32.xlu0 %v6190_v52, %s5766_s25 }
 0x4fe   : > { %1652 = vadd.xlane.f32.xlu1 %v1651_v31 }
 0x502   : > { %1375 = vadd.xlane.f32.xlu1 %v1374_v53 }
 0x506   : > { %1381 = vadd.xlane.f32.xlu1 %v1380_v57 }
 0x507   : > { %1655 = vadd.xlane.f32.xlu0 %v1654_v9 }
 0x50b   : > { %1372 = vadd.xlane.f32.xlu0 %v1371_v17 }
 0x50f   : > { %1378 = vadd.xlane.f32.xlu0 %v1377_v21 }
 0x517   : > { %5342 = vrot.lane.b32.xlu1 %v6184_v60, %s5767_s19 }
 0x51b   : > { %5347 = vrot.lane.b32.xlu1 %v5986_v6, %s5768_s18 }
 0x51f   : > { %5352 = vrot.lane.b32.xlu1 %v5995_v19, %s5768_s18 }
 0x523   : > { %1777 = vrot.lane.b32.xlu1 %v6024_v39, %s5768_s18 }
 0x525   : > { %5337 = vrot.lane.b32.xlu0 %v6190_v52, %s5767_s19 }
 0x527   : > { %1781 = vrot.lane.b32.xlu1 %v6057_v49, %s5768_s18 }
 0x529   : > { %1775 = vrot.lane.b32.xlu0 %v5973_v61, %s5768_s18 }
 0x52d   : > { %1779 = vrot.lane.b32.xlu0 %v6031_v43, %s5768_s18 }
 0x556   : > { %v1650_v22 = vpop.xlane.xlu1 %1649 }
 0x55a   : > { %v5333_v23 = vpop.permute.xlu1 %5332 }
 0x55b   : > { %v5335_v19 = vunpack.i.h.bf16 %v5333_v23  ;;  %v5334_v28 = vunpack.i.l.bf16 %v5333_v23 }
 0x55d   : > { %v5153_v56 = vpack.c.bf16 %v5335_v19, %v5334_v28 }
 0x55f   : > { %v1647_v6 = vpop.xlane.xlu0 %1646 }
 0x563   : > { %v5328_v25 = vpop.permute.xlu0 %5327 }
 0x564   : > { %v5330_v33 = vunpack.i.h.bf16 %v5328_v25  ;;  %v5329_v39 = vunpack.i.l.bf16 %v5328_v25 }
 0x566   : > { %v5149_v38 = vpack.c.bf16 %v5330_v33, %v5329_v39 }
 0x568   : > { %5150 = vmatprep.subr.bf16.mxu1 %v5149_v38 }
 0x569   : > { %5152 = vmatpush3.bf16.msra.mxu1 %v5149_v38 }
 0x56a   : > { %5155 = vmatprep.subr.msk.bf16.mxu1 %vm6041_vm5, %v5153_v56 }
 0x56d   : > { %5158 = vmatpush3.bf16.msk.msra.mxu1 %vm6041_vm5, %v5153_v56 }
 0x58b   : > { %v1653_v61 = vpop.xlane.xlu1 %1652 }
 0x58f   : > { %v1376_v43 = vpop.xlane.xlu1 %1375 }
 0x590   : > { %5588 = vrcp.f32 %v1376_v43 }
 0x593   : > { %v1382_v62 = vpop.xlane.xlu1 %1381 }
 0x594   : > { %v1656_v59 = vpop.xlane.xlu0 %1655 }
 0x597   : > { %v5343_v2 = vpop.permute.xlu1 %5342 }
 0x598   : > { %v1373_v63 = vpop.xlane.xlu0 %1372  ;;  %v5345_v20 = vunpack.i.h.bf16 %v5343_v2  ;;  %v5344_v1 = vunpack.i.l.bf16 %v5343_v2 }
 0x599   : > { %5590 = vrcp.f32 %v1373_v63 }
 0x59a   : > { %5592 = vrcp.f32 %v1647_v6  ;;  %v5589_v7 = vpop.eup %5588  ;;  %v5175_v6 = vpack.c.bf16 %v5345_v20, %v5344_v1 }
 0x59b   : > { %5594 = vrcp.f32 %v1382_v62  ;;  %v5348_v53 = vpop.permute.xlu1 %5347  ;;  %v1386_v17 = vmul.f32 %v5589_v7, %v6198_v8 }
 0x59c   : > { %v1379_v3 = vpop.xlane.xlu0 %1378  ;;  %v5350_v23 = vunpack.i.h.bf16 %v5348_v53  ;;  %v5349_v25 = vunpack.i.l.bf16 %v5348_v53 }
 0x59d   : > { %5596 = vrcp.f32 %v1379_v3 }
 0x59e   : > { %5598 = vrcp.f32 %v1650_v22  ;;  %v5181_v39 = vpack.c.bf16 %v5350_v23, %v5349_v25 }
 0x59f   : > { %5600 = vrcp.f32 %v1653_v61  ;;  %v5353_v38 = vpop.permute.xlu1 %5352 }
 0x5a0   : > { %v5338_v29 = vpop.permute.xlu0 %5337  ;;  %5602 = vrcp.f32 %v1656_v59  ;;  %v5354_v61 = vunpack.i.l.bf16 %v5353_v38 }
 0x5a1   : > { %v5340_v30 = vunpack.i.h.bf16 %v5338_v29  ;;  %v5339_v5 = vunpack.i.l.bf16 %v5338_v29 }
 0x5a3   : > { %v5591_v10 = vpop.eup %5590  ;;  %v5171_v31 = vpack.c.bf16 %v5340_v30, %v5339_v5 }
 0x5a4   : > { %v1384_v57 = vmul.f32 %v5591_v10, %v5585_v12  ;;  %v5593_v9 = vpop.eup %5592  ;;  %v1776_v59 = vpop.permute.xlu0 %1775 }
 0x5a5   : > { %5172 = vmatprep.subr.bf16.mxu1 %v5171_v31  ;;  %v5595_v21 = vpop.eup %5594  ;;  %v1658_v8 = vmul.f32 %v5593_v9, %v6178_v32  ;;  %v5355_v32 = vunpack.i.h.bf16 %v5353_v38 }
 0x5a6   : > { %4917 = vmatprep.mubr.msk.f32.mxu1 %vm1083_vm6, %v1384_v57  ;;  %v1390_v12 = vmul.f32 %v5595_v21, %v6202_v50 }
 0x5a7   : > { %v5597_v22 = vpop.eup %5596  ;;  %4918 = vmatmul.mubr.msk.f32.vlgmr.msra.gmra.mrb[20].mxu1 %vm1083_vm6, %v1386_v17  ;;  %v5187_v62 = vpack.c.bf16 %v5355_v32, %v5354_v61 }
 0x5a8   : > { %5174 = vmatpush3.bf16.msra.mxu1 %v5171_v31  ;;  %v1388_v19 = vmul.f32 %v5597_v22, %v6211_v18  ;;  %v5599_v28 = vpop.eup %5598 }
 0x5a9   : > { %5177 = vmatprep.subr.msk.bf16.mxu1 %vm6041_vm5, %v5175_v6  ;;  %v5601_v33 = vpop.eup %5600  ;;  %v1660_v18 = vmul.f32 %v5599_v28, %v6174_v27  ;;  %v1778_v27 = vpop.permute.xlu1 %1777 }
 0x5aa   : > { %4920 = vmatprep.mubr.msk.f32.mxu1 %vm1083_vm6, %v1388_v19  ;;  %v5603_v50 = vpop.eup %5602  ;;  %v1662_v56 = vmul.f32 %v5601_v33, %v6194_v26  ;;  %v1780_v26 = vpop.permute.xlu0 %1779 }
 0x5ab   : > { %4921 = vmatmul.mubr.msk.f32.gmra.mrb[22].mxu1 %vm1083_vm6, %v1390_v12  ;;  %v1664_v43 = vmul.f32 %v5603_v50, %v6204_v0 }
 0x5ac   : > { %5180 = vmatpush3.bf16.msk.msra.mxu1 %vm6041_vm5, %v5175_v6  ;;  %4945 = vmatprep.mubr.msk.f32.mxu1 %vm1083_vm6, %v1658_v8 }
 0x5ad   : > { %5183 = vmatprep.subr.msk.bf16.mxu1 %vm5982_vm1, %v5181_v39  ;;  %v1782_v0 = vpop.permute.xlu1 %1781 }
 0x5af   : > { %4946 = vmatmul.mubr.msk.f32.vlgmr.msra.gmra.mrb[24].mxu1 %vm1083_vm6, %v1660_v18 }
 0x5b0   : > { %4948 = vmatprep.mubr.msk.f32.mxu1 %vm1083_vm6, %v1662_v56 }
 0x5b3   : > { %4949 = vmatmul.mubr.msk.f32.gmra.mrb[26].mxu1 %vm1083_vm6, %v1664_v43 }
 0x5b4   : > { %4959 = vmatprep.mubr.msk.f32.mxu1 %vm973_vm0, %v1776_v59 }
 0x5b5   : > { %5186 = vmatpush3.bf16.xpose.msk.msra.mxu1 %vm5982_vm1, %v5181_v39 }
 0x5b6   : > { %5189 = vmatprep.subr.msk.bf16.mxu1 %vm5982_vm1, %v5187_v62 }
 0x5bd   : > { %5192 = vmatpush3.bf16.xpose.msk.msra.mxu1 %vm5982_vm1, %v5187_v62 }
 0x5be   : > { %5216 = vmatprep.subr.bf16.mxu1 %v6070_v11 }
 0x5c4   : > { %4960 = vmatmul.mubr.msk.f32.vlgmr.msra.gmra.mrb[28].mxu1 %vm973_vm0, %v1778_v27 }
 0x5c5   : > { %4962 = vmatprep.mubr.msk.f32.mxu1 %vm973_vm0, %v1780_v26  ;;  %5218 = vmatpush3.bf16.msra.mxu1 %v6070_v11 }
 0x5c6   : > { %5221 = vmatprep.subr.msk.bf16.mxu1 %vm6041_vm5, %v6074_v14 }
 0x5c8   : > { %4963 = vmatmul.mubr.msk.f32.gmra.mrb[30].mxu1 %vm973_vm0, %v1782_v0 }
 0x5c9   : > { %5224 = vmatpush3.bf16.msk.msra.mxu1 %vm6041_vm5, %v6074_v14 }
 0x67a   : > { %v6274_v63 = vpop.f32.mrb[20].mxu1 }
 0x67b   : > { %v6276_v3 = vpop.f32.mrb[21].mxu1 }
 0x67e   : > { %v6278_v2 = vpop.f32.mrb[22].mxu1 }
 0x67f   : > { %v5436_v11 = vpack.i.bf16 %v6278_v2, %v6274_v63  ;;  %v6282_v29 = vpop.f32.mrb[23].mxu1 }
 0x682   : > { %v6284_v30 = vpop.f32.mrb[24].mxu1 }
 0x683   : > { %v6286_v5 = vpop.f32.mrb[25].mxu1 }
 0x686   : > { %v6288_v7 = vpop.f32.mrb[26].mxu1 }
 0x687   : > { %v5446_v14 = vpack.i.bf16 %v6288_v7, %v6284_v30  ;;  %v6292_v10 = vpop.f32.mrb[27].mxu1 }
 0x697   : > { %v4961_v20 = vpop.f32.mrb[28].mxu1 }
 0x698   : > { %v1873_v1 = vpop.f32.mrb[29].mxu1  ;;  %v1895_v31 = vsel %vm1083_vm6, %v4961_v20, -inf }
 0x699   : > { %1896 = vmax.xlane.f32.xlu1 %v1895_v31  ;;  %v1892_v53 = vsel %vm1083_vm6, %v1873_v1, -inf }
 0x69a   : > { %1893 = vmax.xlane.f32.xlu0 %v1892_v53 }
 0x69b   : > { %v4964_v57 = vpop.f32.mrb[30].mxu1 }
 0x69c   : > { %v1883_v9 = vpop.f32.mrb[31].mxu1  ;;  %v1901_v21 = vsel %vm1093_vm7, %v4964_v57, -inf }
 0x69d   : > { %v1898_v17 = vsel %vm1083_vm6, %v1883_v9, -inf }
 0x69e   : > { %1899 = vmax.xlane.f32.xlu0 %v1898_v17 }
 0x6a2   : > { %1902 = vmax.xlane.f32.xlu0 %v1901_v21 }
 0x726   : > { %v1897_v22 = vpop.xlane.xlu1 %1896 }
 0x727   : > { %v1905_v6 = vsub.f32 %v4961_v20, %v1897_v22  ;;  %v1894_v23 = vpop.xlane.xlu0 %1893 }
 0x728   : > { %v1904_v25 = vsub.f32 %v1873_v1, %v1894_v23 }
 0x729   : > { %v1910_v19 = vmul.f32 1.442695, %v1905_v6 }
 0x72a   : > { %v1908_v12 = vmul.f32 1.442695, %v1904_v25 }
 0x72b   : > { %5604 = vpow2.f32 %v1910_v19  ;;  %v1900_v28 = vpop.xlane.xlu0 %1899 }
 0x72c   : > { %5606 = vpow2.f32 %v1908_v12  ;;  %v1906_v8 = vsub.f32 %v1883_v9, %v1900_v28 }
 0x72e   : > { %v1912_v33 = vmul.f32 1.442695, %v1906_v8 }
 0x72f   : > { %v1903_v39 = vpop.xlane.xlu0 %1902 }
 0x730   : > { %5608 = vpow2.f32 %v1912_v33  ;;  %v1907_v18 = vsub.f32 %v4964_v57, %v1903_v39  ;;  %v2113_v33 = vrot.slane %v6057_v49, 6 }
 0x732   : > { %v1914_v38 = vmul.f32 1.442695, %v1907_v18  ;;  %v6321_v39 = vsel %vm2112_vm2, %v2113_v33, %v2114_v37 }
 0x734   : > { %5610 = vpow2.f32 %v1914_v38 }
 0x735   : > { %v5605_v50 = vpop.eup %5604 }
 0x736   : > { %v5607_v56 = vpop.eup %5606  ;;  %v1919_v32 = vsel %vm1083_vm6, %v5605_v50, 0.0 }
 0x737   : > { %1920 = vadd.xlane.f32.xlu1 %v1919_v32  ;;  %v1916_v61 = vsel %vm1083_vm6, %v5607_v56, 0.0 }
 0x738   : > { %1917 = vadd.xlane.f32.xlu0 %v1916_v61 }
 0x73a   : > { %v5609_v43 = vpop.eup %5608 }
 0x73b   : > { %v1922_v59 = vsel %vm1083_vm6, %v5609_v43, 0.0 }
 0x73c   : > { %1923 = vadd.xlane.f32.xlu0 %v1922_v59 }
 0x73e   : > { %v5611_v62 = vpop.eup %5610 }
 0x73f   : > { %v1925_v27 = vsel %vm1093_vm7, %v5611_v62, 0.0 }
 0x740   : > { %1926 = vadd.xlane.f32.xlu1 %v1925_v27 }
 0x751   : > { %5362 = vrot.lane.b32.xlu1 %v6184_v60, %s5768_s18 }
 0x752   : > { %5357 = vrot.lane.b32.xlu0 %v6190_v52, %s5768_s18 }
 0x7c4   : > { %v1921_v0 = vpop.xlane.xlu1 %1920 }
 0x7c5   : > { %v1918_v26 = vpop.xlane.xlu0 %1917 }
 0x7c6   : > { %5612 = vrcp.f32 %v1918_v26 }
 0x7c7   : > { %5614 = vrcp.f32 %v1921_v0 }
 0x7c9   : > { %v1924_v20 = vpop.xlane.xlu0 %1923 }
 0x7ca   : > { %5616 = vrcp.f32 %v1924_v20 }
 0x7cd   : > { %v1927_v1 = vpop.xlane.xlu1 %1926  ;;  %v5358_v31 = vpop.permute.xlu0 %5357 }
 0x7ce   : > { %v5360_v53 = vunpack.i.h.bf16 %v5358_v31  ;;  %v5359_v57 = vunpack.i.l.bf16 %v5358_v31  ;;  %5618 = vrcp.f32 %v1927_v1 }
 0x7d0   : > { %v5613_v9 = vpop.eup %5612  ;;  %v5193_v17 = vpack.c.bf16 %v5360_v53, %v5359_v57 }
 0x7d1   : > { %v5363_v21 = vpop.permute.xlu1 %5362  ;;  %v1929_v22 = vmul.f32 %v5613_v9, %v5607_v56  ;;  %v5615_v23 = vpop.eup %5614 }
 0x7d2   : > { %v5365_v6 = vunpack.i.h.bf16 %v5363_v21  ;;  %v5364_v60 = vunpack.i.l.bf16 %v5363_v21  ;;  %5194 = vmatprep.subr.bf16.mxu0 %v5193_v17  ;;  %v1931_v19 = vmul.f32 %v5615_v23, %v5605_v50 }
 0x7d3   : > { %5196 = vmatpush3.bf16.msra.mxu0 %v5193_v17  ;;  %4973 = vmatprep.mubr.msk.f32.mxu0 %vm1083_vm6, %v1929_v22 }
 0x7d4   : > { %v5197_v52 = vpack.c.bf16 %v5365_v6, %v5364_v60  ;;  %v5617_v25 = vpop.eup %5616 }
 0x7d5   : > { %v1933_v28 = vmul.f32 %v5617_v25, %v5609_v43 }
 0x7d6   : > { %5199 = vmatprep.subr.msk.bf16.mxu0 %vm6041_vm5, %v5197_v52 }
 0x7d7   : > { %5202 = vmatpush3.bf16.msk.msra.mxu0 %vm6041_vm5, %v5197_v52 }
 0x7d8   : > { %5205 = vmatprep.subr.msk.bf16.mxu0 %vm5982_vm1, %v6052_v47  ;;  %v5619_v12 = vpop.eup %5618 }
 0x7d9   : > { %v1935_v8 = vmul.f32 %v5619_v12, %v5611_v62 }
 0x7da   : > { %4974 = vmatmul.mubr.msk.f32.vlgmr.msra.gmra.mrb[20].mxu0 %vm1083_vm6, %v1931_v19 }
 0x7db   : > { %4976 = vmatprep.mubr.msk.f32.mxu0 %vm1083_vm6, %v1933_v28 }
 0x7de   : > { %4977 = vmatmul.mubr.msk.f32.gmra.mrb[22].mxu0 %vm1083_vm6, %v1935_v8 }
 0x7df   : > { %4987 = vmatprep.mubr.msk.f32.mxu0 %vm973_vm0, %v6321_v39 }
 0x7e0   : > { %5208 = vmatpush3.bf16.xpose.msk.msra.mxu0 %vm5982_vm1, %v6052_v47 }
 0x7e1   : > { %5211 = vmatprep.subr.msk.bf16.mxu0 %vm5982_vm1, %v6151_v35 }
 0x7e8   : > { %5214 = vmatpush3.bf16.xpose.msk.msra.mxu0 %vm5982_vm1, %v6151_v35 }
 0x7ef   : > { %4988 = vmatmul.mubr.msk.f32.vlgmr.msra.gmra.mrb[24].mxu0 %vm973_vm0, %v6038_v44 }
 0x7f0   : > { %4990 = vmatprep.mubr.msk.f32.mxu0 %vm973_vm0, %v6149_v34 }
 0x7f3   : > { %4991 = vmatmul.mubr.msk.f32.gmra.mrb[26].mxu0 %vm973_vm0, %v6156_v42 }
 0x8ad   : > { %v6340_v24 = vpop.f32.mrb[20].mxu0 }
 0x8ae   : > { %v6342_v37 = vpop.f32.mrb[21].mxu0 }
 0x8b1   : > { %v6344_v47 = vpop.f32.mrb[22].mxu0 }
 0x8b2   : > { %v5456_v49 = vpack.i.bf16 %v6344_v47, %v6340_v24  ;;  %v6348_v18 = vpop.f32.mrb[23].mxu0 }
 0x8c2   : > { %v4989_v35 = vpop.f32.mrb[24].mxu0 }
 0x8c3   : > { %v2217_v38 = vpop.f32.mrb[25].mxu0  ;;  %v2239_v50 = vsel %vm1083_vm6, %v4989_v35, -inf }
 0x8c4   : > { %2240 = vmax.xlane.f32.xlu0 %v2239_v50  ;;  %v2236_v56 = vsel %vm1083_vm6, %v2217_v38, -inf }
 0x8c5   : > { %2237 = vmax.xlane.f32.xlu1 %v2236_v56 }
 0x8c6   : > { %v4992_v32 = vpop.f32.mrb[26].mxu0 }
 0x8c7   : > { %v2227_v61 = vpop.f32.mrb[27].mxu0  ;;  %v2245_v43 = vsel %vm1093_vm7, %v4992_v32, -inf }
 0x8c8   : > { %v2242_v59 = vsel %vm1083_vm6, %v2227_v61, -inf }
 0x8c9   : > { %2246 = vmax.xlane.f32.xlu1 %v2245_v43  ;;  %2243 = vmax.xlane.f32.xlu0 %v2242_v59 }
 0x951   : > { %v2241_v62 = vpop.xlane.xlu0 %2240 }
 0x952   : > { %v2249_v27 = vsub.f32 %v4989_v35, %v2241_v62  ;;  %v2238_v26 = vpop.xlane.xlu1 %2237 }
 0x953   : > { %v2248_v0 = vsub.f32 %v2217_v38, %v2238_v26 }
 0x954   : > { %v2254_v20 = vmul.f32 1.442695, %v2249_v27 }
 0x955   : > { %v2252_v1 = vmul.f32 1.442695, %v2248_v0 }
 0x956   : > { %5620 = vpow2.f32 %v2254_v20  ;;  %v2247_v31 = vpop.xlane.xlu1 %2246  ;;  %v2244_v53 = vpop.xlane.xlu0 %2243 }
 0x957   : > { %5622 = vpow2.f32 %v2252_v1  ;;  %v2251_v57 = vsub.f32 %v4992_v32, %v2247_v31  ;;  %v2250_v9 = vsub.f32 %v2227_v61, %v2244_v53 }
 0x959   : > { %v2258_v17 = vmul.f32 1.442695, %v2251_v57  ;;  %v2256_v21 = vmul.f32 1.442695, %v2250_v9 }
 0x95b   : > { %5624 = vpow2.f32 %v2258_v17 }
 0x95c   : > { %5626 = vpow2.f32 %v2256_v21 }
 0x960   : > { %v5621_v22 = vpop.eup %5620 }
 0x961   : > { %v5623_v6 = vpop.eup %5622  ;;  %v2263_v60 = vsel %vm1083_vm6, %v5621_v22, 0.0 }
 0x962   : > { %2264 = vadd.xlane.f32.xlu1 %v2263_v60  ;;  %v2260_v52 = vsel %vm1083_vm6, %v5623_v6, 0.0 }
 0x963   : > { %2261 = vadd.xlane.f32.xlu0 %v2260_v52 }
 0x965   : > { %v5625_v23 = vpop.eup %5624 }
 0x966   : > { %v5627_v25 = vpop.eup %5626  ;;  %v2269_v19 = vsel %vm1093_vm7, %v5625_v23, 0.0 }
 0x967   : > { %2270 = vadd.xlane.f32.xlu1 %v2269_v19  ;;  %v2266_v12 = vsel %vm1083_vm6, %v5627_v25, 0.0 }
 0x968   : > { %2267 = vadd.xlane.f32.xlu0 %v2266_v12 }
 0x978   : > { %5372 = vrot.lane.b32.xlu1 %v6153_v40, %s5766_s25 }
 0x97c   : > { %2395 = vrot.lane.b32.xlu1 %v6321_v39, %s5766_s25 }
 0x97e   : > { %5367 = vrot.lane.b32.xlu0 %v6054_v48, %s5766_s25 }
 0x980   : > { %2397 = vrot.lane.b32.xlu1 %v6038_v44, %s5766_s25 }
 0x982   : > { %2399 = vrot.lane.b32.xlu0 %v6149_v34, %s5766_s25 }
 0x984   : > { %2401 = vrot.lane.b32.xlu1 %v6156_v42, %s5766_s25 }
 0x9ef   : > { %v2265_v28 = vpop.xlane.xlu1 %2264 }
 0x9f0   : > { %5628 = vrcp.f32 %v2265_v28  ;;  %v2262_v8 = vpop.xlane.xlu0 %2261 }
 0x9f1   : > { %5630 = vrcp.f32 %v2262_v8 }
 0x9f4   : > { %v2271_v33 = vpop.xlane.xlu1 %2270 }
 0x9f5   : > { %5632 = vrcp.f32 %v2271_v33  ;;  %v2268_v35 = vpop.xlane.xlu0 %2267 }
 0x9f6   : > { %5634 = vrcp.f32 %v2268_v35 }
 0x9f8   : > { %v5373_v38 = vpop.permute.xlu1 %5372 }
 0x9f9   : > { %v5368_v50 = vpop.permute.xlu0 %5367  ;;  %v5375_v59 = vunpack.i.h.bf16 %v5373_v38  ;;  %v5374_v62 = vunpack.i.l.bf16 %v5373_v38 }
 0x9fa   : > { %v5629_v56 = vpop.eup %5628  ;;  %v5370_v32 = vunpack.i.h.bf16 %v5368_v50  ;;  %v5369_v61 = vunpack.i.l.bf16 %v5368_v50 }
 0x9fb   : > { %v5631_v43 = vpop.eup %5630  ;;  %v2275_v0 = vmul.f32 %v5629_v56, %v5621_v22  ;;  %v5231_v1 = vpack.c.bf16 %v5375_v59, %v5374_v62 }
 0x9fc   : > { %v5225_v27 = vpack.c.bf16 %v5370_v32, %v5369_v61  ;;  %v2273_v26 = vmul.f32 %v5631_v43, %v5623_v6  ;;  %v2396_v9 = vpop.permute.xlu1 %2395 }
 0x9fd   : > { %v2400_v21 = vpop.permute.xlu0 %2399 }
 0x9fe   : > { %5227 = vmatprep.subr.msk.bf16.mxu1 %vm5982_vm1, %v5225_v27  ;;  %5001 = vmatprep.mubr.msk.f32.mxu1 %vm1083_vm6, %v2273_v26 }
 0x9ff   : > { %v5633_v20 = vpop.eup %5632  ;;  %5002 = vmatmul.mubr.msk.f32.vlgmr.msra.gmra.mrb[32].mxu1 %vm1083_vm6, %v2275_v0 }
 0xa00   : > { %v5635_v31 = vpop.eup %5634  ;;  %5230 = vmatpush3.bf16.xpose.msk.msra.mxu1 %vm5982_vm1, %v5225_v27  ;;  %v2279_v53 = vmul.f32 %v5633_v20, %v5625_v23  ;;  %v2398_v17 = vpop.permute.xlu1 %2397 }
 0xa01   : > { %5233 = vmatprep.subr.msk.bf16.mxu1 %vm5982_vm1, %v5231_v1  ;;  %v2277_v57 = vmul.f32 %v5635_v31, %v5627_v25 }
 0xa03   : > { %5004 = vmatprep.mubr.msk.f32.mxu1 %vm1083_vm6, %v2277_v57 }
 0xa04   : > { %5005 = vmatmul.mubr.msk.f32.gmra.mrb[34].mxu1 %vm1083_vm6, %v2279_v53  ;;  %v2402_v22 = vpop.permute.xlu1 %2401 }
 0xa05   : > { %5015 = vmatprep.mubr.msk.f32.mxu1 %vm973_vm0, %v2396_v9 }
 0xa08   : > { %5236 = vmatpush3.bf16.xpose.msk.msra.mxu1 %vm5982_vm1, %v5231_v1 }
 0xa0f   : > { %5016 = vmatmul.mubr.msk.f32.vlgmr.msra.gmra.mrb[36].mxu1 %vm973_vm0, %v2398_v17 }
 0xa10   : > { %5018 = vmatprep.mubr.msk.f32.mxu1 %vm973_vm0, %v2400_v21 }
 0xa13   : > { %5019 = vmatmul.mubr.msk.f32.gmra.mrb[38].mxu1 %vm973_vm0, %v2402_v22 }
 0xad2   : > { %v6386_v6 = vpop.f32.mrb[32].mxu1 }
 0xad3   : > { %v6388_v60 = vpop.f32.mrb[33].mxu1 }
 0xad7   : > { %v6390_v52 = vpop.f32.mrb[34].mxu1 }
 0xad8   : > { %v6392_v23 = vpop.f32.mrb[35].mxu1 }
 0xae2   : > { %v5017_v25 = vpop.f32.mrb[36].mxu1 }
 0xae3   : > { %v2493_v19 = vpop.f32.mrb[37].mxu1  ;;  %v2515_v12 = vsel %vm1083_vm6, %v5017_v25, -inf }
 0xae4   : > { %2516 = vmax.xlane.f32.xlu1 %v2515_v12  ;;  %v2512_v28 = vsel %vm1083_vm6, %v2493_v19, -inf }
 0xae5   : > { %2513 = vmax.xlane.f32.xlu0 %v2512_v28 }
 0xae6   : > { %v5020_v8 = vpop.f32.mrb[38].mxu1 }
 0xae7   : > { %v2503_v33 = vpop.f32.mrb[39].mxu1  ;;  %v2521_v38 = vsel %vm1093_vm7, %v5020_v8, -inf }
 0xae8   : > { %v2518_v35 = vsel %vm1083_vm6, %v2503_v33, -inf }
 0xae9   : > { %2519 = vmax.xlane.f32.xlu0 %v2518_v35 }
 0xaed   : > { %2522 = vmax.xlane.f32.xlu0 %v2521_v38 }
 0xb71   : > { %v2517_v50 = vpop.xlane.xlu1 %2516 }
 0xb72   : > { %v2525_v56 = vsub.f32 %v5017_v25, %v2517_v50  ;;  %v2514_v32 = vpop.xlane.xlu0 %2513 }
 0xb73   : > { %v2524_v61 = vsub.f32 %v2493_v19, %v2514_v32 }
 0xb74   : > { %v2530_v43 = vmul.f32 1.442695, %v2525_v56 }
 0xb75   : > { %v2528_v59 = vmul.f32 1.442695, %v2524_v61 }
 0xb76   : > { %5636 = vpow2.f32 %v2530_v43  ;;  %v2520_v20 = vpop.xlane.xlu0 %2519 }
 0xb77   : > { %5638 = vpow2.f32 %v2528_v59  ;;  %v2526_v1 = vsub.f32 %v2503_v33, %v2520_v20 }
 0xb79   : > { %v2532_v31 = vmul.f32 1.442695, %v2526_v1 }
 0xb7a   : > { %v2523_v53 = vpop.xlane.xlu0 %2522 }
 0xb7b   : > { %v2527_v57 = vsub.f32 %v5020_v8, %v2523_v53  ;;  %5640 = vpow2.f32 %v2532_v31 }
 0xb7d   : > { %v2534_v9 = vmul.f32 1.442695, %v2527_v57 }
 0xb7f   : > { %5642 = vpow2.f32 %v2534_v9 }
 0xb80   : > { %v5637_v62 = vpop.eup %5636 }
 0xb81   : > { %v5639_v27 = vpop.eup %5638  ;;  %v2539_v26 = vsel %vm1083_vm6, %v5637_v62, 0.0 }
 0xb82   : > { %2540 = vadd.xlane.f32.xlu1 %v2539_v26  ;;  %v2536_v0 = vsel %vm1083_vm6, %v5639_v27, 0.0 }
 0xb83   : > { %2537 = vadd.xlane.f32.xlu0 %v2536_v0 }
 0xb85   : > { %v5641_v17 = vpop.eup %5640 }
 0xb86   : > { %v2542_v21 = vsel %vm1083_vm6, %v5641_v17, 0.0 }
 0xb89   : > { %v5643_v22 = vpop.eup %5642 }
 0xb8a   : > { %v2545_v25 = vsel %vm1093_vm7, %v5643_v22, 0.0 }
 0xb93   : > { %5382 = vrot.lane.b32.xlu1 %v6076_v16, %s5766_s25 }
 0xb97   : > { %5387 = vrot.lane.b32.xlu1 %v6054_v48, %s5767_s19 }
 0xb99   : > { %5377 = vrot.lane.b32.xlu0 %v6072_v13, %s5766_s25 }
 0xb9b   : > { %5392 = vrot.lane.b32.xlu1 %v6153_v40, %s5767_s19 }
 0xbb8   : > { %2543 = vadd.xlane.f32.xlu0 %v2542_v21 }
 0xbbf   : > { %2546 = vadd.xlane.f32.xlu1 %v2545_v25 }
 0xbce   : > { %2666 = vrot.lane.b32.xlu0 %v6321_v39, %s5767_s19 }
 0xbd0   : > { %2668 = vrot.lane.b32.xlu1 %v6038_v44, %s5767_s19 }
 0xbd2   : > { %2670 = vrot.lane.b32.xlu0 %v6149_v34, %s5767_s19 }
 0xbd4   : > { %2672 = vrot.lane.b32.xlu1 %v6156_v42, %s5767_s19 }
 0xc0f   : > { %v2541_v19 = vpop.xlane.xlu1 %2540 }
 0xc10   : > { %v2538_v12 = vpop.xlane.xlu0 %2537 }
 0xc11   : > { %5644 = vrcp.f32 %v2538_v12 }
 0xc12   : > { %5646 = vrcp.f32 %v2541_v19 }
 0xc13   : > { %v5383_v28 = vpop.permute.xlu1 %5382 }
 0xc14   : > { %v5378_v8 = vpop.permute.xlu0 %5377  ;;  %v5385_v33 = vunpack.i.h.bf16 %v5383_v28  ;;  %v5384_v35 = vunpack.i.l.bf16 %v5383_v28 }
 0xc15   : > { %v5380_v38 = vunpack.i.h.bf16 %v5378_v8  ;;  %v5379_v50 = vunpack.i.l.bf16 %v5378_v8 }
 0xc16   : > { %v5241_v61 = vpack.c.bf16 %v5385_v33, %v5384_v35 }
 0xc17   : > { %v5237_v56 = vpack.c.bf16 %v5380_v38, %v5379_v50  ;;  %v5388_v32 = vpop.permute.xlu1 %5387 }
 0xc18   : > { %v5390_v43 = vunpack.i.h.bf16 %v5388_v32  ;;  %v5389_v59 = vunpack.i.l.bf16 %v5388_v32 }
 0xc19   : > { %5238 = vmatprep.subr.bf16.mxu0 %v5237_v56 }
 0xc1a   : > { %5240 = vmatpush3.bf16.msra.mxu0 %v5237_v56  ;;  %v5247_v1 = vpack.c.bf16 %v5390_v43, %v5389_v59 }
 0xc1b   : > { %v5645_v26 = vpop.eup %5644  ;;  %5243 = vmatprep.subr.msk.bf16.mxu0 %vm6041_vm5, %v5241_v61  ;;  %v5393_v53 = vpop.permute.xlu1 %5392 }
 0xc1c   : > { %v5647_v0 = vpop.eup %5646  ;;  %v2549_v20 = vmul.f32 %v5645_v26, %v5639_v27  ;;  %v5395_v57 = vunpack.i.h.bf16 %v5393_v53  ;;  %v5394_v9 = vunpack.i.l.bf16 %v5393_v53 }
 0xc1d   : > { %v2551_v31 = vmul.f32 %v5647_v0, %v5637_v62 }
 0xc1e   : > { %5246 = vmatpush3.bf16.msk.msra.mxu0 %vm6041_vm5, %v5241_v61  ;;  %5029 = vmatprep.mubr.msk.f32.mxu0 %vm1083_vm6, %v2549_v20  ;;  %v5253_v21 = vpack.c.bf16 %v5395_v57, %v5394_v9 }
 0xc1f   : > { %5249 = vmatprep.subr.msk.bf16.mxu0 %vm5982_vm1, %v5247_v1 }
 0xc21   : > { %5030 = vmatmul.mubr.msk.f32.vlgmr.msra.gmra.mrb[28].mxu0 %vm1083_vm6, %v2551_v31 }
 0xc27   : > { %5252 = vmatpush3.bf16.xpose.msk.msra.mxu0 %vm5982_vm1, %v5247_v1 }
 0xc28   : > { %5255 = vmatprep.subr.msk.bf16.mxu0 %vm5982_vm1, %v5253_v21 }
 0xc2f   : > { %5258 = vmatpush3.bf16.xpose.msk.msra.mxu0 %vm5982_vm1, %v5253_v21 }
 0xc45   : > { %v2544_v27 = vpop.xlane.xlu0 %2543 }
 0xc46   : > { %5648 = vrcp.f32 %v2544_v27 }
 0xc49   : > { %v2667_v28 = vpop.permute.xlu0 %2666 }
 0xc4c   : > { %v2547_v62 = vpop.xlane.xlu1 %2546 }
 0xc4d   : > { %5650 = vrcp.f32 %v2547_v62  ;;  %v2671_v35 = vpop.permute.xlu0 %2670 }
 0xc50   : > { %v5649_v25 = vpop.eup %5648  ;;  %v2669_v33 = vpop.permute.xlu1 %2668 }
 0xc51   : > { %v2553_v19 = vmul.f32 %v5649_v25, %v5641_v17 }
 0xc53   : > { %5032 = vmatprep.mubr.msk.f32.mxu0 %vm1083_vm6, %v2553_v19 }
 0xc54   : > { %v2673_v38 = vpop.permute.xlu1 %2672 }
 0xc57   : > { %v5651_v12 = vpop.eup %5650 }
 0xc58   : > { %v2555_v8 = vmul.f32 %v5651_v12, %v5643_v22 }
 0xc5a   : > { %5033 = vmatmul.mubr.msk.f32.gmra.mrb[30].mxu0 %vm1083_vm6, %v2555_v8 }
 0xc5b   : > { %5043 = vmatprep.mubr.msk.f32.mxu0 %vm973_vm0, %v2667_v28 }
 0xc5e   : > { %5044 = vmatmul.mubr.msk.f32.vlgmr.msra.gmra.mrb[32].mxu0 %vm973_vm0, %v2669_v33 }
 0xc5f   : > { %5046 = vmatprep.mubr.msk.f32.mxu0 %vm973_vm0, %v2671_v35 }
 0xc62   : > { %5047 = vmatmul.mubr.msk.f32.gmra.mrb[34].mxu0 %vm973_vm0, %v2673_v38 }
 0xcf4   : > { %v6438_v50 = vpop.f32.mrb[28].mxu0 }
 0xcf5   : > { %v5441_v17 = vpack.i.bf16 %v6438_v50, %v6282_v29  ;;  %v6442_v56 = vpop.f32.mrb[29].mxu0 }
 0xcf6   : > { %v5426_v22 = vpack.i.bf16 %v6276_v3, %v6442_v56 }
 0xd2d   : > { %v6446_v32 = vpop.f32.mrb[30].mxu0 }
 0xd2e   : > { %v6448_v61 = vpop.f32.mrb[31].mxu0 }
 0xd2f   : > { %v5461_v43 = vpack.i.bf16 %v6446_v32, %v6448_v61 }
 0xd31   : > { %v5045_v59 = vpop.f32.mrb[32].mxu0 }
 0xd32   : > { %v2764_v26 = vpop.f32.mrb[33].mxu0  ;;  %v2786_v0 = vsel %vm1083_vm6, %v5045_v59, -inf }
 0xd33   : > { %2787 = vmax.xlane.f32.xlu1 %v2786_v0  ;;  %v2783_v20 = vsel %vm1083_vm6, %v2764_v26, -inf }
 0xd34   : > { %2784 = vmax.xlane.f32.xlu0 %v2783_v20 }
 0xd35   : > { %v5048_v1 = vpop.f32.mrb[34].mxu0 }
 0xd36   : > { %v2774_v31 = vpop.f32.mrb[35].mxu0  ;;  %v2792_v57 = vsel %vm1093_vm7, %v5048_v1, -inf }
 0xd37   : > { %v2789_v53 = vsel %vm1083_vm6, %v2774_v31, -inf }
 0xd38   : > { %2790 = vmax.xlane.f32.xlu0 %v2789_v53 }
 0xd3c   : > { %2793 = vmax.xlane.f32.xlu0 %v2792_v57 }
 0xdc0   : > { %v2788_v9 = vpop.xlane.xlu1 %2787 }
 0xdc1   : > { %v2796_v21 = vsub.f32 %v5045_v59, %v2788_v9  ;;  %v2785_v27 = vpop.xlane.xlu0 %2784 }
 0xdc2   : > { %v2795_v62 = vsub.f32 %v2764_v26, %v2785_v27 }
 0xdc3   : > { %v2801_v25 = vmul.f32 1.442695, %v2796_v21 }
 0xdc4   : > { %v2799_v19 = vmul.f32 1.442695, %v2795_v62 }
 0xdc5   : > { %5652 = vpow2.f32 %v2801_v25  ;;  %v2791_v35 = vpop.xlane.xlu0 %2790 }
 0xdc6   : > { %5654 = vpow2.f32 %v2799_v19  ;;  %v2797_v38 = vsub.f32 %v2774_v31, %v2791_v35 }
 0xdc8   : > { %v2803_v59 = vmul.f32 1.442695, %v2797_v38 }
 0xdc9   : > { %v2794_v26 = vpop.xlane.xlu0 %2793 }
 0xdca   : > { %v2798_v0 = vsub.f32 %v5048_v1, %v2794_v26  ;;  %5656 = vpow2.f32 %v2803_v59 }
 0xdcc   : > { %v2805_v20 = vmul.f32 1.442695, %v2798_v0 }
 0xdce   : > { %5658 = vpow2.f32 %v2805_v20 }
 0xdcf   : > { %v5653_v12 = vpop.eup %5652 }
 0xdd0   : > { %v5655_v28 = vpop.eup %5654  ;;  %v2810_v8 = vsel %vm1083_vm6, %v5653_v12, 0.0 }
 0xdd1   : > { %2811 = vadd.xlane.f32.xlu1 %v2810_v8  ;;  %v2807_v33 = vsel %vm1083_vm6, %v5655_v28, 0.0 }
 0xdd2   : > { %2808 = vadd.xlane.f32.xlu0 %v2807_v33 }
 0xdd4   : > { %v5657_v53 = vpop.eup %5656 }
 0xdd5   : > { %v2813_v57 = vsel %vm1083_vm6, %v5657_v53, 0.0 }
 0xdd8   : > { %v5659_v9 = vpop.eup %5658 }
 0xde2   : > { %5402 = vrot.lane.b32.xlu1 %v6076_v16, %s5767_s19 }
 0xde6   : > { %5407 = vrot.lane.b32.xlu1 %v6054_v48, %s5768_s18  ;;  %v2816_v48 = vsel %vm1093_vm7, %v5659_v9, 0.0 }
 0xde8   : > { %5397 = vrot.lane.b32.xlu0 %v6072_v13, %s5767_s19 }
 0xdea   : > { %5412 = vrot.lane.b32.xlu1 %v6153_v40, %s5768_s18 }
 0xe07   : > { %2814 = vadd.xlane.f32.xlu0 %v2813_v57 }
 0xe0e   : > { %2817 = vadd.xlane.f32.xlu1 %v2816_v48 }
 0xe1d   : > { %2937 = vrot.lane.b32.xlu0 %v6321_v39, %s5768_s18 }
 0xe1f   : > { %2939 = vrot.lane.b32.xlu1 %v6038_v44, %s5768_s18 }
 0xe21   : > { %2941 = vrot.lane.b32.xlu0 %v6149_v34, %s5768_s18 }
 0xe23   : > { %2943 = vrot.lane.b32.xlu1 %v6156_v42, %s5768_s18 }
 0xe5e   : > { %v2812_v40 = vpop.xlane.xlu1 %2811 }
 0xe5f   : > { %v2809_v1 = vpop.xlane.xlu0 %2808 }
 0xe60   : > { %5660 = vrcp.f32 %v2809_v1 }
 0xe61   : > { %5662 = vrcp.f32 %v2812_v40 }
 0xe62   : > { %v5403_v31 = vpop.permute.xlu1 %5402 }
 0xe63   : > { %v5398_v21 = vpop.permute.xlu0 %5397  ;;  %v5405_v27 = vunpack.i.h.bf16 %v5403_v31  ;;  %v5404_v62 = vunpack.i.l.bf16 %v5403_v31 }
 0xe64   : > { %v5400_v25 = vunpack.i.h.bf16 %v5398_v21  ;;  %v5399_v19 = vunpack.i.l.bf16 %v5398_v21 }
 0xe65   : > { %v5263_v33 = vpack.c.bf16 %v5405_v27, %v5404_v62 }
 0xe66   : > { %v5259_v39 = vpack.c.bf16 %v5400_v25, %v5399_v19  ;;  %v5408_v8 = vpop.permute.xlu1 %5407 }
 0xe67   : > { %v5410_v44 = vunpack.i.h.bf16 %v5408_v8  ;;  %v5409_v35 = vunpack.i.l.bf16 %v5408_v8 }
 0xe68   : > { %5260 = vmatprep.subr.bf16.mxu1 %v5259_v39 }
 0xe69   : > { %5262 = vmatpush3.bf16.msra.mxu1 %v5259_v39  ;;  %v5269_v59 = vpack.c.bf16 %v5410_v44, %v5409_v35 }
 0xe6a   : > { %v5661_v34 = vpop.eup %5660  ;;  %5265 = vmatprep.subr.msk.bf16.mxu1 %vm6041_vm5, %v5263_v33  ;;  %v5413_v0 = vpop.permute.xlu1 %5412 }
 0xe6b   : > { %v5663_v42 = vpop.eup %5662  ;;  %v2820_v38 = vmul.f32 %v5661_v34, %v5655_v28  ;;  %v5415_v20 = vunpack.i.h.bf16 %v5413_v0  ;;  %v5414_v57 = vunpack.i.l.bf16 %v5413_v0 }
 0xe6c   : > { %v2822_v26 = vmul.f32 %v5663_v42, %v5653_v12 }
 0xe6d   : > { %5268 = vmatpush3.bf16.msk.msra.mxu1 %vm6041_vm5, %v5263_v33  ;;  %5057 = vmatprep.mubr.msk.f32.mxu1 %vm1083_vm6, %v2820_v38  ;;  %v5275_v48 = vpack.c.bf16 %v5415_v20, %v5414_v57 }
 0xe6e   : > { %5271 = vmatprep.subr.msk.bf16.mxu1 %vm5982_vm1, %v5269_v59 }
 0xe70   : > { %5058 = vmatmul.mubr.msk.f32.vlgmr.msra.gmra.mrb[40].mxu1 %vm1083_vm6, %v2822_v26 }
 0xe76   : > { %5274 = vmatpush3.bf16.xpose.msk.msra.mxu1 %vm5982_vm1, %v5269_v59 }
 0xe77   : > { %5277 = vmatprep.subr.msk.bf16.mxu1 %vm5982_vm1, %v5275_v48 }
 0xe7e   : > { %5280 = vmatpush3.bf16.xpose.msk.msra.mxu1 %vm5982_vm1, %v5275_v48 }
 0xe94   : > { %v2815_v28 = vpop.xlane.xlu0 %2814 }
 0xe95   : > { %5664 = vrcp.f32 %v2815_v28 }
 0xe98   : > { %v2938_v21 = vpop.permute.xlu0 %2937 }
 0xe9b   : > { %v2818_v12 = vpop.xlane.xlu1 %2817 }
 0xe9c   : > { %5666 = vrcp.f32 %v2818_v12  ;;  %v2942_v25 = vpop.permute.xlu0 %2941 }
 0xe9f   : > { %v5665_v40 = vpop.eup %5664  ;;  %v2940_v62 = vpop.permute.xlu1 %2939 }
 0xea0   : > { %v2824_v1 = vmul.f32 %v5665_v40, %v5657_v53 }
 0xea2   : > { %5060 = vmatprep.mubr.msk.f32.mxu1 %vm1083_vm6, %v2824_v1 }
 0xea3   : > { %v2944_v4 = vpop.permute.xlu1 %2943 }
 0xea6   : > { %v5667_v31 = vpop.eup %5666 }
 0xea7   : > { %v2826_v27 = vmul.f32 %v5667_v31, %v5659_v9 }
 0xea9   : > { %5061 = vmatmul.mubr.msk.f32.gmra.mrb[42].mxu1 %vm1083_vm6, %v2826_v27 }
 0xeaa   : > { %5071 = vmatprep.mubr.msk.f32.mxu1 %vm973_vm0, %v2938_v21 }
 0xead   : > { %5072 = vmatmul.mubr.msk.f32.vlgmr.msra.gmra.mrb[44].mxu1 %vm973_vm0, %v2940_v62 }
 0xeae   : > { %5074 = vmatprep.mubr.msk.f32.mxu1 %vm973_vm0, %v2942_v25 }
 0xeb1   : > { %5075 = vmatmul.mubr.msk.f32.gmra.mrb[46].mxu1 %vm973_vm0, %v2944_v4 }
 0xeb2   : > { %3705 = vmatprep.mubr.bf16.mxu1 %v5764_v15 }
 0xf43   : > { %v5059_v53 = vpop.f32.mrb[40].mxu1 }
 0xf44   : > { %v2918_v19 = vpop.f32.mrb[41].mxu1 }
 0xf45   : > { %v5431_v39 = vpack.i.bf16 %v6286_v5, %v2918_v19 }
 0xf7c   : > { %v6498_v9 = vpop.f32.mrb[42].mxu1 }
 0xf7d   : > { %v2928_v8 = vpop.f32.mrb[43].mxu1 }
 0xf7e   : > { %v5466_v33 = vpack.i.bf16 %v2928_v8, %v5059_v53 }
 0xf80   : > { %v5073_v44 = vpop.f32.mrb[44].mxu1 }
 0xf81   : > { %v3035_v35 = vpop.f32.mrb[45].mxu1  ;;  %v3057_v34 = vsel %vm1083_vm6, %v5073_v44, -inf }
 0xf82   : > { %3058 = vmax.xlane.f32.xlu1 %v3057_v34  ;;  %v3054_v42 = vsel %vm1083_vm6, %v3035_v35, -inf }
 0xf83   : > { %3055 = vmax.xlane.f32.xlu0 %v3054_v42 }
 0xf84   : > { %v5076_v38 = vpop.f32.mrb[46].mxu1 }
 0xf85   : > { %v3045_v59 = vpop.f32.mrb[47].mxu1  ;;  %v3063_v0 = vsel %vm1093_vm7, %v5076_v38, -inf }
 0xf86   : > { %v3060_v26 = vsel %vm1083_vm6, %v3045_v59, -inf }
 0xf87   : > { %3061 = vmax.xlane.f32.xlu0 %v3060_v26  ;;  %v5509_v26 = vld [vmem:[%s5859_s16 + $0x8] sm:$0xff]  }
 0xf8b   : > { %3064 = vmax.xlane.f32.xlu0 %v3063_v0  ;;  %v5511_v0 = vld [vmem:[%s5859_s16 + $0x18] sm:$0xff]  }
0x100f   : > { %v3059_v5 = vpop.xlane.xlu1 %3058 }
0x1010   : > { %v3067_v20 = vsub.f32 %v5073_v44, %v3059_v5  ;;  %v3056_v57 = vpop.xlane.xlu0 %3055  ;;  %v5512_v5 = vld [vmem:[%s5859_s16 + $0x20] sm:$0xff]  }
0x1011   : > { %v3066_v48 = vsub.f32 %v3035_v35, %v3056_v57  ;;  %v5514_v57 = vld [vmem:[%s5859_s16 + $0x30] sm:$0xff]  }
0x1012   : > { %v3072_v28 = vmul.f32 1.442695, %v3067_v20  ;;  %v5513_v20 = vld [vmem:[%s5859_s16 + $0x28] sm:$0xff]  }
0x1013   : > { %v3070_v12 = vmul.f32 1.442695, %v3066_v48  ;;  %v5515_v48 = vld [vmem:[%s5859_s16 + $0x38] sm:$0xff]  }
0x1014   : > { %5668 = vpow2.f32 %v3072_v28  ;;  %v3062_v40 = vpop.xlane.xlu0 %3061 }
0x1015   : > { %5670 = vpow2.f32 %v3070_v12  ;;  %v3068_v1 = vsub.f32 %v3045_v59, %v3062_v40  ;;  %v5508_v59 = vld [vmem:[%s5859_s16] sm:$0xff]  }
0x1017   : > { %v3074_v31 = vmul.f32 1.442695, %v3068_v1 }
0x1018   : > { %v3065_v21 = vpop.xlane.xlu0 %3064 }
0x1019   : > { %5672 = vpow2.f32 %v3074_v31  ;;  %v3069_v27 = vsub.f32 %v5076_v38, %v3065_v21 }
0x101b   : > { %v3076_v62 = vmul.f32 1.442695, %v3069_v27 }
0x101d   : > { %5674 = vpow2.f32 %v3076_v62 }
0x101e   : > { %v5669_v25 = vpop.eup %5668 }
0x101f   : > { %v5671_v4 = vpop.eup %5670  ;;  %v3081_v53 = vsel %vm1083_vm6, %v5669_v25, 0.0 }
0x1020   : > { %3082 = vadd.xlane.f32.xlu1 %v3081_v53  ;;  %v3078_v19 = vsel %vm1083_vm6, %v5671_v4, 0.0 }
0x1021   : > { %3079 = vadd.xlane.f32.xlu0 %v3078_v19 }
0x1023   : > { %v5673_v8 = vpop.eup %5672 }
0x1024   : > { %v3084_v44 = vsel %vm1083_vm6, %v5673_v8, 0.0 }
0x1025   : > { %3085 = vadd.xlane.f32.xlu0 %v3084_v44 }
0x1027   : > { %v5675_v35 = vpop.eup %5674 }
0x1028   : > { %v3087_v34 = vsel %vm1093_vm7, %v5675_v35, 0.0 }
0x1029   : > { %3088 = vadd.xlane.f32.xlu1 %v3087_v34 }
0x103a   : > { %5422 = vrot.lane.b32.xlu1 %v6076_v16, %s5768_s18 }
0x103b   : > { %5417 = vrot.lane.b32.xlu0 %v6072_v13, %s5768_s18 }
0x103e   : > { %5427 = vrot.lane.b32.xlu1 %v5426_v22, %s5768_s18 }
0x103f   : > { %5437 = vrot.lane.b32.xlu0 %v5436_v11, %s5768_s18 }
0x1042   : > { %5432 = vrot.lane.b32.xlu1 %v5431_v39, %s5767_s19 }
0x1043   : > { %5442 = vrot.lane.b32.xlu0 %v5441_v17, %s5768_s18 }
0x1046   : > { %5447 = vrot.lane.b32.xlu1 %v5446_v14, %s5767_s19 }
0x1047   : > { %2070 = vrot.lane.b32.xlu0 %v6292_v10, %s5767_s19 }
0x104b   : > { %2086 = vrot.lane.b32.xlu0 %v6348_v18, %s5766_s25 }
0x104f   : > { %5467 = vrot.lane.b32.xlu0 %v5466_v33, %s5767_s19 }
0x10ad   : > { %v3083_v16 = vpop.xlane.xlu1 %3082 }
0x10ae   : > { %v3080_v13 = vpop.xlane.xlu0 %3079 }
0x10af   : > { %5676 = vrcp.f32 %v3080_v13 }
0x10b0   : > { %5678 = vrcp.f32 %v3083_v16 }
0x10b2   : > { %v3086_v63 = vpop.xlane.xlu0 %3085 }
0x10b3   : > { %5680 = vrcp.f32 %v3086_v63 }
0x10b6   : > { %v3089_v3 = vpop.xlane.xlu1 %3088  ;;  %v5418_v2 = vpop.permute.xlu0 %5417 }
0x10b7   : > { %v5420_v11 = vunpack.i.h.bf16 %v5418_v2  ;;  %v5419_v29 = vunpack.i.l.bf16 %v5418_v2  ;;  %5682 = vrcp.f32 %v3089_v3 }
0x10b9   : > { %v5677_v30 = vpop.eup %5676  ;;  %v5281_v7 = vpack.c.bf16 %v5420_v11, %v5419_v29 }
0x10ba   : > { %v5423_v14 = vpop.permute.xlu1 %5422  ;;  %v3091_v10 = vmul.f32 %v5677_v30, %v5671_v4  ;;  %v5679_v56 = vpop.eup %5678 }
0x10bb   : > { %v5425_v50 = vunpack.i.h.bf16 %v5423_v14  ;;  %v5424_v17 = vunpack.i.l.bf16 %v5423_v14  ;;  %5282 = vmatprep.subr.bf16.mxu0 %v5281_v7  ;;  %v3093_v39 = vmul.f32 %v5679_v56, %v5669_v25 }
0x10bc   : > { %5284 = vmatpush3.bf16.msra.mxu0 %v5281_v7  ;;  %5085 = vmatprep.mubr.msk.f32.mxu0 %vm1083_vm6, %v3091_v10 }
0x10bd   : > { %v5285_v18 = vpack.c.bf16 %v5425_v50, %v5424_v17  ;;  %v5681_v22 = vpop.eup %5680 }
0x10be   : > { %v3095_v42 = vmul.f32 %v5681_v22, %v5673_v8  ;;  %v5428_v62 = vpop.permute.xlu1 %5427 }
0x10bf   : > { %5287 = vmatprep.subr.msk.bf16.mxu0 %vm6041_vm5, %v5285_v18  ;;  %v5429_v47 = vunpack.i.l.bf16 %v5428_v62  ;;  %v5430_v61 = vunpack.i.h.bf16 %v5428_v62 }
0x10c0   : > { %5290 = vmatpush3.bf16.msk.msra.mxu0 %vm6041_vm5, %v5285_v18 }
0x10c1   : > { %v5683_v33 = vpop.eup %5682  ;;  %5091 = vmatprep.subr.bf16.mxu0 %v5508_v59 }
0x10c2   : > { %v3097_v38 = vmul.f32 %v5683_v33, %v5675_v35  ;;  %v5433_v4 = vpop.permute.xlu1 %5432  ;;  %v3256_v35 = vsel %vm973_vm0, %v6388_v60, %v5429_v47  ;;  %v2094_v60 = vsel %vm973_vm0, %v6160_v41, %v5430_v61 }
0x10c3   : > { %5086 = vmatmul.mubr.msk.f32.vlgmr.msra.gmra.mrb[36].mxu0 %vm1083_vm6, %v3093_v39  ;;  %v5434_v19 = vunpack.i.l.bf16 %v5433_v4  ;;  %v5435_v34 = vunpack.i.h.bf16 %v5433_v4 }
0x10c4   : > { %5088 = vmatprep.mubr.msk.f32.mxu0 %vm1083_vm6, %v3095_v42  ;;  %5092 = vmatpush3.bf16.msra.mxu0 %v5508_v59 }
0x10c5   : > { %5093 = vmatprep.subr.bf16.mxu0 %v5509_v26  ;;  %v3260_v63 = vsel %vm2098_vm8, %v3256_v35, %v5434_v19  ;;  %v2099_v18 = vsel %vm2098_vm8, %v2094_v60, %v5435_v34 }
0x10c6   : > { %v5448_v24 = vpop.permute.xlu1 %5447 }
0x10c7   : > { %5089 = vmatmul.mubr.msk.f32.gmra.mrb[38].mxu0 %vm1083_vm6, %v3097_v38  ;;  %v5450_v3 = vunpack.i.h.bf16 %v5448_v24  ;;  %v5449_v2 = vunpack.i.l.bf16 %v5448_v24 }
0x10c8   : > { %5094 = vmatpush3.bf16.msra.mxu0 %v5509_v26 }
0x10c9   : > { %5095 = vmatprep.subr.bf16.mxu0 %v5510_v45 }
0x10cc   : > { %5096 = vmatpush3.bf16.msra.mxu0 %v5510_v45 }
0x10cd   : > { %5097 = vmatprep.subr.bf16.mxu0 %v5511_v0 }
0x10d0   : > { %5098 = vmatpush3.bf16.msra.mxu0 %v5511_v0 }
0x10d1   : > { %5099 = vmatprep.subr.bf16.mxu0 %v5512_v5 }
0x10d4   : > { %5100 = vmatpush3.bf16.msra.mxu0 %v5512_v5 }
0x10d5   : > { %5101 = vmatprep.subr.bf16.mxu0 %v5513_v20 }
0x10d8   : > { %5102 = vmatpush3.bf16.msra.mxu0 %v5513_v20 }
0x10d9   : > { %5103 = vmatprep.subr.bf16.mxu0 %v5514_v57 }
0x10dc   : > { %5104 = vmatpush3.bf16.msra.mxu0 %v5514_v57 }
0x10dd   : > { %5105 = vmatprep.subr.bf16.mxu0 %v5515_v48 }
0x10e0   : > { %5106 = vmatpush3.bf16.msra.mxu0 %v5515_v48 }
0x1196   : > { %v5087_v28 = vpop.f32.mrb[36].mxu0 }
0x1197   : > { %v3189_v12 = vpop.f32.mrb[37].mxu0 }
0x1198   : > { %v5451_v40 = vpack.i.bf16 %v6342_v37, %v3189_v12  ;;  %v5438_v37 = vpop.permute.xlu0 %5437 }
0x1199   : > { %v5440_v8 = vunpack.i.h.bf16 %v5438_v37  ;;  %v5439_v32 = vunpack.i.l.bf16 %v5438_v37 }
0x119a   : > { %5452 = vrot.lane.b32.xlu1 %v5451_v40, %s5766_s25  ;;  %v5090_v1 = vpop.f32.mrb[38].mxu0 }
0x119b   : > { %v3199_v31 = vpop.f32.mrb[39].mxu0  ;;  %v2097_v29 = vsel %vm973_vm0, %v6162_v46, %v5440_v8  ;;  %v2095_v14 = vsel %vm973_vm0, %v6158_v36, %v5439_v32 }
0x119c   : > { %v5471_v21 = vpack.i.bf16 %v3199_v31, %v5087_v28  ;;  %v5443_v27 = vpop.permute.xlu0 %5442  ;;  %v2100_v39 = vsel %vm2098_vm8, %v2095_v14, %v5449_v2  ;;  %v2102_v33 = vsel %vm2098_vm8, %v2097_v29, %v5450_v3  ;;  %v5749_v2 = vld [vmem:[#allocation2 + $0x8] sm:$0xff]  ;;  %v5750_v29 = vld [vmem:[#allocation2 + $0x10] sm:$0xff]  ;;  %v5751_v14 = vld [vmem:[#allocation2 + $0x18] sm:$0xff] }
0x119e   : > { %5457 = vrot.lane.b32.xlu1 %v5456_v49, %s5766_s25  ;;  %5472 = vrot.lane.b32.xlu0 %v5471_v21, %s5766_s25  ;;  %v5444_v49 = vunpack.i.l.bf16 %v5443_v27 }
0x11a0   : > { %v2071_v25 = vpop.permute.xlu0 %2070  ;;  %v2096_v13 = vsel %vm973_vm0, %v6164_v58, %v5444_v49 }
0x11a1   : > { %v2101_v10 = vsel %vm2098_vm8, %v2096_v13, %v2071_v25 }
0x11a2   : > { %5462 = vrot.lane.b32.xlu1 %v5461_v43, %s5768_s18  ;;  %v5445_v43 = vunpack.i.h.bf16 %v5443_v27 }
0x11a4   : > { %v2087_v53 = vpop.permute.xlu0 %2086  ;;  %v3257_v58 = vsel %vm973_vm0, %v6386_v6, %v5445_v43 }
0x11a5   : > { %v2106_v26 = vsel %vm2103_vm9, %v2101_v10, %v2087_v53 }
0x11a6   : > { %3234 = vrot.lane.b32.xlu1 %v6498_v9, %s5767_s19 }
0x11a8   : > { %v5468_v44 = vpop.permute.xlu0 %5467 }
0x11a9   : > { %v5469_v11 = vunpack.i.l.bf16 %v5468_v44  ;;  %v5470_v12 = vunpack.i.h.bf16 %v5468_v44 }
0x11aa   : > { %3250 = vrot.lane.b32.xlu1 %v5090_v1, %s5766_s25 }
0x11ab   : > { %v3261_v36 = vsel %vm2098_vm8, %v3257_v58, %v5469_v11 }
0x120c   : > { %v5453_v9 = vpop.permute.xlu1 %5452 }
0x120d   : > { %v5454_v16 = vunpack.i.l.bf16 %v5453_v9  ;;  %v5455_v30 = vunpack.i.h.bf16 %v5453_v9 }
0x120f   : > { %v3264_v7 = vsel %vm2103_vm9, %v3260_v63, %v5454_v16  ;;  %v2104_v38 = vsel %vm2103_vm9, %v2099_v18, %v5455_v30  ;;  %v5748_v16 = vld [vmem:[#allocation2] sm:$0xff] }
0x1210   : > { %v5458_v50 = vpop.permute.xlu1 %5457  ;;  %v5473_v17 = vpop.permute.xlu0 %5472  ;;  %v3272_v42 = vrot.slane %v3264_v7, 2 }
0x1211   : > { %v5460_v56 = vunpack.i.h.bf16 %v5458_v50  ;;  %v5459_v46 = vunpack.i.l.bf16 %v5458_v50  ;;  %v5474_v22 = vunpack.i.l.bf16 %v5473_v17  ;;  %v5475_v1 = vunpack.i.h.bf16 %v5473_v17 }
0x1213   : > { %v2107_v41 = vsel %vm2103_vm9, %v2102_v33, %v5460_v56  ;;  %v3265_v6 = vsel %vm2103_vm9, %v3261_v36, %v5474_v22  ;;  %v2105_v59 = vsel %vm2103_vm9, %v2100_v39, %v5459_v46  ;;  %v5752_v46 = vld [vmem:[#allocation2 + $0x20] sm:$0xff]  ;;  %v5753_v33 = vld [vmem:[#allocation2 + $0x38] sm:$0xf] }
0x1214   : > { %v3284_v45 = vsel %vm1141_vm3, %v2107_v41, %v3272_v42  ;;  %v3273_v0 = vrot.slane %v3265_v6, 2  ;;  %v5463_v5 = vpop.permute.xlu1 %5462  ;;  %v3301_v20 = vpack.c.bf16 %v2105_v59, %v2104_v38  ;;  %v5754_v41 = vld [vmem:[#allocation2 + $0x28] sm:$0xff]  ;;  %v5755_v59 = vld [vmem:[#allocation2 + $0x30] sm:$0xff] }
0x1215   : > { %v3302_v57 = vpack.c.bf16 %v3284_v45, %v2106_v26  ;;  %v5465_v48 = vunpack.i.h.bf16 %v5463_v5  ;;  %v5464_v28 = vunpack.i.l.bf16 %v5463_v5  ;;  %v5516_v45 = vld [vmem:[%s5887_s1] ss:$8 sps:$4 sm:$0xff]   ;;  %v5521_v5 = vld [vmem:[%s5887_s1 + $0x14] ss:$8 sps:$4 sm:$0xff]  }
0x1216   : > { %5107 = vmatprep.mubr.bf16.mxu0 %v3301_v20  ;;  %v3274_v40 = vsel %vm1141_vm3, %v3272_v42, %v3273_v0  ;;  %v5519_v20 = vld [vmem:[%s5887_s1 + $0x10] ss:$8 sps:$4 sm:$0xff]  }
0x1217   : > { %v3258_v31 = vsel %vm973_vm0, %v6392_v23, %v5464_v28  ;;  %5108 = vmatmul.mubr.bf16.vlgmr.msra.gmra.mrb[40].mxu0 %v3302_v57  ;;  %v3259_v27 = vsel %vm973_vm0, %v6390_v52, %v5465_v48  ;;  %v3305_v52 = vld [vmem:[%s7006_s20] sm:$0x1] }
0x1218   : > { %v3262_v21 = vsel %vm2098_vm8, %v3258_v31, %v5470_v12  ;;  %v3235_v37 = vpop.permute.xlu1 %3234  ;;  %v3306_v44 = vunpack.c.l.bf16 %v3305_v52 }
0x1219   : > { %v3266_v62 = vsel %vm2103_vm9, %v3262_v21, %v5475_v1  ;;  %v3263_v4 = vsel %vm2098_vm8, %v3259_v27, %v3235_v37 }
0x121a   : > { %v3275_v25 = vrot.slane %v3266_v62, 2  ;;  %v3310_v32 = vrot.slane %v3306_v44, %v5960_v54 }
0x121c   : > { %v3251_v53 = vpop.permute.xlu1 %3250  ;;  %v3276_v24 = vsel %vm1141_vm3, %v3273_v0, %v3275_v25  ;;  %v5518_v0 = vld [vmem:[%s5887_s1 + $0x4] ss:$8 sps:$4 sm:$0xff]  }
0x121d   : > { %v3267_v47 = vsel %vm2103_vm9, %v3263_v4, %v3251_v53  ;;  %v3303_v49 = vpack.c.bf16 %v3276_v24, %v3274_v40  ;;  %3673 = vmatprep.subr.bf16.mxu1 %v5518_v0 }
0x121e   : > { %v3277_v23 = vrot.slane %v3267_v47, 2  ;;  %3674 = vmatpush1.bf16.msra.mxu1 %v5516_v45 }
0x121f   : > { %5111 = vmatprep.mubr.bf16.mxu0 %v3303_v49  ;;  %3675 = vmatprep.subr.bf16.mxu1 %v5521_v5 }
0x1220   : > { %v3278_v19 = vsel %vm1141_vm3, %v3275_v25, %v3277_v23 }
0x1221   : > { %v3304_v8 = vpack.c.bf16 %v3277_v23, %v3278_v19 }
0x1222   : > { %3676 = vmatpush1.bf16.msra.mxu1 %v5519_v20  ;;  %v3434_v20 = vld [vmem:[%s7008_s2] sm:$0x1] }
0x1223   : > { %5112 = vmatmul.mubr.bf16.gmra.mrb[44].mxu0 %v3304_v8 }
0x12ea   : > { %v5109_v61 = vpop.f32.mrb[40].mxu0 }
0x12eb   : > { %v3393_v43 = vpop.f32.mrb[41].mxu0  ;;  %v3402_v13 = vadd.f32 %v5109_v61, %v3310_v32 }
0x12ec   : > { %v3394_v9 = vadd.f32 %v3393_v43, %v3310_v32  ;;  %v5110_v35 = vpop.f32.mrb[42].mxu0 }
0x12ed   : > { %v3396_v34 = vpop.f32.mrb[43].mxu0  ;;  %v3426_v30 = vadd.f32 %v5750_v29, %v3402_v13  ;;  %v3405_v7 = vadd.f32 %v5110_v35, %v3310_v32 }
0x12ee   : > { %v3424_v63 = vadd.f32 %v5748_v16, %v3394_v9  ;;  %v3397_v3 = vadd.f32 %v3396_v34, %v3310_v32  ;;  %v5524_v16 = vld [vmem:[%s5887_s1 + $0x24] ss:$8 sps:$4 sm:$0xff]  }
0x12ef   : > { %v3427_v60 = vadd.f32 %v5751_v14, %v3405_v7  ;;  %3677 = vmatprep.subr.bf16.mxu1 %v5524_v16  ;;  %v5525_v7 = vld [vmem:[%s5887_s1 + $0x30] ss:$8 sps:$4 sm:$0xff]   ;;  %v5530_v14 = vld [vmem:[%s5887_s1 + $0x44] ss:$8 sps:$4 sm:$0xff]  }
0x12f0   : > { %v3425_v11 = vadd.f32 %v5749_v2, %v3397_v3  ;;  %3436 = vadd.xlane.f32.xlu0 %v3424_v63  ;;  %v5522_v2 = vld [vmem:[%s5887_s1 + $0x20] ss:$8 sps:$4 sm:$0xff]  }
0x12f1   : > { %3678 = vmatpush1.bf16.msra.mxu1 %v5522_v2 }
0x12f2   : > { %3438 = vadd.xlane.f32.xlu1 %v3425_v11 }
0x12f4   : > { %3440 = vadd.xlane.f32.xlu0 %v3426_v30 }
0x12f6   : > { %v5113_v58 = vpop.f32.mrb[44].mxu0 }
0x12f7   : > { %v3409_v10 = vpop.f32.mrb[45].mxu0  ;;  %v3418_v42 = vadd.f32 %v5113_v58, %v3310_v32  ;;  %v5533_v58 = vld [vmem:[%s5887_s1 + $0x54] ss:$8 sps:$4 sm:$0xff]  }
0x12f8   : > { %v3410_v50 = vadd.f32 %v3409_v10, %v3310_v32  ;;  %v5114_v17 = vpop.f32.mrb[46].mxu0  ;;  %3442 = vadd.xlane.f32.xlu0 %v3427_v60  ;;  %v5531_v10 = vld [vmem:[%s5887_s1 + $0x50] ss:$8 sps:$4 sm:$0xff]  }
0x12f9   : > { %v3421_v18 = vadd.f32 %v5114_v17, %v3310_v32  ;;  %v3412_v56 = vpop.f32.mrb[47].mxu0  ;;  %v3430_v26 = vadd.f32 %v5755_v59, %v3418_v42  ;;  %v5534_v17 = vld [vmem:[%s5887_s1 + $0x60] ss:$8 sps:$4 sm:$0xff]  }
0x12fa   : > { %v3428_v22 = vadd.f32 %v5752_v46, %v3410_v50  ;;  %v3413_v39 = vadd.f32 %v3412_v56, %v3310_v32  ;;  %v5536_v50 = vld [vmem:[%s5887_s1 + $0x64] ss:$8 sps:$4 sm:$0xff]   ;;  %v5537_v56 = vld [vmem:[%s5887_s1 + $0x70] ss:$8 sps:$4 sm:$0xff]  }
0x12fb   : > { %v3431_v36 = vadd.f32 %v5753_v33, %v3421_v18  ;;  %v5539_v18 = vld [vmem:[%s5887_s1 + $0x74] ss:$8 sps:$4 sm:$0xff]  }
0x12fc   : > { %v3429_v6 = vadd.f32 %v5754_v41, %v3413_v39  ;;  %3444 = vadd.xlane.f32.xlu0 %v3428_v22 }
0x12fd   : > { %v3451_v38 = vsel %vm3450_vm10, %v3431_v36, 0.0 }
0x12fe   : > { %3446 = vadd.xlane.f32.xlu1 %v3429_v6 }
0x1300   : > { %3452 = vadd.xlane.f32.xlu0 %v3451_v38  ;;  %v3432_v38 = vld [vmem:[%s7007_s24] sm:$0x1] }
0x1301   : > { %v3433_v0 = vunpack.c.l.bf16 %v3432_v38  ;;  %v5542_v38 = vld [vmem:[%s5898_s0 + $0x48] sm:$0xff]  }
0x1302   : > { %3448 = vadd.xlane.f32.xlu1 %v3430_v26 }
0x137d   : > { %v3437_v57 = vpop.xlane.xlu0 %3436 }
0x137e   : > { %v3455_v48 = vmul.f32 0.0078125, %v3437_v57 }
0x137f   : > { %v3439_v28 = vpop.xlane.xlu1 %3438 }
0x1380   : > { %v6611_v12 = vsub.f32 %v3424_v63, %v3455_v48  ;;  %v3456_v40 = vmul.f32 0.0078125, %v3439_v28  ;;  %v3531_v28 = vrot.slane %v3433_v0, %v5960_v54  ;;  %v5547_v0 = vld [vmem:[%s5898_s0 + $0x18] sm:$0xff]  }
0x1381   : > { %v3441_v1 = vpop.xlane.xlu0 %3440 }
0x1382   : > { %v6613_v31 = vsub.f32 %v3425_v11, %v3456_v40  ;;  %v3457_v21 = vmul.f32 0.0078125, %v3441_v1  ;;  %v3471_v37 = vmul.f32 %v6611_v12, %v6611_v12  ;;  %v3435_v1 = vunpack.c.l.bf16 %v3434_v20  ;;  %v5549_v20 = vld [vmem:[%s5898_s0 + $0x20] sm:$0xff]  }
0x1384   : > { %v6617_v27 = vsub.f32 %v3426_v30, %v3457_v21  ;;  %3479 = vadd.xlane.f32.xlu0 %v3471_v37  ;;  %v3472_v62 = vmul.f32 %v6613_v31, %v6613_v31  ;;  %v5527_v30 = vld [vmem:[%s5887_s1 + $0x34] ss:$8 sps:$4 sm:$0xff]  }
0x1385   : > { %v3443_v25 = vpop.xlane.xlu0 %3442  ;;  %3679 = vmatprep.subr.bf16.mxu1 %v5527_v30 }
0x1386   : > { %v3458_v4 = vmul.f32 0.0078125, %v3443_v25  ;;  %3481 = vadd.xlane.f32.xlu1 %v3472_v62  ;;  %v3473_v53 = vmul.f32 %v6617_v27, %v6617_v27  ;;  %3680 = vmatpush1.bf16.msra.mxu1 %v5525_v7 }
0x1387   : > { %3681 = vmatprep.subr.bf16.mxu1 %v5530_v14 }
0x1388   : > { %v6623_v24 = vsub.f32 %v3427_v60, %v3458_v4  ;;  %3483 = vadd.xlane.f32.xlu0 %v3473_v53  ;;  %v5528_v60 = vld [vmem:[%s5887_s1 + $0x40] ss:$8 sps:$4 sm:$0xff]  }
0x1389   : > { %v3445_v47 = vpop.xlane.xlu0 %3444 }
0x138a   : > { %v3459_v49 = vmul.f32 0.0078125, %v3445_v47  ;;  %v3474_v23 = vmul.f32 %v6623_v24, %v6623_v24  ;;  %3682 = vmatpush1.bf16.msra.mxu1 %v5528_v60 }
0x138b   : > { %v3447_v19 = vpop.xlane.xlu1 %3446  ;;  %3683 = vmatprep.subr.bf16.mxu1 %v5533_v58 }
0x138c   : > { %v6627_v8 = vsub.f32 %v3428_v22, %v3459_v49  ;;  %v3460_v52 = vmul.f32 0.0078125, %v3447_v19  ;;  %3485 = vadd.xlane.f32.xlu1 %v3474_v23 }
0x138d   : > { %v3453_v44 = vpop.xlane.xlu0 %3452 }
0x138e   : > { %v6629_v32 = vsub.f32 %v3429_v6, %v3460_v52  ;;  %v3462_v61 = vmul.f32 0.0078125, %v3453_v44  ;;  %v3475_v43 = vmul.f32 %v6627_v8, %v6627_v8  ;;  %3684 = vmatpush1.bf16.msra.mxu1 %v5531_v10  ;;  %v3543_v52 = vrot.slane %v3435_v1, %v5960_v54  ;;  %v5554_v1 = vld [vmem:[%s5898_s0 + $0x78] sm:$0xff]  }
0x138f   : > { %v3449_v9 = vpop.xlane.xlu1 %3448  ;;  %3685 = vmatprep.subr.bf16.mxu1 %v5536_v50 }
0x1390   : > { %v6633_v35 = vsub.f32 %v3431_v36, %v3462_v61  ;;  %v3461_v34 = vmul.f32 0.0078125, %v3449_v9  ;;  %3487 = vadd.xlane.f32.xlu0 %v3475_v43  ;;  %v3476_v13 = vmul.f32 %v6629_v32, %v6629_v32 }
0x1392   : > { %v6638_v63 = vsub.f32 %v3430_v26, %v3461_v34  ;;  %3489 = vadd.xlane.f32.xlu1 %v3476_v13  ;;  %v3478_v3 = vmul.f32 %v6633_v35, %v6633_v35  ;;  %3686 = vmatpush1.bf16.msra.mxu1 %v5534_v17 }
0x1393   : > { %3687 = vmatprep.subr.bf16.mxu1 %v5539_v18 }
0x1394   : > { %v3477_v11 = vmul.f32 %v6638_v63, %v6638_v63  ;;  %v3493_v29 = vsel %vm3450_vm10, %v3478_v3, 0.0 }
0x1396   : > { %3491 = vadd.xlane.f32.xlu0 %v3477_v11  ;;  %3494 = vadd.xlane.f32.xlu1 %v3493_v29 }
0x1397   : > { %3688 = vmatpush1.bf16.msra.mxu1 %v5537_v56 }
0x1411   : > { %v3480_v46 = vpop.xlane.xlu0 %3479 }
0x1412   : > { %v3496_v22 = vmul.f32 0.0078125, %v3480_v46 }
0x1413   : > { %v3482_v39 = vpop.xlane.xlu1 %3481 }
0x1414   : > { %v3504_v33 = vadd.f32 1e-05, %v3496_v22  ;;  %v3497_v36 = vmul.f32 0.0078125, %v3482_v39 }
0x1415   : > { %v3484_v42 = vpop.xlane.xlu0 %3483 }
0x1416   : > { %5684 = vrsqrt.f32 %v3504_v33  ;;  %v3505_v41 = vadd.f32 1e-05, %v3497_v36  ;;  %v3498_v6 = vmul.f32 0.0078125, %v3484_v42 }
0x1418   : > { %5686 = vrsqrt.f32 %v3505_v41  ;;  %v3506_v59 = vadd.f32 1e-05, %v3498_v6  ;;  %v5540_v41 = vld [vmem:[%s5898_s0 + $0x40] sm:$0xff]  }
0x1419   : > { %v3486_v26 = vpop.xlane.xlu1 %3485  ;;  %v5541_v6 = vld [vmem:[%s5898_s0] sm:$0xff]   ;;  %4803 = vmatprep.subr.bf16.mxu0 %v5540_v41 }
0x141a   : > { %5688 = vrsqrt.f32 %v3506_v59  ;;  %v3499_v45 = vmul.f32 0.0078125, %v3486_v26  ;;  %4804 = vmatpush3.bf16.msra.mxu0 %v5541_v6  ;;  %v5543_v59 = vld [vmem:[%s5898_s0 + $0x8] sm:$0xff]   ;;  %v5545_v26 = vld [vmem:[%s5898_s0 + $0x10] sm:$0xff]  }
0x141b   : > { %4805 = vmatprep.subr.bf16.mxu0 %v5542_v38 }
0x141c   : > { %v3507_v5 = vadd.f32 1e-05, %v3499_v45  ;;  %v5546_v45 = vld [vmem:[%s5898_s0 + $0x58] sm:$0xff]  }
0x141d   : > { %v3488_v57 = vpop.xlane.xlu0 %3487 }
0x141e   : > { %5690 = vrsqrt.f32 %v3507_v5  ;;  %v3500_v48 = vmul.f32 0.0078125, %v3488_v57  ;;  %4806 = vmatpush3.bf16.msra.mxu0 %v5543_v59  ;;  %v5548_v5 = vld [vmem:[%s5898_s0 + $0x60] sm:$0xff]   ;;  %v5550_v57 = vld [vmem:[%s5898_s0 + $0x68] sm:$0xff]  }
0x141f   : > { %v3490_v40 = vpop.xlane.xlu1 %3489 }
0x1420   : > { %v5685_v21 = vpop.eup %5684  ;;  %v3508_v37 = vadd.f32 1e-05, %v3500_v48  ;;  %v3501_v62 = vmul.f32 0.0078125, %v3490_v40  ;;  %v5551_v48 = vld [vmem:[%s5898_s0 + $0x28] sm:$0xff]   ;;  %v5553_v40 = vld [vmem:[%s5898_s0 + $0x30] sm:$0xff]  }
0x1421   : > { %v3520_v25 = vmul.f32 %v5685_v21, %v6611_v12  ;;  %v5555_v21 = vld [vmem:[%s5898_s0 + $0x38] sm:$0xff]  }
0x1422   : > { %v5687_v4 = vpop.eup %5686  ;;  %5692 = vrsqrt.f32 %v3508_v37  ;;  %v3509_v53 = vadd.f32 1e-05, %v3501_v62  ;;  %v3572_v37 = vld [vmem:[%s5893_s30] sm:$0x3] }
0x1423   : > { %v3532_v47 = vmul.f32 %v3531_v28, %v3520_v25  ;;  %v3521_v49 = vmul.f32 %v5687_v4, %v6613_v31  ;;  %v3495_v23 = vpop.xlane.xlu1 %3494  ;;  %v3492_v19 = vpop.xlane.xlu0 %3491  ;;  %v3573_v62 = vunpack.c.l.bf16 %v3572_v37 }
0x1424   : > { %v5689_v44 = vpop.eup %5688  ;;  %5694 = vrsqrt.f32 %v3509_v53  ;;  %v3503_v61 = vmul.f32 0.0078125, %v3495_v23  ;;  %v3502_v43 = vmul.f32 0.0078125, %v3492_v19 }
0x1425   : > { %v3533_v9 = vmul.f32 %v3531_v28, %v3521_v49  ;;  %v6670_v16 = vadd.f32 %v3543_v52, %v3532_v47  ;;  %v3522_v3 = vmul.f32 %v5689_v44, %v6617_v27  ;;  %v3578_v25 = vrot.slane %v3573_v62, %v5960_v54 }
0x1426   : > { %v3511_v34 = vadd.f32 1e-05, %v3503_v61  ;;  %v3510_v13 = vadd.f32 1e-05, %v3502_v43  ;;  %v3582_v4 = vrot.slane %v3573_v62, %v686_v55 }
0x1427   : > { %v6672_v12 = vadd.f32 %v3543_v52, %v3533_v9  ;;  %v3534_v29 = vmul.f32 %v3531_v28, %v3522_v3  ;;  %v6724_v53 = vrot.slane %v3578_v25, %v5960_v54 }
0x1428   : > { %v5691_v2 = vpop.eup %5690  ;;  %5696 = vrsqrt.f32 %v3511_v34  ;;  %v6727_v47 = vrot.slane %v3582_v4, %v5960_v54 }
0x1429   : > { %5698 = vrsqrt.f32 %v3510_v13  ;;  %v3568_v31 = vpack.c.bf16 %v6672_v12, %v6670_v16  ;;  %v3523_v11 = vmul.f32 %v5691_v2, %v6623_v24  ;;  %v6681_v58 = vadd.f32 %v3543_v52, %v3534_v29 }
0x142b   : > { %3706 = vmatmul.mubr.bf16.vlgmr.msra.gmra.mrb[48].mxu1 %v3568_v31  ;;  %v3535_v30 = vmul.f32 %v3531_v28, %v3523_v11 }
0x142c   : > { %v5693_v7 = vpop.eup %5692  ;;  %3715 = vmatprep.mubr.bf16.mxu1 %v5764_v15 }
0x142d   : > { %v6679_v14 = vadd.f32 %v3543_v52, %v3535_v30  ;;  %v3524_v27 = vmul.f32 %v5693_v7, %v6627_v8 }
0x142e   : > { %v5695_v60 = vpop.eup %5694 }
0x142f   : > { %v3525_v10 = vmul.f32 %v5695_v60, %v6629_v32  ;;  %v3569_v50 = vpack.c.bf16 %v6679_v14, %v6681_v58  ;;  %v3536_v56 = vmul.f32 %v3531_v28, %v3524_v27 }
0x1431   : > { %v3537_v17 = vmul.f32 %v3531_v28, %v3525_v10  ;;  %v6692_v32 = vadd.f32 %v3543_v52, %v3536_v56 }
0x1432   : > { %v5697_v24 = vpop.eup %5696 }
0x1433   : > { %v5699_v18 = vpop.eup %5698  ;;  %3716 = vmatmul.mubr.bf16.gmra.mrb[52].mxu1 %v3569_v50  ;;  %v6688_v46 = vadd.f32 %v3543_v52, %v3537_v17  ;;  %v3527_v8 = vmul.f32 %v5697_v24, %v6633_v35 }
0x1434   : > { %3725 = vmatprep.mubr.bf16.mxu1 %v5764_v15  ;;  %v3526_v22 = vmul.f32 %v5699_v18, %v6638_v63 }
0x1435   : > { %v3570_v39 = vpack.c.bf16 %v6688_v46, %v6692_v32  ;;  %v3539_v36 = vmul.f32 %v3531_v28, %v3527_v8 }
0x1436   : > { %v3538_v33 = vmul.f32 %v3531_v28, %v3526_v22  ;;  %v5552_v28 = vld [vmem:[%s5898_s0 + $0x70] sm:$0xff]  }
0x1437   : > { %v6699_v63 = vadd.f32 %v3543_v52, %v3539_v36 }
0x1438   : > { %v6697_v42 = vadd.f32 %v3543_v52, %v3538_v33 }
0x143a   : > { %v3571_v35 = vpack.c.bf16 %v6699_v63, %v6697_v42 }
0x143b   : > { %3726 = vmatmul.mubr.bf16.gmra.mrb[56].mxu1 %v3570_v39 }
0x143c   : > { %3735 = vmatprep.mubr.bf16.mxu1 %v5764_v15  ;;  %v5544_v15 = vld [vmem:[%s5898_s0 + $0x50] sm:$0xff]  }
0x143d   : > { %4807 = vmatprep.subr.bf16.mxu0 %v5544_v15 }
0x143e   : > { %4808 = vmatpush3.bf16.msra.mxu0 %v5545_v26 }
0x143f   : > { %4809 = vmatprep.subr.bf16.mxu0 %v5546_v45 }
0x1442   : > { %4810 = vmatpush3.bf16.msra.mxu0 %v5547_v0 }
0x1443   : > { %3736 = vmatmul.mubr.bf16.gmra.mrb[60].mxu1 %v3571_v35  ;;  %4811 = vmatprep.subr.bf16.mxu0 %v5548_v5 }
0x1446   : > { %4812 = vmatpush3.bf16.msra.mxu0 %v5549_v20 }
0x1447   : > { %4813 = vmatprep.subr.bf16.mxu0 %v5550_v57 }
0x144a   : > { %4814 = vmatpush3.bf16.msra.mxu0 %v5551_v48 }
0x144b   : > { %4815 = vmatprep.subr.bf16.mxu0 %v5552_v28 }
0x144e   : > { %4816 = vmatpush3.bf16.msra.mxu0 %v5553_v40 }
0x144f   : > { %4817 = vmatprep.subr.bf16.mxu0 %v5554_v1 }
0x1452   : > { %4818 = vmatpush3.bf16.msra.mxu0 %v5555_v21 }
0x14fe   : > { %v3707_v49 = vpop.f32.mrb[48].mxu1 }
0x14ff   : > { %v6730_v23 = vadd.f32 %v3707_v49, %v6724_v53  ;;  %v3709_v19 = vpop.f32.mrb[49].mxu1 }
0x1500   : > { %v6733_v52 = vadd.f32 %v3709_v19, %v6727_v47  ;;  %v3711_v44 = vpop.f32.mrb[50].mxu1 }
0x1501   : > { %v3746_v61 = vmul.f32 %v6730_v23, %v6730_v23  ;;  %v6738_v51 = vadd.f32 %v3711_v44, %v6724_v53  ;;  %v3713_v55 = vpop.f32.mrb[51].mxu1 }
0x1502   : > { %v3747_v43 = vmul.f32 %v6733_v52, %v6733_v52  ;;  %v6743_v9 = vadd.f32 %v3713_v55, %v6727_v47 }
0x1503   : > { %v3762_v34 = vmul.f32 %v3746_v61, %v6730_v23  ;;  %v3748_v13 = vmul.f32 %v6738_v51, %v6738_v51 }
0x1504   : > { %v3763_v3 = vmul.f32 %v3747_v43, %v6733_v52  ;;  %v3749_v2 = vmul.f32 %v6743_v9, %v6743_v9 }
0x1505   : > { %v3778_v31 = vmul.f32 0.044715, %v3762_v34  ;;  %v3764_v11 = vmul.f32 %v3748_v13, %v6738_v51 }
0x1506   : > { %v3779_v29 = vmul.f32 0.044715, %v3763_v3  ;;  %v3765_v30 = vmul.f32 %v3749_v2, %v6743_v9  ;;  %v3717_v7 = vpop.f32.mrb[52].mxu1 }
0x1507   : > { %v3794_v60 = vadd.f32 %v3778_v31, %v6730_v23  ;;  %v3780_v27 = vmul.f32 0.044715, %v3764_v11  ;;  %v6755_v10 = vadd.f32 %v3717_v7, %v6724_v53  ;;  %v3719_v50 = vpop.f32.mrb[53].mxu1 }
0x1508   : > { %v3795_v17 = vadd.f32 %v3779_v29, %v6733_v52  ;;  %v3781_v24 = vmul.f32 0.044715, %v3765_v30  ;;  %v6759_v18 = vadd.f32 %v3719_v50, %v6727_v47  ;;  %v3721_v56 = vpop.f32.mrb[54].mxu1 }
0x1509   : > { %v3810_v22 = vmul.f32 0.7978846, %v3794_v60  ;;  %v3796_v8 = vadd.f32 %v3780_v27, %v6738_v51  ;;  %v3750_v39 = vmul.f32 %v6755_v10, %v6755_v10  ;;  %v6765_v33 = vadd.f32 %v3721_v56, %v6724_v53  ;;  %v3723_v36 = vpop.f32.mrb[55].mxu1 }
0x150a   : > { %v3811_v35 = vmul.f32 0.7978846, %v3795_v17  ;;  %v3797_v41 = vadd.f32 %v3781_v24, %v6743_v9  ;;  %v3751_v6 = vmul.f32 %v6759_v18, %v6759_v18  ;;  %v6771_v38 = vadd.f32 %v3723_v36, %v6727_v47 }
0x150b   : > { %5700 = vtanh.f32 %v3810_v22  ;;  %v3812_v59 = vmul.f32 0.7978846, %v3796_v8  ;;  %v3766_v15 = vmul.f32 %v3750_v39, %v6755_v10  ;;  %v3752_v26 = vmul.f32 %v6765_v33, %v6765_v33 }
0x150c   : > { %5702 = vtanh.f32 %v3811_v35  ;;  %v3813_v45 = vmul.f32 0.7978846, %v3797_v41  ;;  %v3767_v0 = vmul.f32 %v3751_v6, %v6759_v18  ;;  %v3753_v5 = vmul.f32 %v6771_v38, %v6771_v38 }
0x150d   : > { %5704 = vtanh.f32 %v3812_v59  ;;  %v3782_v20 = vmul.f32 0.044715, %v3766_v15  ;;  %v3768_v57 = vmul.f32 %v3752_v26, %v6765_v33 }
0x150e   : > { %v3783_v48 = vmul.f32 0.044715, %v3767_v0  ;;  %v3769_v28 = vmul.f32 %v3753_v5, %v6771_v38  ;;  %v3727_v40 = vpop.f32.mrb[56].mxu1  ;;  %5706 = vtanh.f32 %v3813_v45 }
0x150f   : > { %v3798_v1 = vadd.f32 %v3782_v20, %v6755_v10  ;;  %v3784_v21 = vmul.f32 0.044715, %v3768_v57  ;;  %v6783_v37 = vadd.f32 %v3727_v40, %v6724_v53  ;;  %v3729_v62 = vpop.f32.mrb[57].mxu1 }
0x1510   : > { %v3799_v25 = vadd.f32 %v3783_v48, %v6759_v18  ;;  %v3785_v4 = vmul.f32 0.044715, %v3769_v28  ;;  %v6787_v49 = vadd.f32 %v3729_v62, %v6727_v47  ;;  %v3731_v19 = vpop.f32.mrb[58].mxu1 }
0x1511   : > { %v3814_v44 = vmul.f32 0.7978846, %v3798_v1  ;;  %v3800_v61 = vadd.f32 %v3784_v21, %v6765_v33  ;;  %v3754_v55 = vmul.f32 %v6783_v37, %v6783_v37  ;;  %v6793_v43 = vadd.f32 %v3731_v19, %v6724_v53  ;;  %v3733_v34 = vpop.f32.mrb[59].mxu1 }
0x1512   : > { %v3815_v13 = vmul.f32 0.7978846, %v3799_v25  ;;  %v3801_v3 = vadd.f32 %v3785_v4, %v6771_v38  ;;  %v3755_v2 = vmul.f32 %v6787_v49, %v6787_v49  ;;  %v6799_v31 = vadd.f32 %v3733_v34, %v6727_v47 }
0x1513   : > { %5708 = vtanh.f32 %v3814_v44  ;;  %v3816_v11 = vmul.f32 0.7978846, %v3800_v61  ;;  %v3770_v29 = vmul.f32 %v3754_v55, %v6783_v37  ;;  %v3756_v30 = vmul.f32 %v6793_v43, %v6793_v43 }
0x1514   : > { %5710 = vtanh.f32 %v3815_v13  ;;  %v3817_v7 = vmul.f32 0.7978846, %v3801_v3  ;;  %v3771_v60 = vmul.f32 %v3755_v2, %v6787_v49  ;;  %v3757_v27 = vmul.f32 %v6799_v31, %v6799_v31 }
0x1515   : > { %v5701_v50 = vpop.eup %5700  ;;  %5712 = vtanh.f32 %v3816_v11  ;;  %v3786_v17 = vmul.f32 0.044715, %v3770_v29  ;;  %v3772_v24 = vmul.f32 %v3756_v30, %v6793_v43 }
0x1516   : > { %v5703_v56 = vpop.eup %5702  ;;  %v3842_v22 = vadd.f32 1.0, %v5701_v50  ;;  %5714 = vtanh.f32 %v3817_v7  ;;  %v3787_v8 = vmul.f32 0.044715, %v3771_v60  ;;  %v3773_v39 = vmul.f32 %v3757_v27, %v6799_v31  ;;  %v3737_v36 = vpop.f32.mrb[60].mxu1 }
0x1517   : > { %v5705_v35 = vpop.eup %5704  ;;  %v3802_v41 = vadd.f32 %v3786_v17, %v6783_v37  ;;  %v3788_v6 = vmul.f32 0.044715, %v3772_v24  ;;  %v6811_v59 = vadd.f32 %v3737_v36, %v6724_v53  ;;  %v3739_v15 = vpop.f32.mrb[61].mxu1  ;;  %v3843_v26 = vadd.f32 1.0, %v5703_v56 }
0x1518   : > { %v3858_v45 = vmul.f32 0.5, %v3842_v22  ;;  %v3844_v0 = vadd.f32 1.0, %v5705_v35  ;;  %v3803_v5 = vadd.f32 %v3787_v8, %v6787_v49  ;;  %v3789_v20 = vmul.f32 0.044715, %v3773_v39  ;;  %v3741_v57 = vpop.f32.mrb[62].mxu1  ;;  %v5707_v62 = vpop.eup %5706 }
0x1519   : > { %v3818_v48 = vmul.f32 0.7978846, %v3802_v41  ;;  %v3804_v28 = vadd.f32 %v3788_v6, %v6793_v43  ;;  %v3758_v40 = vmul.f32 %v6811_v59, %v6811_v59  ;;  %v6818_v1 = vadd.f32 %v3739_v15, %v6727_v47  ;;  %v3743_v21 = vpop.f32.mrb[63].mxu1 }
0x151a   : > { %v3874_v25 = vmul.f32 %v3858_v45, %v6730_v23  ;;  %v3860_v4 = vmul.f32 0.5, %v3844_v0  ;;  %v3819_v19 = vmul.f32 0.7978846, %v3803_v5  ;;  %v3805_v44 = vadd.f32 %v3789_v20, %v6799_v31 }
0x151b   : > { %5716 = vtanh.f32 %v3818_v48  ;;  %v3820_v61 = vmul.f32 0.7978846, %v3804_v28  ;;  %v3774_v55 = vmul.f32 %v3758_v40, %v6811_v59  ;;  %v3759_v34 = vmul.f32 %v6818_v1, %v6818_v1 }
0x151c   : > { %v3876_v13 = vmul.f32 %v3860_v4, %v6738_v51  ;;  %5718 = vtanh.f32 %v3819_v19  ;;  %v3821_v3 = vmul.f32 0.7978846, %v3805_v44  ;;  %v6827_v2 = vadd.f32 %v3741_v57, %v6724_v53 }
0x151d   : > { %v5709_v11 = vpop.eup %5708  ;;  %5720 = vtanh.f32 %v3820_v61  ;;  %v3790_v23 = vmul.f32 0.044715, %v3774_v55  ;;  %v3775_v29 = vmul.f32 %v3759_v34, %v6818_v1  ;;  %v6831_v30 = vadd.f32 %v3743_v21, %v6727_v47 }
0x151e   : > { %v5711_v7 = vpop.eup %5710  ;;  %v3922_v60 = vpack.c.bf16 %v3876_v13, %v3874_v25  ;;  %5722 = vtanh.f32 %v3821_v3  ;;  %v3760_v27 = vmul.f32 %v6827_v2, %v6827_v2  ;;  %v3845_v51 = vadd.f32 1.0, %v5707_v62 }
0x151f   : > { %v5713_v50 = vpop.eup %5712  ;;  %v3806_v17 = vadd.f32 %v3790_v23, %v6811_v59  ;;  %v3791_v53 = vmul.f32 0.044715, %v3775_v29  ;;  %v3761_v24 = vmul.f32 %v6831_v30, %v6831_v30  ;;  %v3859_v56 = vmul.f32 0.5, %v3843_v26 }
0x1520   : > { %v5715_v22 = vpop.eup %5714  ;;  %v3776_v8 = vmul.f32 %v3760_v27, %v6827_v2  ;;  %v3861_v47 = vmul.f32 0.5, %v3845_v51  ;;  %v3847_v39 = vadd.f32 1.0, %v5711_v7  ;;  %v3846_v36 = vadd.f32 1.0, %v5709_v11 }
0x1521   : > { %v3822_v35 = vmul.f32 0.7978846, %v3806_v17  ;;  %v3807_v41 = vadd.f32 %v3791_v53, %v6818_v1  ;;  %v3777_v6 = vmul.f32 %v3761_v24, %v6831_v30  ;;  %v3875_v15 = vmul.f32 %v3859_v56, %v6733_v52 }
0x1522   : > { %v3792_v45 = vmul.f32 0.044715, %v3776_v8  ;;  %v3877_v0 = vmul.f32 %v3861_v47, %v6743_v9  ;;  %v3849_v5 = vadd.f32 1.0, %v5715_v22  ;;  %v3863_v20 = vmul.f32 0.5, %v3847_v39 }
0x1523   : > { %5724 = vtanh.f32 %v3822_v35  ;;  %v3823_v26 = vmul.f32 0.7978846, %v3807_v41  ;;  %v3793_v57 = vmul.f32 0.044715, %v3777_v6  ;;  %v3848_v48 = vadd.f32 1.0, %v5713_v50 }
0x1524   : > { %v3808_v28 = vadd.f32 %v3792_v45, %v6827_v2  ;;  %v3923_v40 = vpack.c.bf16 %v3877_v0, %v3875_v15  ;;  %v3865_v21 = vmul.f32 0.5, %v3849_v5  ;;  %v3862_v4 = vmul.f32 0.5, %v3846_v36 }
0x1525   : > { %v5717_v62 = vpop.eup %5716  ;;  %5726 = vtanh.f32 %v3823_v26  ;;  %v3809_v25 = vadd.f32 %v3793_v57, %v6831_v30  ;;  %v3864_v19 = vmul.f32 0.5, %v3848_v48  ;;  %v3879_v9 = vmul.f32 %v3863_v20, %v6759_v18  ;;  %v3930_v48 = vld [vmem:[%s597_s15] sm:$0x1] }
0x1526   : > { %v5719_v52 = vpop.eup %5718  ;;  %v3824_v44 = vmul.f32 0.7978846, %v3808_v28  ;;  %4064 = vmatprep.mubr.bf16.mxu0 %v3923_v40  ;;  %v3881_v61 = vmul.f32 %v3865_v21, %v6771_v38  ;;  %v3850_v55 = vadd.f32 1.0, %v5717_v62  ;;  %v3878_v3 = vmul.f32 %v3862_v4, %v6755_v10 }
0x1527   : > { %v5721_v34 = vpop.eup %5720  ;;  %v3825_v13 = vmul.f32 0.7978846, %v3809_v25  ;;  %4065 = vmatmul.mubr.bf16.vlgmr.msra.gmra.mrb[48].mxu0 %v3922_v60  ;;  %v3880_v11 = vmul.f32 %v3864_v19, %v6765_v33  ;;  %v3851_v23 = vadd.f32 1.0, %v5719_v52  ;;  %v3931_v28 = vunpack.c.l.bf16 %v3930_v48 }
0x1528   : > { %v5723_v29 = vpop.eup %5722  ;;  %5728 = vtanh.f32 %v3824_v44  ;;  %v3925_v7 = vpack.c.bf16 %v3881_v61, %v3879_v9  ;;  %v3852_v27 = vadd.f32 1.0, %v5721_v34  ;;  %v3866_v51 = vmul.f32 0.5, %v3850_v55 }
0x1529   : > { %5730 = vtanh.f32 %v3825_v13  ;;  %v3924_v50 = vpack.c.bf16 %v3880_v11, %v3878_v3  ;;  %v3853_v17 = vadd.f32 1.0, %v5723_v29  ;;  %v3867_v18 = vmul.f32 0.5, %v3851_v23 }
0x152a   : > { %4072 = vmatprep.mubr.bf16.mxu0 %v3925_v7  ;;  %v3868_v38 = vmul.f32 0.5, %v3852_v27  ;;  %v3882_v24 = vmul.f32 %v3866_v51, %v6783_v37  ;;  %v3935_v21 = vrot.slane %v3931_v28, %v5960_v54 }
0x152b   : > { %v3869_v53 = vmul.f32 0.5, %v3853_v17  ;;  %v3883_v33 = vmul.f32 %v3867_v18, %v6787_v49 }
0x152c   : > { %v3884_v60 = vmul.f32 %v3868_v38, %v6793_v43 }
0x152d   : > { %v5725_v10 = vpop.eup %5724  ;;  %v3885_v56 = vmul.f32 %v3869_v53, %v6799_v31 }
0x152e   : > { %v3926_v22 = vpack.c.bf16 %v3884_v60, %v3882_v24  ;;  %v3854_v39 = vadd.f32 1.0, %v5725_v10 }
0x152f   : > { %v5727_v8 = vpop.eup %5726  ;;  %4073 = vmatmul.mubr.bf16.gmra.mrb[52].mxu0 %v3924_v50  ;;  %v3927_v47 = vpack.c.bf16 %v3885_v56, %v3883_v33 }
0x1530   : > { %v3855_v36 = vadd.f32 1.0, %v5727_v8  ;;  %v3870_v15 = vmul.f32 0.5, %v3854_v39 }
0x1531   : > { %4080 = vmatprep.mubr.bf16.mxu0 %v3927_v47 }
0x1532   : > { %v5729_v35 = vpop.eup %5728  ;;  %v3871_v45 = vmul.f32 0.5, %v3855_v36  ;;  %v3886_v49 = vmul.f32 %v3870_v15, %v6811_v59 }
0x1533   : > { %v5731_v41 = vpop.eup %5730  ;;  %v3856_v6 = vadd.f32 1.0, %v5729_v35 }
0x1534   : > { %v3857_v37 = vadd.f32 1.0, %v5731_v41  ;;  %v3887_v5 = vmul.f32 %v3871_v45, %v6818_v1 }
0x1535   : > { %v3872_v43 = vmul.f32 0.5, %v3856_v6 }
0x1536   : > { %v3873_v0 = vmul.f32 0.5, %v3857_v37 }
0x1537   : > { %4081 = vmatmul.mubr.bf16.gmra.mrb[56].mxu0 %v3926_v22  ;;  %v3888_v31 = vmul.f32 %v3872_v43, %v6827_v2 }
0x1538   : > { %v3889_v20 = vmul.f32 %v3873_v0, %v6831_v30 }
0x1539   : > { %v3928_v26 = vpack.c.bf16 %v3888_v31, %v3886_v49 }
0x153a   : > { %v3929_v57 = vpack.c.bf16 %v3889_v20, %v3887_v5 }
0x153c   : > { %4088 = vmatprep.mubr.bf16.mxu0 %v3929_v57 }
0x153f   : > { %4089 = vmatmul.mubr.bf16.gmra.mrb[60].mxu0 %v3928_v26 }
0x15fa   : > { %v4819_v40 = vpop.f32.mrb[48].mxu0 }
0x15fb   : > { %v4820_v59 = vpop.f32.mrb[49].mxu0 }
0x15fc   : > { %v4821_v62 = vadd.f32 %v4820_v59, %v4819_v40  ;;  %v4822_v2 = vpop.f32.mrb[50].mxu0 }
0x15fd   : > { %v4823_v25 = vpop.f32.mrb[51].mxu0 }
0x15fe   : > { %v6863_v1 = vadd.f32 %v4821_v62, %v3935_v21  ;;  %v4824_v30 = vadd.f32 %v4823_v25, %v4822_v2 }
0x1600   : > { %v6865_v4 = vadd.f32 %v4824_v30, %v3935_v21  ;;  %v4097_v19 = vadd.f32 %v6863_v1, %v6670_v16 }
0x1602   : > { %4109 = vadd.xlane.f32.xlu1 %v4097_v19  ;;  %v4825_v52 = vpop.f32.mrb[52].mxu0  ;;  %v4098_v44 = vadd.f32 %v6865_v4, %v6672_v12 }
0x1603   : > { %v4826_v9 = vpop.f32.mrb[53].mxu0 }
0x1604   : > { %v4827_v61 = vadd.f32 %v4826_v9, %v4825_v52  ;;  %4111 = vadd.xlane.f32.xlu0 %v4098_v44  ;;  %v4828_v55 = vpop.f32.mrb[54].mxu0 }
0x1605   : > { %v4829_v34 = vpop.f32.mrb[55].mxu0 }
0x1606   : > { %v6871_v13 = vadd.f32 %v4827_v61, %v3935_v21  ;;  %v4830_v3 = vadd.f32 %v4829_v34, %v4828_v55 }
0x1608   : > { %v6873_v11 = vadd.f32 %v4830_v3, %v3935_v21  ;;  %v4099_v23 = vadd.f32 %v6871_v13, %v6681_v58 }
0x160a   : > { %4113 = vadd.xlane.f32.xlu1 %v4099_v23  ;;  %v4831_v16 = vpop.f32.mrb[56].mxu0  ;;  %v4100_v29 = vadd.f32 %v6873_v11, %v6679_v14 }
0x160b   : > { %v4832_v7 = vpop.f32.mrb[57].mxu0 }
0x160c   : > { %v4833_v12 = vadd.f32 %v4832_v7, %v4831_v16  ;;  %4115 = vadd.xlane.f32.xlu0 %v4100_v29  ;;  %v4834_v27 = vpop.f32.mrb[58].mxu0  ;;  %v4105_v7 = vld [vmem:[%s600_s28] sm:$0x1]  ;;  %s7009_s28 = sld [smem:[#allocation9_spill]] (!%p4598_p5) }
0x160d   : > { %v4835_v51 = vpop.f32.mrb[59].mxu0 }
0x160e   : > { %v6879_v50 = vadd.f32 %v4833_v12, %v3935_v21  ;;  %v4836_v17 = vadd.f32 %v4835_v51, %v4834_v27  ;;  %v4107_v27 = vld [vmem:[%s603_s7] sm:$0x1] }
0x1610   : > { %v4101_v18 = vadd.f32 %v6879_v50, %v6692_v32  ;;  %v6891_v8 = vadd.f32 %v4836_v17, %v3935_v21  ;;  %v4106_v17 = vunpack.c.l.bf16 %v4105_v7 }
0x1612   : > { %4117 = vadd.xlane.f32.xlu1 %v4101_v18  ;;  %v4837_v38 = vpop.f32.mrb[60].mxu0  ;;  %v4102_v47 = vadd.f32 %v6891_v8, %v6688_v46 }
0x1613   : > { %v4838_v53 = vpop.f32.mrb[61].mxu0 }
0x1614   : > { %v4839_v58 = vadd.f32 %v4838_v53, %v4837_v38  ;;  %v4840_v24 = vpop.f32.mrb[62].mxu0 }
0x1615   : > { %v4841_v60 = vpop.f32.mrb[63].mxu0 }
0x1616   : > { %v6883_v10 = vadd.f32 %v4839_v58, %v3935_v21  ;;  %v4842_v14 = vadd.f32 %v4841_v60, %v4840_v24  ;;  %v4108_v58 = vunpack.c.l.bf16 %v4107_v27  ;;  %v4202_v60 = vrot.slane %v4106_v17, %v5960_v54 }
0x1618   : > { %v6885_v33 = vadd.f32 %v4842_v14, %v3935_v21  ;;  %v4103_v56 = vadd.f32 %v6883_v10, %v6697_v42  ;;  %v4618_v17 = vpack.c.bf16 (!%p4598_p5), %v6883_v10, %v6883_v10 }
0x161a   : > { %4121 = vadd.xlane.f32.xlu1 %v4103_v56  ;;  %v4104_v22 = vadd.f32 %v6885_v33, %v6699_v63  ;;  %4273 = vst [vmem:[%s7009_s28 + $0x18] sm:$0xf] (!%p4598_p5), %v4618_v17 }
0x161c   : > { %v4123_v32 = vsel %vm3450_vm10, %v4104_v22, 0.0 }
0x161d   : > { %4124 = vadd.xlane.f32.xlu0 %v4123_v32 }
0x1621   : > { %4119 = vadd.xlane.f32.xlu0 %v4102_v47 }
0x168f   : > { %v4110_v39 = vpop.xlane.xlu1 %4109 }
0x1690   : > { %v4126_v36 = vmul.f32 0.0078125, %v4110_v39 }
0x1691   : > { %v4112_v35 = vpop.xlane.xlu0 %4111 }
0x1692   : > { %v4134_v41 = vsub.f32 %v4097_v19, %v4126_v36  ;;  %v4127_v6 = vmul.f32 0.0078125, %v4112_v35 }
0x1694   : > { %v6896_v15 = vsub.f32 %v4098_v44, %v4127_v6  ;;  %v4142_v42 = vmul.f32 %v4134_v41, %v4134_v41 }
0x1696   : > { %4150 = vadd.xlane.f32.xlu0 %v4142_v42  ;;  %v4143_v63 = vmul.f32 %v6896_v15, %v6896_v15 }
0x1697   : > { %v4114_v37 = vpop.xlane.xlu1 %4113 }
0x1698   : > { %v4128_v45 = vmul.f32 0.0078125, %v4114_v37  ;;  %4152 = vadd.xlane.f32.xlu1 %v4143_v63 }
0x1699   : > { %v4116_v43 = vpop.xlane.xlu0 %4115 }
0x169a   : > { %v6900_v0 = vsub.f32 %v4099_v23, %v4128_v45  ;;  %v4129_v46 = vmul.f32 0.0078125, %v4116_v43 }
0x169c   : > { %v6902_v49 = vsub.f32 %v4100_v29, %v4129_v46  ;;  %v4144_v31 = vmul.f32 %v6900_v0, %v6900_v0 }
0x169e   : > { %4154 = vadd.xlane.f32.xlu0 %v4144_v31  ;;  %v4145_v5 = vmul.f32 %v6902_v49, %v6902_v49 }
0x169f   : > { %v4118_v20 = vpop.xlane.xlu1 %4117 }
0x16a0   : > { %v4130_v26 = vmul.f32 0.0078125, %v4118_v20  ;;  %4156 = vadd.xlane.f32.xlu1 %v4145_v5 }
0x16a2   : > { %v6908_v57 = vsub.f32 %v4101_v18, %v4130_v26 }
0x16a4   : > { %v4146_v48 = vmul.f32 %v6908_v57, %v6908_v57 }
0x16a6   : > { %4158 = vadd.xlane.f32.xlu0 %v4146_v48 }
0x16a7   : > { %v4122_v28 = vpop.xlane.xlu1 %4121 }
0x16a8   : > { %v4132_v40 = vmul.f32 0.0078125, %v4122_v28 }
0x16aa   : > { %v6912_v21 = vsub.f32 %v4103_v56, %v4132_v40  ;;  %v4125_v59 = vpop.xlane.xlu0 %4124  ;;  %v4214_v56 = vrot.slane %v4108_v58, %v5960_v54 }
0x16ab   : > { %v4133_v62 = vmul.f32 0.0078125, %v4125_v59 }
0x16ac   : > { %v4148_v2 = vmul.f32 %v6912_v21, %v6912_v21 }
0x16ad   : > { %v6916_v19 = vsub.f32 %v4104_v22, %v4133_v62 }
0x16ae   : > { %4162 = vadd.xlane.f32.xlu0 %v4148_v2  ;;  %v4120_v25 = vpop.xlane.xlu0 %4119 }
0x16af   : > { %v4131_v30 = vmul.f32 0.0078125, %v4120_v25  ;;  %v4149_v9 = vmul.f32 %v6916_v19, %v6916_v19 }
0x16b1   : > { %v6918_v52 = vsub.f32 %v4102_v47, %v4131_v30  ;;  %v4164_v61 = vsel %vm3450_vm10, %v4149_v9, 0.0 }
0x16b3   : > { %v4147_v44 = vmul.f32 %v6918_v52, %v6918_v52 }
0x16b5   : > { %4160 = vadd.xlane.f32.xlu1 %v4147_v44 }
0x16b9   : > { %4165 = vadd.xlane.f32.xlu1 %v4164_v61 }
0x1723   : > { %v4151_v55 = vpop.xlane.xlu0 %4150 }
0x1724   : > { %v4167_v34 = vmul.f32 0.0078125, %v4151_v55 }
0x1725   : > { %v4153_v3 = vpop.xlane.xlu1 %4152 }
0x1726   : > { %v4175_v23 = vadd.f32 1e-05, %v4167_v34  ;;  %v4168_v16 = vmul.f32 0.0078125, %v4153_v3 }
0x1728   : > { %5732 = vrsqrt.f32 %v4175_v23  ;;  %v4176_v29 = vadd.f32 1e-05, %v4168_v16 }
0x172a   : > { %5734 = vrsqrt.f32 %v4176_v29 }
0x172b   : > { %v4155_v12 = vpop.xlane.xlu0 %4154 }
0x172c   : > { %v4169_v51 = vmul.f32 0.0078125, %v4155_v12 }
0x172d   : > { %v4157_v18 = vpop.xlane.xlu1 %4156 }
0x172e   : > { %v4177_v38 = vadd.f32 1e-05, %v4169_v51  ;;  %v4170_v53 = vmul.f32 0.0078125, %v4157_v18  ;;  %v4640_v51 = vpack.c.bf16 (!%p4598_p5), %v6873_v11, %v6871_v13 }
0x1730   : > { %5736 = vrsqrt.f32 %v4177_v38  ;;  %v4178_v24 = vadd.f32 1e-05, %v4170_v53  ;;  %4649 = vst [vmem:[%s7009_s28 + $0x8] sm:$0xff] (!%p4598_p5), %v4640_v51  }
0x1732   : > { %v5733_v14 = vpop.eup %5732  ;;  %5738 = vrsqrt.f32 %v4178_v24 }
0x1733   : > { %v4191_v22 = vmul.f32 %v5733_v14, %v4134_v41  ;;  %v4159_v32 = vpop.xlane.xlu0 %4158 }
0x1734   : > { %v5735_v47 = vpop.eup %5734  ;;  %v4171_v39 = vmul.f32 0.0078125, %v4159_v32 }
0x1735   : > { %v4203_v36 = vmul.f32 %v4202_v60, %v4191_v22  ;;  %v4192_v35 = vmul.f32 %v5735_v47, %v6896_v15 }
0x1736   : > { %v4179_v6 = vadd.f32 1e-05, %v4171_v39 }
0x1737   : > { %v4215_v42 = vadd.f32 %v4214_v56, %v4203_v36  ;;  %v4204_v63 = vmul.f32 %v4202_v60, %v4192_v35 }
0x1738   : > { %5740 = vrsqrt.f32 %v4179_v6 }
0x1739   : > { %4223 = vst [vmem:[#allocation2] sm:$0xff] %v4215_v42  ;;  %v4216_v37 = vadd.f32 %v4214_v56, %v4204_v63 }
0x173a   : > { %v5737_v45 = vpop.eup %5736 }
0x173b   : > { %4224 = vst [vmem:[#allocation2 + $0x8] sm:$0xff] %v4216_v37  ;;  %v4193_v43 = vmul.f32 %v5737_v45, %v6900_v0  ;;  %v4163_v46 = vpop.xlane.xlu0 %4162 }
0x173c   : > { %v5739_v31 = vpop.eup %5738  ;;  %v4173_v54 = vmul.f32 0.0078125, %v4163_v46 }
0x173d   : > { %v4205_v41 = vmul.f32 %v4202_v60, %v4193_v43  ;;  %v4194_v5 = vmul.f32 %v5739_v31, %v6902_v49 }
0x173e   : > { %v4181_v20 = vadd.f32 1e-05, %v4173_v54 }
0x173f   : > { %v4217_v26 = vadd.f32 %v4214_v56, %v4205_v41  ;;  %v4206_v48 = vmul.f32 %v4202_v60, %v4194_v5 }
0x1740   : > { %5742 = vrsqrt.f32 %v4181_v20 }
0x1741   : > { %4225 = vst [vmem:[#allocation2 + $0x10] sm:$0xff] %v4217_v26  ;;  %v4218_v15 = vadd.f32 %v4214_v56, %v4206_v48 }
0x1742   : > { %v5741_v28 = vpop.eup %5740  ;;  %v4161_v40 = vpop.xlane.xlu1 %4160 }
0x1743   : > { %4226 = vst [vmem:[#allocation2 + $0x18] sm:$0xff] %v4218_v15  ;;  %v4195_v59 = vmul.f32 %v5741_v28, %v6908_v57  ;;  %v4172_v62 = vmul.f32 0.0078125, %v4161_v40 }
0x1745   : > { %v4207_v2 = vmul.f32 %v4202_v60, %v4195_v59  ;;  %v4180_v0 = vadd.f32 1e-05, %v4172_v62 }
0x1746   : > { %v4166_v25 = vpop.xlane.xlu1 %4165 }
0x1747   : > { %v4219_v30 = vadd.f32 %v4214_v56, %v4207_v2  ;;  %5744 = vrsqrt.f32 %v4180_v0  ;;  %v4174_v44 = vmul.f32 0.0078125, %v4166_v25 }
0x1749   : > { %4227 = vst [vmem:[#allocation2 + $0x20] sm:$0xff] %v4219_v30  ;;  %v4182_v49 = vadd.f32 1e-05, %v4174_v44 }
0x174a   : > { %v5743_v9 = vpop.eup %5742 }
0x174b   : > { %v4197_v61 = vmul.f32 %v5743_v9, %v6912_v21  ;;  %5746 = vrsqrt.f32 %v4182_v49  ;;  %v4635_v21 = vpack.c.bf16 (!%p4598_p5), %v6865_v4, %v6863_v1 }
0x174d   : > { %v4209_v55 = vmul.f32 %v4202_v60, %v4197_v61  ;;  %4636 = vst [vmem:[%s7009_s28] sm:$0xff] (!%p4598_p5), %v4635_v21  }
0x174f   : > { %v4221_v34 = vadd.f32 %v4214_v56, %v4209_v55 }
0x1751   : > { %v5745_v3 = vpop.eup %5744  ;;  %4229 = vst [vmem:[#allocation2 + $0x30] sm:$0xff] %v4221_v34 }
0x1752   : > { %v4196_v23 = vmul.f32 %v5745_v3, %v6918_v52  ;;  %v4645_v52 = vpack.c.bf16 (!%p4598_p5), %v6891_v8, %v6879_v50 }
0x1754   : > { %v4208_v57 = vmul.f32 %v4202_v60, %v4196_v23  ;;  %4650 = vst [vmem:[%s7009_s28 + $0x10] sm:$0xff] (!%p4598_p5), %v4645_v52  }
0x1755   : > { %v5747_v16 = vpop.eup %5746 }
0x1756   : > { %v4220_v29 = vadd.f32 %v4214_v56, %v4208_v57  ;;  %v4198_v7 = vmul.f32 %v5747_v16, %v6916_v19  ;;  %4234 = sbr.rel (%p4598_p5) target bundleno = 5981 (0x175d), region = 80  ;;  %v4619_v19 = vpack.c.bf16 (!%p4598_p5), %v6885_v33, %v6885_v33 }
0x1758   : > { %4228 = vst [vmem:[#allocation2 + $0x28] sm:$0xff] %v4220_v29  ;;  %v4210_v12 = vmul.f32 %v4202_v60, %v4198_v7  ;;  %4274 = vst [vmem:[%s7009_s28 + $0x1c] sm:$0x3] (!%p4598_p5), %v4619_v19 }
0x175a   : > { %v4222_v27 = vadd.f32 %v4214_v56, %v4210_v12 }
0x175c   : > { %4230 = vst [vmem:[#allocation2 + $0x38] sm:$0xf] %v4222_v27 }
0x175d PF: > { %s7010_s23 = sld [smem:[#allocation3_spill]] }
0x1763   : > { %s23_s25 = sadd.s32 1, %s7010_s23  }
0x1764   : > { %p20_p6 = scmp.ge.s32.totalorder %s23_s25, 4  }
0x1766   :  { %22 = sbr.rel (!%p20_p6) target bundleno = 7 (0x7), region = 139 }

</bundles_post_ra>
